<compile_context>
chip_gen: v7x
topology: tpu7x:2x2x1
jax: 0.10.0
libtpu: 0.0.40
codegen_flags: <defaults>
</compile_context>

<pallas_src>
import jax
import jax.numpy as jnp
from jax.experimental import pallas as pl
from jax.experimental.pallas import tpu as pltpu

HIDDEN_SIZE = 32
INPUT_SIZE = 1
OUTPUT_SIZE = 1


def _lstm_forecast_kernel(x_ref,        # (BB, S, 1)  input block
                          w_ih1_ref,    # (1, 4H)     W_ih_l0.T   (layer 1)
                          w_hh1_ref,    # (H, 4H)     W_hh_l0.T   (layer 1)
                          b1_ref,       # (1, 4H)     b_ih + b_hh (layer 1)
                          w_ih2_ref,    # (H, 4H)     W_ih_l1.T   (layer 2)
                          w_hh2_ref,    # (H, 4H)     W_hh_l1.T   (layer 2)
                          b2_ref,       # (1, 4H)     b_ih + b_hh (layer 2)
                          w_fc_ref,     # (1, H)      fc.weight
                          b_fc_ref,     # (1, 1)      fc.bias
                          out_ref,      # (BB, 1)
                          ):
    H = w_hh1_ref.shape[0]
    B, S, _ = x_ref.shape
    f32 = jnp.float32

    # ---- hoisted, loop-invariant work -------------------------------------
    # Layer-1 input projection for ALL timesteps in one vectorized op
    # (input_size == 1, so x @ W_ih.T is a broadcasted multiply).  This keeps
    # the broadcast-mul + bias-add off the serial per-step critical path.
    ig1 = x_ref[...] * w_ih1_ref[...] + b1_ref[...]          # (BB, S, 4H)

    # Weights / biases stay vreg-resident across the whole unrolled loop.
    w_hh1 = w_hh1_ref[...]                                   # (H, 4H)
    w_ih2 = w_ih2_ref[...]                                   # (H, 4H)
    w_hh2 = w_hh2_ref[...]                                   # (H, 4H)
    b2 = b2_ref[...]                                         # (1, 4H)

    # Lane mask selecting the "g" gate block (PyTorch gate order i, f, g, o).
    lane = jax.lax.broadcasted_iota(jnp.int32, (B, 4 * H), 1)
    g_block = (lane >= 2 * H) & (lane < 3 * H)

    def cell(gates, c):
        # Single full-width tanh over the whole (BB, 4H) vreg.
        # sigmoid(x) = 0.5 * (1 + tanh(x / 2))  (exact identity), so the i/f/o
        # lanes get tanh(gates/2) remapped, the g lanes get tanh(gates).
        t = jnp.tanh(jnp.where(g_block, gates, 0.5 * gates))
        act = jnp.where(g_block, t, 0.5 * t + 0.5)
        i = act[:, 0:H]
        f = act[:, H:2 * H]
        g = act[:, 2 * H:3 * H]
        o = act[:, 3 * H:4 * H]
        c_new = f * c + i * g
        h_new = o * jnp.tanh(c_new)
        return h_new, c_new

    h1 = jnp.zeros((B, H), f32)
    c1 = jnp.zeros((B, H), f32)
    h2 = jnp.zeros((B, H), f32)
    c2 = jnp.zeros((B, H), f32)

    # S is small and static: fully unroll so the scheduler can overlap
    # layer-1 of step t with the h2(t-1) @ W_hh2 dot of layer-2.
    for t in range(S):
        # ---- layer 2 partial: only depends on h2(t-1), issue it early -----
        pre2 = jnp.dot(h2, w_hh2, preferred_element_type=f32) + b2

        # ---- layer 1 cell: input projection already precomputed -----------
        gates1 = ig1[:, t, :] + jnp.dot(h1, w_hh1, preferred_element_type=f32)
        h1, c1 = cell(gates1, c1)

        # ---- layer 2 cell: second partial dot depends on fresh h1 ---------
        gates2 = pre2 + jnp.dot(h1, w_ih2, preferred_element_type=f32)
        h2, c2 = cell(gates2, c2)

    # fc on the last hidden state of layer 2: (BB,H) . (H,) + b
    out_ref[...] = (jnp.sum(h2 * w_fc_ref[...], axis=-1, keepdims=True)
                    + b_fc_ref[...])


def lstm_forecast(input_seq, params, *, num_blocks=1):
    """input_seq: (B, S, 1) float32 -> predictions (B, 1) float32.

    num_blocks: number of grid points (batch shards). Keep it at 1 for
    v5e/v6e (single TensorCore) and use 2 on v7x only when B >= 16, since
    extra grid steps replay the whole serial recurrence.
    """
    B, S, I = input_seq.shape
    assert I == INPUT_SIZE
    H = HIDDEN_SIZE

    assert B % num_blocks == 0
    batch_block = B // num_blocks

    x = input_seq.astype(jnp.float32)                         # (B, S, 1), no transpose

    w_ih1 = params["w_ih1"].T                                 # (1, 4H)
    w_hh1 = params["w_hh1"].T                                 # (H, 4H)
    b1 = (params["b_ih1"] + params["b_hh1"])[None, :]         # (1, 4H)
    w_ih2 = params["w_ih2"].T                                 # (H, 4H)
    w_hh2 = params["w_hh2"].T                                 # (H, 4H)
    b2 = (params["b_ih2"] + params["b_hh2"])[None, :]         # (1, 4H)
    w_fc = params["w_fc"]                                     # (1, H)
    b_fc = params["b_fc"][None, :]                            # (1, 1)

    def full(shape):
        return pl.BlockSpec(shape, lambda i: (0,) * len(shape))

    # NOTE: the hoisted ig1 intermediate is S*BB*4H*4 bytes per block; for
    # very large batch blocks raise vmem_limit_bytes in CompilerParams or cap
    # batch_block (irrelevant at toy sizes).
    return pl.pallas_call(
        _lstm_forecast_kernel,
        out_shape=jax.ShapeDtypeStruct((B, OUTPUT_SIZE), jnp.float32),
        grid=(num_blocks,),
        in_specs=[
            pl.BlockSpec((batch_block, S, 1), lambda i: (i, 0, 0)),
            full((1, 4 * H)),
            full((H, 4 * H)),
            full((1, 4 * H)),
            full((H, 4 * H)),
            full((H, 4 * H)),
            full((1, 4 * H)),
            full((1, H)),
            full((1, 1)),
        ],
        out_specs=pl.BlockSpec((batch_block, OUTPUT_SIZE), lambda i: (i, 0)),
        compiler_params=pltpu.CompilerParams(
            dimension_semantics=("parallel",)),
    )(x, w_ih1, w_hh1, b1, w_ih2, w_hh2, b2, w_fc, b_fc)


def _reference_forward(input_seq, params):
    """Pure-JAX reference with identical PyTorch LSTM semantics."""
    B, S, _ = input_seq.shape
    H = HIDDEN_SIZE

    def cell(x_t, h, c, w_ih, w_hh, b_ih, b_hh):
        gates = x_t @ w_ih.T + h @ w_hh.T + b_ih + b_hh
        i = jax.nn.sigmoid(gates[:, 0:H])
        f = jax.nn.sigmoid(gates[:, H:2 * H])
        g = jnp.tanh(gates[:, 2 * H:3 * H])
        o = jax.nn.sigmoid(gates[:, 3 * H:4 * H])
        c = f * c + i * g
        h = o * jnp.tanh(c)
        return h, c

    h1 = jnp.zeros((B, H), jnp.float32)
    c1 = jnp.zeros((B, H), jnp.float32)
    h2 = jnp.zeros((B, H), jnp.float32)
    c2 = jnp.zeros((B, H), jnp.float32)
    for t in range(S):
        x_t = input_seq[:, t, :]
        h1, c1 = cell(x_t, h1, c1, params["w_ih1"], params["w_hh1"],
                      params["b_ih1"], params["b_hh1"])
        h2, c2 = cell(h1, h2, c2, params["w_ih2"], params["w_hh2"],
                      params["b_ih2"], params["b_hh2"])
    return h2 @ params["w_fc"].T + params["b_fc"]


def init_params(key):
    """Deterministic init mimicking PyTorch's U(-1/sqrt(H), 1/sqrt(H))."""
    H = HIDDEN_SIZE
    k = 1.0 / jnp.sqrt(jnp.float32(H))
    keys = jax.random.split(key, 10)

    def u(kk, shape):
        return jax.random.uniform(kk, shape, jnp.float32, -k, k)

    return {
        "w_ih1": u(keys[0], (4 * H, INPUT_SIZE)),
        "w_hh1": u(keys[1], (4 * H, H)),
        "b_ih1": u(keys[2], (4 * H,)),
        "b_hh1": u(keys[3], (4 * H,)),
        "w_ih2": u(keys[4], (4 * H, H)),
        "w_hh2": u(keys[5], (4 * H, H)),
        "b_ih2": u(keys[6], (4 * H,)),
        "b_hh2": u(keys[7], (4 * H,)),
        "w_fc": u(keys[8], (OUTPUT_SIZE, H)),
        "b_fc": u(keys[9], (OUTPUT_SIZE,)),
    }


if __name__ == "__main__":
    B, S = 8, 12
    key = jax.random.PRNGKey(0)
    k_x, k_p = jax.random.split(key)

    input_seq = jax.random.normal(k_x, (B, S, INPUT_SIZE), jnp.float32)
    params = init_params(k_p)

    preds = lstm_forecast(input_seq, params)
    preds = jax.block_until_ready(preds)

    ref = _reference_forward(input_seq, params)
    assert preds.shape == (B, OUTPUT_SIZE)
    assert jnp.allclose(preds, ref, rtol=1e-5, atol=1e-5), (
        f"mismatch: max abs err {jnp.max(jnp.abs(preds - ref))}")

    print("KERNEL_OK")
</pallas_src>

<mosaic_0001>
module attributes {stable_mosaic.version = 11 : i64} {
  func.func @_lstm_forecast_kernel(%arg0: i32, %arg1: memref<8x12x1xf32, #tpu.memory_space<vmem>>, %arg2: memref<1x128xf32, #tpu.memory_space<vmem>>, %arg3: memref<32x128xf32, #tpu.memory_space<vmem>>, %arg4: memref<1x128xf32, #tpu.memory_space<vmem>>, %arg5: memref<32x128xf32, #tpu.memory_space<vmem>>, %arg6: memref<32x128xf32, #tpu.memory_space<vmem>>, %arg7: memref<1x128xf32, #tpu.memory_space<vmem>>, %arg8: memref<1x32xf32, #tpu.memory_space<vmem>>, %arg9: memref<1x1xf32, #tpu.memory_space<vmem>>, %arg10: memref<8x1xf32, #tpu.memory_space<vmem>>) attributes {dimension_semantics = [#tpu.dimension_semantics<parallel>], iteration_bounds = array<i64: 1>, scalar_prefetch = 0 : i64, scratch_operands = 0 : i64, tpu.core_type = #tpu.core_type<tc>, window_params = [{transform_indices = @transform_0, window_bounds = array<i64: 8, 12, 1>}, {pipeline_mode = #tpu.pipeline_mode<synchronous>, transform_indices = @transform_1, window_bounds = array<i64: 1, 128>}, {pipeline_mode = #tpu.pipeline_mode<synchronous>, transform_indices = @transform_2, window_bounds = array<i64: 32, 128>}, {pipeline_mode = #tpu.pipeline_mode<synchronous>, transform_indices = @transform_3, window_bounds = array<i64: 1, 128>}, {pipeline_mode = #tpu.pipeline_mode<synchronous>, transform_indices = @transform_4, window_bounds = array<i64: 32, 128>}, {pipeline_mode = #tpu.pipeline_mode<synchronous>, transform_indices = @transform_5, window_bounds = array<i64: 32, 128>}, {pipeline_mode = #tpu.pipeline_mode<synchronous>, transform_indices = @transform_6, window_bounds = array<i64: 1, 128>}, {pipeline_mode = #tpu.pipeline_mode<synchronous>, transform_indices = @transform_7, window_bounds = array<i64: 1, 32>}, {pipeline_mode = #tpu.pipeline_mode<synchronous>, transform_indices = @transform_8, window_bounds = array<i64: 1, 1>}, {transform_indices = @transform_9, window_bounds = array<i64: 8, 1>}]} {
    %c0 = arith.constant 0 : index
    %c0_0 = arith.constant 0 : index
    %c0_1 = arith.constant 0 : index
    %0 = vector.load %arg1[%c0, %c0_0, %c0_1] : memref<8x12x1xf32, #tpu.memory_space<vmem>>, vector<8x12x1xf32>
    %c0_2 = arith.constant 0 : index
    %c0_3 = arith.constant 0 : index
    %1 = vector.load %arg2[%c0_2, %c0_3] : memref<1x128xf32, #tpu.memory_space<vmem>>, vector<1x128xf32>
    %2 = vector.shape_cast %1 : vector<1x128xf32> to vector<1x1x128xf32>
    %3 = vector.broadcast %0 : vector<8x12x1xf32> to vector<8x12x128xf32>
    %4 = vector.broadcast %2 : vector<1x1x128xf32> to vector<8x12x128xf32>
    %5 = arith.mulf %3, %4 : vector<8x12x128xf32>
    %c0_4 = arith.constant 0 : index
    %c0_5 = arith.constant 0 : index
    %6 = vector.load %arg4[%c0_4, %c0_5] : memref<1x128xf32, #tpu.memory_space<vmem>>, vector<1x128xf32>
    %7 = vector.shape_cast %6 : vector<1x128xf32> to vector<1x1x128xf32>
    %8 = vector.broadcast %7 : vector<1x1x128xf32> to vector<8x12x128xf32>
    %9 = arith.addf %5, %8 : vector<8x12x128xf32>
    %c0_6 = arith.constant 0 : index
    %c0_7 = arith.constant 0 : index
    %10 = vector.load %arg3[%c0_6, %c0_7] : memref<32x128xf32, #tpu.memory_space<vmem>>, vector<32x128xf32>
    %c0_8 = arith.constant 0 : index
    %c0_9 = arith.constant 0 : index
    %11 = vector.load %arg5[%c0_8, %c0_9] : memref<32x128xf32, #tpu.memory_space<vmem>>, vector<32x128xf32>
    %c0_10 = arith.constant 0 : index
    %c0_11 = arith.constant 0 : index
    %12 = vector.load %arg6[%c0_10, %c0_11] : memref<32x128xf32, #tpu.memory_space<vmem>>, vector<32x128xf32>
    %c0_12 = arith.constant 0 : index
    %c0_13 = arith.constant 0 : index
    %13 = vector.load %arg7[%c0_12, %c0_13] : memref<1x128xf32, #tpu.memory_space<vmem>>, vector<1x128xf32>
    %14 = tpu.iota {dimensions = array<i32: 1>} : vector<8x128xi32>
    %c64_i32 = arith.constant 64 : i32
    %15 = vector.broadcast %c64_i32 : i32 to vector<8x128xi32>
    %16 = arith.cmpi sge, %14, %15 : vector<8x128xi32>
    %c96_i32 = arith.constant 96 : i32
    %17 = vector.broadcast %c96_i32 : i32 to vector<8x128xi32>
    %18 = arith.cmpi slt, %14, %17 : vector<8x128xi32>
    %19 = arith.andi %16, %18 : vector<8x128xi1>
    %cst = arith.constant 0.000000e+00 : f32
    %20 = vector.broadcast %cst : f32 to vector<8x32xf32>
    %cst_14 = arith.constant 0.000000e+00 : f32
    %21 = vector.broadcast %cst_14 : f32 to vector<8x32xf32>
    %cst_15 = arith.constant 0.000000e+00 : f32
    %22 = vector.broadcast %cst_15 : f32 to vector<8x32xf32>
    %cst_16 = arith.constant 0.000000e+00 : f32
    %23 = vector.broadcast %cst_16 : f32 to vector<8x32xf32>
    %cst_17 = arith.constant dense<0.000000e+00> : vector<8x128xf32>
    %24 = tpu.matmul %22, %12, %cst_17 {dimension_numbers = #tpu.dot_dimension_numbers<[1], [0], [0], [1], [0, 0, 1, 1], [], []>} : vector<8x32xf32>, vector<32x128xf32>, vector<8x128xf32> -> vector<8x128xf32>
    %25 = vector.broadcast %13 : vector<1x128xf32> to vector<8x128xf32>
    %26 = arith.addf %24, %25 : vector<8x128xf32>
    %27 = vector.extract_strided_slice %9 {offsets = [0, 0, 0], sizes = [8, 1, 128], strides = [1, 1, 1]} : vector<8x12x128xf32> to vector<8x1x128xf32>
    %28 = vector.shape_cast %27 : vector<8x1x128xf32> to vector<8x128xf32>
    %cst_18 = arith.constant dense<0.000000e+00> : vector<8x128xf32>
    %29 = tpu.matmul %20, %10, %cst_18 {dimension_numbers = #tpu.dot_dimension_numbers<[1], [0], [0], [1], [0, 0, 1, 1], [], []>} : vector<8x32xf32>, vector<32x128xf32>, vector<8x128xf32> -> vector<8x128xf32>
    %30 = arith.addf %28, %29 : vector<8x128xf32>
    %cst_19 = arith.constant 5.000000e-01 : f32
    %31 = vector.broadcast %cst_19 : f32 to vector<8x128xf32>
    %32 = arith.mulf %31, %30 : vector<8x128xf32>
    %33 = arith.select %19, %30, %32 : vector<8x128xi1>, vector<8x128xf32>
    %34 = math.tanh %33 : vector<8x128xf32>
    %cst_20 = arith.constant 5.000000e-01 : f32
    %35 = vector.broadcast %cst_20 : f32 to vector<8x128xf32>
    %36 = arith.mulf %35, %34 : vector<8x128xf32>
    %cst_21 = arith.constant 5.000000e-01 : f32
    %37 = vector.broadcast %cst_21 : f32 to vector<8x128xf32>
    %38 = arith.addf %36, %37 : vector<8x128xf32>
    %39 = arith.select %19, %34, %38 : vector<8x128xi1>, vector<8x128xf32>
    %40 = vector.extract_strided_slice %39 {offsets = [0, 0], sizes = [8, 32], strides = [1, 1]} : vector<8x128xf32> to vector<8x32xf32>
    %41 = vector.extract_strided_slice %39 {offsets = [0, 32], sizes = [8, 32], strides = [1, 1]} : vector<8x128xf32> to vector<8x32xf32>
    %42 = vector.extract_strided_slice %39 {offsets = [0, 64], sizes = [8, 32], strides = [1, 1]} : vector<8x128xf32> to vector<8x32xf32>
    %43 = vector.extract_strided_slice %39 {offsets = [0, 96], sizes = [8, 32], strides = [1, 1]} : vector<8x128xf32> to vector<8x32xf32>
    %44 = arith.mulf %41, %21 : vector<8x32xf32>
    %45 = arith.mulf %40, %42 : vector<8x32xf32>
    %46 = arith.addf %44, %45 : vector<8x32xf32>
    %47 = math.tanh %46 : vector<8x32xf32>
    %48 = arith.mulf %43, %47 : vector<8x32xf32>
    %cst_22 = arith.constant dense<0.000000e+00> : vector<8x128xf32>
    %49 = tpu.matmul %48, %11, %cst_22 {dimension_numbers = #tpu.dot_dimension_numbers<[1], [0], [0], [1], [0, 0, 1, 1], [], []>} : vector<8x32xf32>, vector<32x128xf32>, vector<8x128xf32> -> vector<8x128xf32>
    %50 = arith.addf %26, %49 : vector<8x128xf32>
    %cst_23 = arith.constant 5.000000e-01 : f32
    %51 = vector.broadcast %cst_23 : f32 to vector<8x128xf32>
    %52 = arith.mulf %51, %50 : vector<8x128xf32>
    %53 = arith.select %19, %50, %52 : vector<8x128xi1>, vector<8x128xf32>
    %54 = math.tanh %53 : vector<8x128xf32>
    %cst_24 = arith.constant 5.000000e-01 : f32
    %55 = vector.broadcast %cst_24 : f32 to vector<8x128xf32>
    %56 = arith.mulf %55, %54 : vector<8x128xf32>
    %cst_25 = arith.constant 5.000000e-01 : f32
    %57 = vector.broadcast %cst_25 : f32 to vector<8x128xf32>
    %58 = arith.addf %56, %57 : vector<8x128xf32>
    %59 = arith.select %19, %54, %58 : vector<8x128xi1>, vector<8x128xf32>
    %60 = vector.extract_strided_slice %59 {offsets = [0, 0], sizes = [8, 32], strides = [1, 1]} : vector<8x128xf32> to vector<8x32xf32>
    %61 = vector.extract_strided_slice %59 {offsets = [0, 32], sizes = [8, 32], strides = [1, 1]} : vector<8x128xf32> to vector<8x32xf32>
    %62 = vector.extract_strided_slice %59 {offsets = [0, 64], sizes = [8, 32], strides = [1, 1]} : vector<8x128xf32> to vector<8x32xf32>
    %63 = vector.extract_strided_slice %59 {offsets = [0, 96], sizes = [8, 32], strides = [1, 1]} : vector<8x128xf32> to vector<8x32xf32>
    %64 = arith.mulf %61, %23 : vector<8x32xf32>
    %65 = arith.mulf %60, %62 : vector<8x32xf32>
    %66 = arith.addf %64, %65 : vector<8x32xf32>
    %67 = math.tanh %66 : vector<8x32xf32>
    %68 = arith.mulf %63, %67 : vector<8x32xf32>
    %cst_26 = arith.constant dense<0.000000e+00> : vector<8x128xf32>
    %69 = tpu.matmul %68, %12, %cst_26 {dimension_numbers = #tpu.dot_dimension_numbers<[1], [0], [0], [1], [0, 0, 1, 1], [], []>} : vector<8x32xf32>, vector<32x128xf32>, vector<8x128xf32> -> vector<8x128xf32>
    %70 = vector.broadcast %13 : vector<1x128xf32> to vector<8x128xf32>
    %71 = arith.addf %69, %70 : vector<8x128xf32>
    %72 = vector.extract_strided_slice %9 {offsets = [0, 1, 0], sizes = [8, 1, 128], strides = [1, 1, 1]} : vector<8x12x128xf32> to vector<8x1x128xf32>
    %73 = vector.shape_cast %72 : vector<8x1x128xf32> to vector<8x128xf32>
    %cst_27 = arith.constant dense<0.000000e+00> : vector<8x128xf32>
    %74 = tpu.matmul %48, %10, %cst_27 {dimension_numbers = #tpu.dot_dimension_numbers<[1], [0], [0], [1], [0, 0, 1, 1], [], []>} : vector<8x32xf32>, vector<32x128xf32>, vector<8x128xf32> -> vector<8x128xf32>
    %75 = arith.addf %73, %74 : vector<8x128xf32>
    %cst_28 = arith.constant 5.000000e-01 : f32
    %76 = vector.broadcast %cst_28 : f32 to vector<8x128xf32>
    %77 = arith.mulf %76, %75 : vector<8x128xf32>
    %78 = arith.select %19, %75, %77 : vector<8x128xi1>, vector<8x128xf32>
    %79 = math.tanh %78 : vector<8x128xf32>
    %cst_29 = arith.constant 5.000000e-01 : f32
    %80 = vector.broadcast %cst_29 : f32 to vector<8x128xf32>
    %81 = arith.mulf %80, %79 : vector<8x128xf32>
    %cst_30 = arith.constant 5.000000e-01 : f32
    %82 = vector.broadcast %cst_30 : f32 to vector<8x128xf32>
    %83 = arith.addf %81, %82 : vector<8x128xf32>
    %84 = arith.select %19, %79, %83 : vector<8x128xi1>, vector<8x128xf32>
    %85 = vector.extract_strided_slice %84 {offsets = [0, 0], sizes = [8, 32], strides = [1, 1]} : vector<8x128xf32> to vector<8x32xf32>
    %86 = vector.extract_strided_slice %84 {offsets = [0, 32], sizes = [8, 32], strides = [1, 1]} : vector<8x128xf32> to vector<8x32xf32>
    %87 = vector.extract_strided_slice %84 {offsets = [0, 64], sizes = [8, 32], strides = [1, 1]} : vector<8x128xf32> to vector<8x32xf32>
    %88 = vector.extract_strided_slice %84 {offsets = [0, 96], sizes = [8, 32], strides = [1, 1]} : vector<8x128xf32> to vector<8x32xf32>
    %89 = arith.mulf %86, %46 : vector<8x32xf32>
    %90 = arith.mulf %85, %87 : vector<8x32xf32>
    %91 = arith.addf %89, %90 : vector<8x32xf32>
    %92 = math.tanh %91 : vector<8x32xf32>
    %93 = arith.mulf %88, %92 : vector<8x32xf32>
    %cst_31 = arith.constant dense<0.000000e+00> : vector<8x128xf32>
    %94 = tpu.matmul %93, %11, %cst_31 {dimension_numbers = #tpu.dot_dimension_numbers<[1], [0], [0], [1], [0, 0, 1, 1], [], []>} : vector<8x32xf32>, vector<32x128xf32>, vector<8x128xf32> -> vector<8x128xf32>
    %95 = arith.addf %71, %94 : vector<8x128xf32>
    %cst_32 = arith.constant 5.000000e-01 : f32
    %96 = vector.broadcast %cst_32 : f32 to vector<8x128xf32>
    %97 = arith.mulf %96, %95 : vector<8x128xf32>
    %98 = arith.select %19, %95, %97 : vector<8x128xi1>, vector<8x128xf32>
    %99 = math.tanh %98 : vector<8x128xf32>
    %cst_33 = arith.constant 5.000000e-01 : f32
    %100 = vector.broadcast %cst_33 : f32 to vector<8x128xf32>
    %101 = arith.mulf %100, %99 : vector<8x128xf32>
    %cst_34 = arith.constant 5.000000e-01 : f32
    %102 = vector.broadcast %cst_34 : f32 to vector<8x128xf32>
    %103 = arith.addf %101, %102 : vector<8x128xf32>
    %104 = arith.select %19, %99, %103 : vector<8x128xi1>, vector<8x128xf32>
    %105 = vector.extract_strided_slice %104 {offsets = [0, 0], sizes = [8, 32], strides = [1, 1]} : vector<8x128xf32> to vector<8x32xf32>
    %106 = vector.extract_strided_slice %104 {offsets = [0, 32], sizes = [8, 32], strides = [1, 1]} : vector<8x128xf32> to vector<8x32xf32>
    %107 = vector.extract_strided_slice %104 {offsets = [0, 64], sizes = [8, 32], strides = [1, 1]} : vector<8x128xf32> to vector<8x32xf32>
    %108 = vector.extract_strided_slice %104 {offsets = [0, 96], sizes = [8, 32], strides = [1, 1]} : vector<8x128xf32> to vector<8x32xf32>
    %109 = arith.mulf %106, %66 : vector<8x32xf32>
    %110 = arith.mulf %105, %107 : vector<8x32xf32>
    %111 = arith.addf %109, %110 : vector<8x32xf32>
    %112 = math.tanh %111 : vector<8x32xf32>
    %113 = arith.mulf %108, %112 : vector<8x32xf32>
    %cst_35 = arith.constant dense<0.000000e+00> : vector<8x128xf32>
    %114 = tpu.matmul %113, %12, %cst_35 {dimension_numbers = #tpu.dot_dimension_numbers<[1], [0], [0], [1], [0, 0, 1, 1], [], []>} : vector<8x32xf32>, vector<32x128xf32>, vector<8x128xf32> -> vector<8x128xf32>
    %115 = vector.broadcast %13 : vector<1x128xf32> to vector<8x128xf32>
    %116 = arith.addf %114, %115 : vector<8x128xf32>
    %117 = vector.extract_strided_slice %9 {offsets = [0, 2, 0], sizes = [8, 1, 128], strides = [1, 1, 1]} : vector<8x12x128xf32> to vector<8x1x128xf32>
    %118 = vector.shape_cast %117 : vector<8x1x128xf32> to vector<8x128xf32>
    %cst_36 = arith.constant dense<0.000000e+00> : vector<8x128xf32>
    %119 = tpu.matmul %93, %10, %cst_36 {dimension_numbers = #tpu.dot_dimension_numbers<[1], [0], [0], [1], [0, 0, 1, 1], [], []>} : vector<8x32xf32>, vector<32x128xf32>, vector<8x128xf32> -> vector<8x128xf32>
    %120 = arith.addf %118, %119 : vector<8x128xf32>
    %cst_37 = arith.constant 5.000000e-01 : f32
    %121 = vector.broadcast %cst_37 : f32 to vector<8x128xf32>
    %122 = arith.mulf %121, %120 : vector<8x128xf32>
    %123 = arith.select %19, %120, %122 : vector<8x128xi1>, vector<8x128xf32>
    %124 = math.tanh %123 : vector<8x128xf32>
    %cst_38 = arith.constant 5.000000e-01 : f32
    %125 = vector.broadcast %cst_38 : f32 to vector<8x128xf32>
    %126 = arith.mulf %125, %124 : vector<8x128xf32>
    %cst_39 = arith.constant 5.000000e-01 : f32
    %127 = vector.broadcast %cst_39 : f32 to vector<8x128xf32>
    %128 = arith.addf %126, %127 : vector<8x128xf32>
    %129 = arith.select %19, %124, %128 : vector<8x128xi1>, vector<8x128xf32>
    %130 = vector.extract_strided_slice %129 {offsets = [0, 0], sizes = [8, 32], strides = [1, 1]} : vector<8x128xf32> to vector<8x32xf32>
    %131 = vector.extract_strided_slice %129 {offsets = [0, 32], sizes = [8, 32], strides = [1, 1]} : vector<8x128xf32> to vector<8x32xf32>
    %132 = vector.extract_strided_slice %129 {offsets = [0, 64], sizes = [8, 32], strides = [1, 1]} : vector<8x128xf32> to vector<8x32xf32>
    %133 = vector.extract_strided_slice %129 {offsets = [0, 96], sizes = [8, 32], strides = [1, 1]} : vector<8x128xf32> to vector<8x32xf32>
    %134 = arith.mulf %131, %91 : vector<8x32xf32>
    %135 = arith.mulf %130, %132 : vector<8x32xf32>
    %136 = arith.addf %134, %135 : vector<8x32xf32>
    %137 = math.tanh %136 : vector<8x32xf32>
    %138 = arith.mulf %133, %137 : vector<8x32xf32>
    %cst_40 = arith.constant dense<0.000000e+00> : vector<8x128xf32>
    %139 = tpu.matmul %138, %11, %cst_40 {dimension_numbers = #tpu.dot_dimension_numbers<[1], [0], [0], [1], [0, 0, 1, 1], [], []>} : vector<8x32xf32>, vector<32x128xf32>, vector<8x128xf32> -> vector<8x128xf32>
    %140 = arith.addf %116, %139 : vector<8x128xf32>
    %cst_41 = arith.constant 5.000000e-01 : f32
    %141 = vector.broadcast %cst_41 : f32 to vector<8x128xf32>
    %142 = arith.mulf %141, %140 : vector<8x128xf32>
    %143 = arith.select %19, %140, %142 : vector<8x128xi1>, vector<8x128xf32>
    %144 = math.tanh %143 : vector<8x128xf32>
    %cst_42 = arith.constant 5.000000e-01 : f32
    %145 = vector.broadcast %cst_42 : f32 to vector<8x128xf32>
    %146 = arith.mulf %145, %144 : vector<8x128xf32>
    %cst_43 = arith.constant 5.000000e-01 : f32
    %147 = vector.broadcast %cst_43 : f32 to vector<8x128xf32>
    %148 = arith.addf %146, %147 : vector<8x128xf32>
    %149 = arith.select %19, %144, %148 : vector<8x128xi1>, vector<8x128xf32>
    %150 = vector.extract_strided_slice %149 {offsets = [0, 0], sizes = [8, 32], strides = [1, 1]} : vector<8x128xf32> to vector<8x32xf32>
    %151 = vector.extract_strided_slice %149 {offsets = [0, 32], sizes = [8, 32], strides = [1, 1]} : vector<8x128xf32> to vector<8x32xf32>
    %152 = vector.extract_strided_slice %149 {offsets = [0, 64], sizes = [8, 32], strides = [1, 1]} : vector<8x128xf32> to vector<8x32xf32>
    %153 = vector.extract_strided_slice %149 {offsets = [0, 96], sizes = [8, 32], strides = [1, 1]} : vector<8x128xf32> to vector<8x32xf32>
    %154 = arith.mulf %151, %111 : vector<8x32xf32>
    %155 = arith.mulf %150, %152 : vector<8x32xf32>
    %156 = arith.addf %154, %155 : vector<8x32xf32>
    %157 = math.tanh %156 : vector<8x32xf32>
    %158 = arith.mulf %153, %157 : vector<8x32xf32>
    %cst_44 = arith.constant dense<0.000000e+00> : vector<8x128xf32>
    %159 = tpu.matmul %158, %12, %cst_44 {dimension_numbers = #tpu.dot_dimension_numbers<[1], [0], [0], [1], [0, 0, 1, 1], [], []>} : vector<8x32xf32>, vector<32x128xf32>, vector<8x128xf32> -> vector<8x128xf32>
    %160 = vector.broadcast %13 : vector<1x128xf32> to vector<8x128xf32>
    %161 = arith.addf %159, %160 : vector<8x128xf32>
    %162 = vector.extract_strided_slice %9 {offsets = [0, 3, 0], sizes = [8, 1, 128], strides = [1, 1, 1]} : vector<8x12x128xf32> to vector<8x1x128xf32>
    %163 = vector.shape_cast %162 : vector<8x1x128xf32> to vector<8x128xf32>
    %cst_45 = arith.constant dense<0.000000e+00> : vector<8x128xf32>
    %164 = tpu.matmul %138, %10, %cst_45 {dimension_numbers = #tpu.dot_dimension_numbers<[1], [0], [0], [1], [0, 0, 1, 1], [], []>} : vector<8x32xf32>, vector<32x128xf32>, vector<8x128xf32> -> vector<8x128xf32>
    %165 = arith.addf %163, %164 : vector<8x128xf32>
    %cst_46 = arith.constant 5.000000e-01 : f32
    %166 = vector.broadcast %cst_46 : f32 to vector<8x128xf32>
    %167 = arith.mulf %166, %165 : vector<8x128xf32>
    %168 = arith.select %19, %165, %167 : vector<8x128xi1>, vector<8x128xf32>
    %169 = math.tanh %168 : vector<8x128xf32>
    %cst_47 = arith.constant 5.000000e-01 : f32
    %170 = vector.broadcast %cst_47 : f32 to vector<8x128xf32>
    %171 = arith.mulf %170, %169 : vector<8x128xf32>
    %cst_48 = arith.constant 5.000000e-01 : f32
    %172 = vector.broadcast %cst_48 : f32 to vector<8x128xf32>
    %173 = arith.addf %171, %172 : vector<8x128xf32>
    %174 = arith.select %19, %169, %173 : vector<8x128xi1>, vector<8x128xf32>
    %175 = vector.extract_strided_slice %174 {offsets = [0, 0], sizes = [8, 32], strides = [1, 1]} : vector<8x128xf32> to vector<8x32xf32>
    %176 = vector.extract_strided_slice %174 {offsets = [0, 32], sizes = [8, 32], strides = [1, 1]} : vector<8x128xf32> to vector<8x32xf32>
    %177 = vector.extract_strided_slice %174 {offsets = [0, 64], sizes = [8, 32], strides = [1, 1]} : vector<8x128xf32> to vector<8x32xf32>
    %178 = vector.extract_strided_slice %174 {offsets = [0, 96], sizes = [8, 32], strides = [1, 1]} : vector<8x128xf32> to vector<8x32xf32>
    %179 = arith.mulf %176, %136 : vector<8x32xf32>
    %180 = arith.mulf %175, %177 : vector<8x32xf32>
    %181 = arith.addf %179, %180 : vector<8x32xf32>
    %182 = math.tanh %181 : vector<8x32xf32>
    %183 = arith.mulf %178, %182 : vector<8x32xf32>
    %cst_49 = arith.constant dense<0.000000e+00> : vector<8x128xf32>
    %184 = tpu.matmul %183, %11, %cst_49 {dimension_numbers = #tpu.dot_dimension_numbers<[1], [0], [0], [1], [0, 0, 1, 1], [], []>} : vector<8x32xf32>, vector<32x128xf32>, vector<8x128xf32> -> vector<8x128xf32>
    %185 = arith.addf %161, %184 : vector<8x128xf32>
    %cst_50 = arith.constant 5.000000e-01 : f32
    %186 = vector.broadcast %cst_50 : f32 to vector<8x128xf32>
    %187 = arith.mulf %186, %185 : vector<8x128xf32>
    %188 = arith.select %19, %185, %187 : vector<8x128xi1>, vector<8x128xf32>
    %189 = math.tanh %188 : vector<8x128xf32>
    %cst_51 = arith.constant 5.000000e-01 : f32
    %190 = vector.broadcast %cst_51 : f32 to vector<8x128xf32>
    %191 = arith.mulf %190, %189 : vector<8x128xf32>
    %cst_52 = arith.constant 5.000000e-01 : f32
    %192 = vector.broadcast %cst_52 : f32 to vector<8x128xf32>
    %193 = arith.addf %191, %192 : vector<8x128xf32>
    %194 = arith.select %19, %189, %193 : vector<8x128xi1>, vector<8x128xf32>
    %195 = vector.extract_strided_slice %194 {offsets = [0, 0], sizes = [8, 32], strides = [1, 1]} : vector<8x128xf32> to vector<8x32xf32>
    %196 = vector.extract_strided_slice %194 {offsets = [0, 32], sizes = [8, 32], strides = [1, 1]} : vector<8x128xf32> to vector<8x32xf32>
    %197 = vector.extract_strided_slice %194 {offsets = [0, 64], sizes = [8, 32], strides = [1, 1]} : vector<8x128xf32> to vector<8x32xf32>
    %198 = vector.extract_strided_slice %194 {offsets = [0, 96], sizes = [8, 32], strides = [1, 1]} : vector<8x128xf32> to vector<8x32xf32>
    %199 = arith.mulf %196, %156 : vector<8x32xf32>
    %200 = arith.mulf %195, %197 : vector<8x32xf32>
    %201 = arith.addf %199, %200 : vector<8x32xf32>
    %202 = math.tanh %201 : vector<8x32xf32>
    %203 = arith.mulf %198, %202 : vector<8x32xf32>
    %cst_53 = arith.constant dense<0.000000e+00> : vector<8x128xf32>
    %204 = tpu.matmul %203, %12, %cst_53 {dimension_numbers = #tpu.dot_dimension_numbers<[1], [0], [0], [1], [0, 0, 1, 1], [], []>} : vector<8x32xf32>, vector<32x128xf32>, vector<8x128xf32> -> vector<8x128xf32>
    %205 = vector.broadcast %13 : vector<1x128xf32> to vector<8x128xf32>
    %206 = arith.addf %204, %205 : vector<8x128xf32>
    %207 = vector.extract_strided_slice %9 {offsets = [0, 4, 0], sizes = [8, 1, 128], strides = [1, 1, 1]} : vector<8x12x128xf32> to vector<8x1x128xf32>
    %208 = vector.shape_cast %207 : vector<8x1x128xf32> to vector<8x128xf32>
    %cst_54 = arith.constant dense<0.000000e+00> : vector<8x128xf32>
    %209 = tpu.matmul %183, %10, %cst_54 {dimension_numbers = #tpu.dot_dimension_numbers<[1], [0], [0], [1], [0, 0, 1, 1], [], []>} : vector<8x32xf32>, vector<32x128xf32>, vector<8x128xf32> -> vector<8x128xf32>
    %210 = arith.addf %208, %209 : vector<8x128xf32>
    %cst_55 = arith.constant 5.000000e-01 : f32
    %211 = vector.broadcast %cst_55 : f32 to vector<8x128xf32>
    %212 = arith.mulf %211, %210 : vector<8x128xf32>
    %213 = arith.select %19, %210, %212 : vector<8x128xi1>, vector<8x128xf32>
    %214 = math.tanh %213 : vector<8x128xf32>
    %cst_56 = arith.constant 5.000000e-01 : f32
    %215 = vector.broadcast %cst_56 : f32 to vector<8x128xf32>
    %216 = arith.mulf %215, %214 : vector<8x128xf32>
    %cst_57 = arith.constant 5.000000e-01 : f32
    %217 = vector.broadcast %cst_57 : f32 to vector<8x128xf32>
    %218 = arith.addf %216, %217 : vector<8x128xf32>
    %219 = arith.select %19, %214, %218 : vector<8x128xi1>, vector<8x128xf32>
    %220 = vector.extract_strided_slice %219 {offsets = [0, 0], sizes = [8, 32], strides = [1, 1]} : vector<8x128xf32> to vector<8x32xf32>
    %221 = vector.extract_strided_slice %219 {offsets = [0, 32], sizes = [8, 32], strides = [1, 1]} : vector<8x128xf32> to vector<8x32xf32>
    %222 = vector.extract_strided_slice %219 {offsets = [0, 64], sizes = [8, 32], strides = [1, 1]} : vector<8x128xf32> to vector<8x32xf32>
    %223 = vector.extract_strided_slice %219 {offsets = [0, 96], sizes = [8, 32], strides = [1, 1]} : vector<8x128xf32> to vector<8x32xf32>
    %224 = arith.mulf %221, %181 : vector<8x32xf32>
    %225 = arith.mulf %220, %222 : vector<8x32xf32>
    %226 = arith.addf %224, %225 : vector<8x32xf32>
    %227 = math.tanh %226 : vector<8x32xf32>
    %228 = arith.mulf %223, %227 : vector<8x32xf32>
    %cst_58 = arith.constant dense<0.000000e+00> : vector<8x128xf32>
    %229 = tpu.matmul %228, %11, %cst_58 {dimension_numbers = #tpu.dot_dimension_numbers<[1], [0], [0], [1], [0, 0, 1, 1], [], []>} : vector<8x32xf32>, vector<32x128xf32>, vector<8x128xf32> -> vector<8x128xf32>
    %230 = arith.addf %206, %229 : vector<8x128xf32>
    %cst_59 = arith.constant 5.000000e-01 : f32
    %231 = vector.broadcast %cst_59 : f32 to vector<8x128xf32>
    %232 = arith.mulf %231, %230 : vector<8x128xf32>
    %233 = arith.select %19, %230, %232 : vector<8x128xi1>, vector<8x128xf32>
    %234 = math.tanh %233 : vector<8x128xf32>
    %cst_60 = arith.constant 5.000000e-01 : f32
    %235 = vector.broadcast %cst_60 : f32 to vector<8x128xf32>
    %236 = arith.mulf %235, %234 : vector<8x128xf32>
    %cst_61 = arith.constant 5.000000e-01 : f32
    %237 = vector.broadcast %cst_61 : f32 to vector<8x128xf32>
    %238 = arith.addf %236, %237 : vector<8x128xf32>
    %239 = arith.select %19, %234, %238 : vector<8x128xi1>, vector<8x128xf32>
    %240 = vector.extract_strided_slice %239 {offsets = [0, 0], sizes = [8, 32], strides = [1, 1]} : vector<8x128xf32> to vector<8x32xf32>
    %241 = vector.extract_strided_slice %239 {offsets = [0, 32], sizes = [8, 32], strides = [1, 1]} : vector<8x128xf32> to vector<8x32xf32>
    %242 = vector.extract_strided_slice %239 {offsets = [0, 64], sizes = [8, 32], strides = [1, 1]} : vector<8x128xf32> to vector<8x32xf32>
    %243 = vector.extract_strided_slice %239 {offsets = [0, 96], sizes = [8, 32], strides = [1, 1]} : vector<8x128xf32> to vector<8x32xf32>
    %244 = arith.mulf %241, %201 : vector<8x32xf32>
    %245 = arith.mulf %240, %242 : vector<8x32xf32>
    %246 = arith.addf %244, %245 : vector<8x32xf32>
    %247 = math.tanh %246 : vector<8x32xf32>
    %248 = arith.mulf %243, %247 : vector<8x32xf32>
    %cst_62 = arith.constant dense<0.000000e+00> : vector<8x128xf32>
    %249 = tpu.matmul %248, %12, %cst_62 {dimension_numbers = #tpu.dot_dimension_numbers<[1], [0], [0], [1], [0, 0, 1, 1], [], []>} : vector<8x32xf32>, vector<32x128xf32>, vector<8x128xf32> -> vector<8x128xf32>
    %250 = vector.broadcast %13 : vector<1x128xf32> to vector<8x128xf32>
    %251 = arith.addf %249, %250 : vector<8x128xf32>
    %252 = vector.extract_strided_slice %9 {offsets = [0, 5, 0], sizes = [8, 1, 128], strides = [1, 1, 1]} : vector<8x12x128xf32> to vector<8x1x128xf32>
    %253 = vector.shape_cast %252 : vector<8x1x128xf32> to vector<8x128xf32>
    %cst_63 = arith.constant dense<0.000000e+00> : vector<8x128xf32>
    %254 = tpu.matmul %228, %10, %cst_63 {dimension_numbers = #tpu.dot_dimension_numbers<[1], [0], [0], [1], [0, 0, 1, 1], [], []>} : vector<8x32xf32>, vector<32x128xf32>, vector<8x128xf32> -> vector<8x128xf32>
    %255 = arith.addf %253, %254 : vector<8x128xf32>
    %cst_64 = arith.constant 5.000000e-01 : f32
    %256 = vector.broadcast %cst_64 : f32 to vector<8x128xf32>
    %257 = arith.mulf %256, %255 : vector<8x128xf32>
    %258 = arith.select %19, %255, %257 : vector<8x128xi1>, vector<8x128xf32>
    %259 = math.tanh %258 : vector<8x128xf32>
    %cst_65 = arith.constant 5.000000e-01 : f32
    %260 = vector.broadcast %cst_65 : f32 to vector<8x128xf32>
    %261 = arith.mulf %260, %259 : vector<8x128xf32>
    %cst_66 = arith.constant 5.000000e-01 : f32
    %262 = vector.broadcast %cst_66 : f32 to vector<8x128xf32>
    %263 = arith.addf %261, %262 : vector<8x128xf32>
    %264 = arith.select %19, %259, %263 : vector<8x128xi1>, vector<8x128xf32>
    %265 = vector.extract_strided_slice %264 {offsets = [0, 0], sizes = [8, 32], strides = [1, 1]} : vector<8x128xf32> to vector<8x32xf32>
    %266 = vector.extract_strided_slice %264 {offsets = [0, 32], sizes = [8, 32], strides = [1, 1]} : vector<8x128xf32> to vector<8x32xf32>
    %267 = vector.extract_strided_slice %264 {offsets = [0, 64], sizes = [8, 32], strides = [1, 1]} : vector<8x128xf32> to vector<8x32xf32>
    %268 = vector.extract_strided_slice %264 {offsets = [0, 96], sizes = [8, 32], strides = [1, 1]} : vector<8x128xf32> to vector<8x32xf32>
    %269 = arith.mulf %266, %226 : vector<8x32xf32>
    %270 = arith.mulf %265, %267 : vector<8x32xf32>
    %271 = arith.addf %269, %270 : vector<8x32xf32>
    %272 = math.tanh %271 : vector<8x32xf32>
    %273 = arith.mulf %268, %272 : vector<8x32xf32>
    %cst_67 = arith.constant dense<0.000000e+00> : vector<8x128xf32>
    %274 = tpu.matmul %273, %11, %cst_67 {dimension_numbers = #tpu.dot_dimension_numbers<[1], [0], [0], [1], [0, 0, 1, 1], [], []>} : vector<8x32xf32>, vector<32x128xf32>, vector<8x128xf32> -> vector<8x128xf32>
    %275 = arith.addf %251, %274 : vector<8x128xf32>
    %cst_68 = arith.constant 5.000000e-01 : f32
    %276 = vector.broadcast %cst_68 : f32 to vector<8x128xf32>
    %277 = arith.mulf %276, %275 : vector<8x128xf32>
    %278 = arith.select %19, %275, %277 : vector<8x128xi1>, vector<8x128xf32>
    %279 = math.tanh %278 : vector<8x128xf32>
    %cst_69 = arith.constant 5.000000e-01 : f32
    %280 = vector.broadcast %cst_69 : f32 to vector<8x128xf32>
    %281 = arith.mulf %280, %279 : vector<8x128xf32>
    %cst_70 = arith.constant 5.000000e-01 : f32
    %282 = vector.broadcast %cst_70 : f32 to vector<8x128xf32>
    %283 = arith.addf %281, %282 : vector<8x128xf32>
    %284 = arith.select %19, %279, %283 : vector<8x128xi1>, vector<8x128xf32>
    %285 = vector.extract_strided_slice %284 {offsets = [0, 0], sizes = [8, 32], strides = [1, 1]} : vector<8x128xf32> to vector<8x32xf32>
    %286 = vector.extract_strided_slice %284 {offsets = [0, 32], sizes = [8, 32], strides = [1, 1]} : vector<8x128xf32> to vector<8x32xf32>
    %287 = vector.extract_strided_slice %284 {offsets = [0, 64], sizes = [8, 32], strides = [1, 1]} : vector<8x128xf32> to vector<8x32xf32>
    %288 = vector.extract_strided_slice %284 {offsets = [0, 96], sizes = [8, 32], strides = [1, 1]} : vector<8x128xf32> to vector<8x32xf32>
    %289 = arith.mulf %286, %246 : vector<8x32xf32>
    %290 = arith.mulf %285, %287 : vector<8x32xf32>
    %291 = arith.addf %289, %290 : vector<8x32xf32>
    %292 = math.tanh %291 : vector<8x32xf32>
    %293 = arith.mulf %288, %292 : vector<8x32xf32>
    %cst_71 = arith.constant dense<0.000000e+00> : vector<8x128xf32>
    %294 = tpu.matmul %293, %12, %cst_71 {dimension_numbers = #tpu.dot_dimension_numbers<[1], [0], [0], [1], [0, 0, 1, 1], [], []>} : vector<8x32xf32>, vector<32x128xf32>, vector<8x128xf32> -> vector<8x128xf32>
    %295 = vector.broadcast %13 : vector<1x128xf32> to vector<8x128xf32>
    %296 = arith.addf %294, %295 : vector<8x128xf32>
    %297 = vector.extract_strided_slice %9 {offsets = [0, 6, 0], sizes = [8, 1, 128], strides = [1, 1, 1]} : vector<8x12x128xf32> to vector<8x1x128xf32>
    %298 = vector.shape_cast %297 : vector<8x1x128xf32> to vector<8x128xf32>
    %cst_72 = arith.constant dense<0.000000e+00> : vector<8x128xf32>
    %299 = tpu.matmul %273, %10, %cst_72 {dimension_numbers = #tpu.dot_dimension_numbers<[1], [0], [0], [1], [0, 0, 1, 1], [], []>} : vector<8x32xf32>, vector<32x128xf32>, vector<8x128xf32> -> vector<8x128xf32>
    %300 = arith.addf %298, %299 : vector<8x128xf32>
    %cst_73 = arith.constant 5.000000e-01 : f32
    %301 = vector.broadcast %cst_73 : f32 to vector<8x128xf32>
    %302 = arith.mulf %301, %300 : vector<8x128xf32>
    %303 = arith.select %19, %300, %302 : vector<8x128xi1>, vector<8x128xf32>
    %304 = math.tanh %303 : vector<8x128xf32>
    %cst_74 = arith.constant 5.000000e-01 : f32
    %305 = vector.broadcast %cst_74 : f32 to vector<8x128xf32>
    %306 = arith.mulf %305, %304 : vector<8x128xf32>
    %cst_75 = arith.constant 5.000000e-01 : f32
    %307 = vector.broadcast %cst_75 : f32 to vector<8x128xf32>
    %308 = arith.addf %306, %307 : vector<8x128xf32>
    %309 = arith.select %19, %304, %308 : vector<8x128xi1>, vector<8x128xf32>
    %310 = vector.extract_strided_slice %309 {offsets = [0, 0], sizes = [8, 32], strides = [1, 1]} : vector<8x128xf32> to vector<8x32xf32>
    %311 = vector.extract_strided_slice %309 {offsets = [0, 32], sizes = [8, 32], strides = [1, 1]} : vector<8x128xf32> to vector<8x32xf32>
    %312 = vector.extract_strided_slice %309 {offsets = [0, 64], sizes = [8, 32], strides = [1, 1]} : vector<8x128xf32> to vector<8x32xf32>
    %313 = vector.extract_strided_slice %309 {offsets = [0, 96], sizes = [8, 32], strides = [1, 1]} : vector<8x128xf32> to vector<8x32xf32>
    %314 = arith.mulf %311, %271 : vector<8x32xf32>
    %315 = arith.mulf %310, %312 : vector<8x32xf32>
    %316 = arith.addf %314, %315 : vector<8x32xf32>
    %317 = math.tanh %316 : vector<8x32xf32>
    %318 = arith.mulf %313, %317 : vector<8x32xf32>
    %cst_76 = arith.constant dense<0.000000e+00> : vector<8x128xf32>
    %319 = tpu.matmul %318, %11, %cst_76 {dimension_numbers = #tpu.dot_dimension_numbers<[1], [0], [0], [1], [0, 0, 1, 1], [], []>} : vector<8x32xf32>, vector<32x128xf32>, vector<8x128xf32> -> vector<8x128xf32>
    %320 = arith.addf %296, %319 : vector<8x128xf32>
    %cst_77 = arith.constant 5.000000e-01 : f32
    %321 = vector.broadcast %cst_77 : f32 to vector<8x128xf32>
    %322 = arith.mulf %321, %320 : vector<8x128xf32>
    %323 = arith.select %19, %320, %322 : vector<8x128xi1>, vector<8x128xf32>
    %324 = math.tanh %323 : vector<8x128xf32>
    %cst_78 = arith.constant 5.000000e-01 : f32
    %325 = vector.broadcast %cst_78 : f32 to vector<8x128xf32>
    %326 = arith.mulf %325, %324 : vector<8x128xf32>
    %cst_79 = arith.constant 5.000000e-01 : f32
    %327 = vector.broadcast %cst_79 : f32 to vector<8x128xf32>
    %328 = arith.addf %326, %327 : vector<8x128xf32>
    %329 = arith.select %19, %324, %328 : vector<8x128xi1>, vector<8x128xf32>
    %330 = vector.extract_strided_slice %329 {offsets = [0, 0], sizes = [8, 32], strides = [1, 1]} : vector<8x128xf32> to vector<8x32xf32>
    %331 = vector.extract_strided_slice %329 {offsets = [0, 32], sizes = [8, 32], strides = [1, 1]} : vector<8x128xf32> to vector<8x32xf32>
    %332 = vector.extract_strided_slice %329 {offsets = [0, 64], sizes = [8, 32], strides = [1, 1]} : vector<8x128xf32> to vector<8x32xf32>
    %333 = vector.extract_strided_slice %329 {offsets = [0, 96], sizes = [8, 32], strides = [1, 1]} : vector<8x128xf32> to vector<8x32xf32>
    %334 = arith.mulf %331, %291 : vector<8x32xf32>
    %335 = arith.mulf %330, %332 : vector<8x32xf32>
    %336 = arith.addf %334, %335 : vector<8x32xf32>
    %337 = math.tanh %336 : vector<8x32xf32>
    %338 = arith.mulf %333, %337 : vector<8x32xf32>
    %cst_80 = arith.constant dense<0.000000e+00> : vector<8x128xf32>
    %339 = tpu.matmul %338, %12, %cst_80 {dimension_numbers = #tpu.dot_dimension_numbers<[1], [0], [0], [1], [0, 0, 1, 1], [], []>} : vector<8x32xf32>, vector<32x128xf32>, vector<8x128xf32> -> vector<8x128xf32>
    %340 = vector.broadcast %13 : vector<1x128xf32> to vector<8x128xf32>
    %341 = arith.addf %339, %340 : vector<8x128xf32>
    %342 = vector.extract_strided_slice %9 {offsets = [0, 7, 0], sizes = [8, 1, 128], strides = [1, 1, 1]} : vector<8x12x128xf32> to vector<8x1x128xf32>
    %343 = vector.shape_cast %342 : vector<8x1x128xf32> to vector<8x128xf32>
    %cst_81 = arith.constant dense<0.000000e+00> : vector<8x128xf32>
    %344 = tpu.matmul %318, %10, %cst_81 {dimension_numbers = #tpu.dot_dimension_numbers<[1], [0], [0], [1], [0, 0, 1, 1], [], []>} : vector<8x32xf32>, vector<32x128xf32>, vector<8x128xf32> -> vector<8x128xf32>
    %345 = arith.addf %343, %344 : vector<8x128xf32>
    %cst_82 = arith.constant 5.000000e-01 : f32
    %346 = vector.broadcast %cst_82 : f32 to vector<8x128xf32>
    %347 = arith.mulf %346, %345 : vector<8x128xf32>
    %348 = arith.select %19, %345, %347 : vector<8x128xi1>, vector<8x128xf32>
    %349 = math.tanh %348 : vector<8x128xf32>
    %cst_83 = arith.constant 5.000000e-01 : f32
    %350 = vector.broadcast %cst_83 : f32 to vector<8x128xf32>
    %351 = arith.mulf %350, %349 : vector<8x128xf32>
    %cst_84 = arith.constant 5.000000e-01 : f32
    %352 = vector.broadcast %cst_84 : f32 to vector<8x128xf32>
    %353 = arith.addf %351, %352 : vector<8x128xf32>
    %354 = arith.select %19, %349, %353 : vector<8x128xi1>, vector<8x128xf32>
    %355 = vector.extract_strided_slice %354 {offsets = [0, 0], sizes = [8, 32], strides = [1, 1]} : vector<8x128xf32> to vector<8x32xf32>
    %356 = vector.extract_strided_slice %354 {offsets = [0, 32], sizes = [8, 32], strides = [1, 1]} : vector<8x128xf32> to vector<8x32xf32>
    %357 = vector.extract_strided_slice %354 {offsets = [0, 64], sizes = [8, 32], strides = [1, 1]} : vector<8x128xf32> to vector<8x32xf32>
    %358 = vector.extract_strided_slice %354 {offsets = [0, 96], sizes = [8, 32], strides = [1, 1]} : vector<8x128xf32> to vector<8x32xf32>
    %359 = arith.mulf %356, %316 : vector<8x32xf32>
    %360 = arith.mulf %355, %357 : vector<8x32xf32>
    %361 = arith.addf %359, %360 : vector<8x32xf32>
    %362 = math.tanh %361 : vector<8x32xf32>
    %363 = arith.mulf %358, %362 : vector<8x32xf32>
    %cst_85 = arith.constant dense<0.000000e+00> : vector<8x128xf32>
    %364 = tpu.matmul %363, %11, %cst_85 {dimension_numbers = #tpu.dot_dimension_numbers<[1], [0], [0], [1], [0, 0, 1, 1], [], []>} : vector<8x32xf32>, vector<32x128xf32>, vector<8x128xf32> -> vector<8x128xf32>
    %365 = arith.addf %341, %364 : vector<8x128xf32>
    %cst_86 = arith.constant 5.000000e-01 : f32
    %366 = vector.broadcast %cst_86 : f32 to vector<8x128xf32>
    %367 = arith.mulf %366, %365 : vector<8x128xf32>
    %368 = arith.select %19, %365, %367 : vector<8x128xi1>, vector<8x128xf32>
    %369 = math.tanh %368 : vector<8x128xf32>
    %cst_87 = arith.constant 5.000000e-01 : f32
    %370 = vector.broadcast %cst_87 : f32 to vector<8x128xf32>
    %371 = arith.mulf %370, %369 : vector<8x128xf32>
    %cst_88 = arith.constant 5.000000e-01 : f32
    %372 = vector.broadcast %cst_88 : f32 to vector<8x128xf32>
    %373 = arith.addf %371, %372 : vector<8x128xf32>
    %374 = arith.select %19, %369, %373 : vector<8x128xi1>, vector<8x128xf32>
    %375 = vector.extract_strided_slice %374 {offsets = [0, 0], sizes = [8, 32], strides = [1, 1]} : vector<8x128xf32> to vector<8x32xf32>
    %376 = vector.extract_strided_slice %374 {offsets = [0, 32], sizes = [8, 32], strides = [1, 1]} : vector<8x128xf32> to vector<8x32xf32>
    %377 = vector.extract_strided_slice %374 {offsets = [0, 64], sizes = [8, 32], strides = [1, 1]} : vector<8x128xf32> to vector<8x32xf32>
    %378 = vector.extract_strided_slice %374 {offsets = [0, 96], sizes = [8, 32], strides = [1, 1]} : vector<8x128xf32> to vector<8x32xf32>
    %379 = arith.mulf %376, %336 : vector<8x32xf32>
    %380 = arith.mulf %375, %377 : vector<8x32xf32>
    %381 = arith.addf %379, %380 : vector<8x32xf32>
    %382 = math.tanh %381 : vector<8x32xf32>
    %383 = arith.mulf %378, %382 : vector<8x32xf32>
    %cst_89 = arith.constant dense<0.000000e+00> : vector<8x128xf32>
    %384 = tpu.matmul %383, %12, %cst_89 {dimension_numbers = #tpu.dot_dimension_numbers<[1], [0], [0], [1], [0, 0, 1, 1], [], []>} : vector<8x32xf32>, vector<32x128xf32>, vector<8x128xf32> -> vector<8x128xf32>
    %385 = vector.broadcast %13 : vector<1x128xf32> to vector<8x128xf32>
    %386 = arith.addf %384, %385 : vector<8x128xf32>
    %387 = vector.extract_strided_slice %9 {offsets = [0, 8, 0], sizes = [8, 1, 128], strides = [1, 1, 1]} : vector<8x12x128xf32> to vector<8x1x128xf32>
    %388 = vector.shape_cast %387 : vector<8x1x128xf32> to vector<8x128xf32>
    %cst_90 = arith.constant dense<0.000000e+00> : vector<8x128xf32>
    %389 = tpu.matmul %363, %10, %cst_90 {dimension_numbers = #tpu.dot_dimension_numbers<[1], [0], [0], [1], [0, 0, 1, 1], [], []>} : vector<8x32xf32>, vector<32x128xf32>, vector<8x128xf32> -> vector<8x128xf32>
    %390 = arith.addf %388, %389 : vector<8x128xf32>
    %cst_91 = arith.constant 5.000000e-01 : f32
    %391 = vector.broadcast %cst_91 : f32 to vector<8x128xf32>
    %392 = arith.mulf %391, %390 : vector<8x128xf32>
    %393 = arith.select %19, %390, %392 : vector<8x128xi1>, vector<8x128xf32>
    %394 = math.tanh %393 : vector<8x128xf32>
    %cst_92 = arith.constant 5.000000e-01 : f32
    %395 = vector.broadcast %cst_92 : f32 to vector<8x128xf32>
    %396 = arith.mulf %395, %394 : vector<8x128xf32>
    %cst_93 = arith.constant 5.000000e-01 : f32
    %397 = vector.broadcast %cst_93 : f32 to vector<8x128xf32>
    %398 = arith.addf %396, %397 : vector<8x128xf32>
    %399 = arith.select %19, %394, %398 : vector<8x128xi1>, vector<8x128xf32>
    %400 = vector.extract_strided_slice %399 {offsets = [0, 0], sizes = [8, 32], strides = [1, 1]} : vector<8x128xf32> to vector<8x32xf32>
    %401 = vector.extract_strided_slice %399 {offsets = [0, 32], sizes = [8, 32], strides = [1, 1]} : vector<8x128xf32> to vector<8x32xf32>
    %402 = vector.extract_strided_slice %399 {offsets = [0, 64], sizes = [8, 32], strides = [1, 1]} : vector<8x128xf32> to vector<8x32xf32>
    %403 = vector.extract_strided_slice %399 {offsets = [0, 96], sizes = [8, 32], strides = [1, 1]} : vector<8x128xf32> to vector<8x32xf32>
    %404 = arith.mulf %401, %361 : vector<8x32xf32>
    %405 = arith.mulf %400, %402 : vector<8x32xf32>
    %406 = arith.addf %404, %405 : vector<8x32xf32>
    %407 = math.tanh %406 : vector<8x32xf32>
    %408 = arith.mulf %403, %407 : vector<8x32xf32>
    %cst_94 = arith.constant dense<0.000000e+00> : vector<8x128xf32>
    %409 = tpu.matmul %408, %11, %cst_94 {dimension_numbers = #tpu.dot_dimension_numbers<[1], [0], [0], [1], [0, 0, 1, 1], [], []>} : vector<8x32xf32>, vector<32x128xf32>, vector<8x128xf32> -> vector<8x128xf32>
    %410 = arith.addf %386, %409 : vector<8x128xf32>
    %cst_95 = arith.constant 5.000000e-01 : f32
    %411 = vector.broadcast %cst_95 : f32 to vector<8x128xf32>
    %412 = arith.mulf %411, %410 : vector<8x128xf32>
    %413 = arith.select %19, %410, %412 : vector<8x128xi1>, vector<8x128xf32>
    %414 = math.tanh %413 : vector<8x128xf32>
    %cst_96 = arith.constant 5.000000e-01 : f32
    %415 = vector.broadcast %cst_96 : f32 to vector<8x128xf32>
    %416 = arith.mulf %415, %414 : vector<8x128xf32>
    %cst_97 = arith.constant 5.000000e-01 : f32
    %417 = vector.broadcast %cst_97 : f32 to vector<8x128xf32>
    %418 = arith.addf %416, %417 : vector<8x128xf32>
    %419 = arith.select %19, %414, %418 : vector<8x128xi1>, vector<8x128xf32>
    %420 = vector.extract_strided_slice %419 {offsets = [0, 0], sizes = [8, 32], strides = [1, 1]} : vector<8x128xf32> to vector<8x32xf32>
    %421 = vector.extract_strided_slice %419 {offsets = [0, 32], sizes = [8, 32], strides = [1, 1]} : vector<8x128xf32> to vector<8x32xf32>
    %422 = vector.extract_strided_slice %419 {offsets = [0, 64], sizes = [8, 32], strides = [1, 1]} : vector<8x128xf32> to vector<8x32xf32>
    %423 = vector.extract_strided_slice %419 {offsets = [0, 96], sizes = [8, 32], strides = [1, 1]} : vector<8x128xf32> to vector<8x32xf32>
    %424 = arith.mulf %421, %381 : vector<8x32xf32>
    %425 = arith.mulf %420, %422 : vector<8x32xf32>
    %426 = arith.addf %424, %425 : vector<8x32xf32>
    %427 = math.tanh %426 : vector<8x32xf32>
    %428 = arith.mulf %423, %427 : vector<8x32xf32>
    %cst_98 = arith.constant dense<0.000000e+00> : vector<8x128xf32>
    %429 = tpu.matmul %428, %12, %cst_98 {dimension_numbers = #tpu.dot_dimension_numbers<[1], [0], [0], [1], [0, 0, 1, 1], [], []>} : vector<8x32xf32>, vector<32x128xf32>, vector<8x128xf32> -> vector<8x128xf32>
    %430 = vector.broadcast %13 : vector<1x128xf32> to vector<8x128xf32>
    %431 = arith.addf %429, %430 : vector<8x128xf32>
    %432 = vector.extract_strided_slice %9 {offsets = [0, 9, 0], sizes = [8, 1, 128], strides = [1, 1, 1]} : vector<8x12x128xf32> to vector<8x1x128xf32>
    %433 = vector.shape_cast %432 : vector<8x1x128xf32> to vector<8x128xf32>
    %cst_99 = arith.constant dense<0.000000e+00> : vector<8x128xf32>
    %434 = tpu.matmul %408, %10, %cst_99 {dimension_numbers = #tpu.dot_dimension_numbers<[1], [0], [0], [1], [0, 0, 1, 1], [], []>} : vector<8x32xf32>, vector<32x128xf32>, vector<8x128xf32> -> vector<8x128xf32>
    %435 = arith.addf %433, %434 : vector<8x128xf32>
    %cst_100 = arith.constant 5.000000e-01 : f32
    %436 = vector.broadcast %cst_100 : f32 to vector<8x128xf32>
    %437 = arith.mulf %436, %435 : vector<8x128xf32>
    %438 = arith.select %19, %435, %437 : vector<8x128xi1>, vector<8x128xf32>
    %439 = math.tanh %438 : vector<8x128xf32>
    %cst_101 = arith.constant 5.000000e-01 : f32
    %440 = vector.broadcast %cst_101 : f32 to vector<8x128xf32>
    %441 = arith.mulf %440, %439 : vector<8x128xf32>
    %cst_102 = arith.constant 5.000000e-01 : f32
    %442 = vector.broadcast %cst_102 : f32 to vector<8x128xf32>
    %443 = arith.addf %441, %442 : vector<8x128xf32>
    %444 = arith.select %19, %439, %443 : vector<8x128xi1>, vector<8x128xf32>
    %445 = vector.extract_strided_slice %444 {offsets = [0, 0], sizes = [8, 32], strides = [1, 1]} : vector<8x128xf32> to vector<8x32xf32>
    %446 = vector.extract_strided_slice %444 {offsets = [0, 32], sizes = [8, 32], strides = [1, 1]} : vector<8x128xf32> to vector<8x32xf32>
    %447 = vector.extract_strided_slice %444 {offsets = [0, 64], sizes = [8, 32], strides = [1, 1]} : vector<8x128xf32> to vector<8x32xf32>
    %448 = vector.extract_strided_slice %444 {offsets = [0, 96], sizes = [8, 32], strides = [1, 1]} : vector<8x128xf32> to vector<8x32xf32>
    %449 = arith.mulf %446, %406 : vector<8x32xf32>
    %450 = arith.mulf %445, %447 : vector<8x32xf32>
    %451 = arith.addf %449, %450 : vector<8x32xf32>
    %452 = math.tanh %451 : vector<8x32xf32>
    %453 = arith.mulf %448, %452 : vector<8x32xf32>
    %cst_103 = arith.constant dense<0.000000e+00> : vector<8x128xf32>
    %454 = tpu.matmul %453, %11, %cst_103 {dimension_numbers = #tpu.dot_dimension_numbers<[1], [0], [0], [1], [0, 0, 1, 1], [], []>} : vector<8x32xf32>, vector<32x128xf32>, vector<8x128xf32> -> vector<8x128xf32>
    %455 = arith.addf %431, %454 : vector<8x128xf32>
    %cst_104 = arith.constant 5.000000e-01 : f32
    %456 = vector.broadcast %cst_104 : f32 to vector<8x128xf32>
    %457 = arith.mulf %456, %455 : vector<8x128xf32>
    %458 = arith.select %19, %455, %457 : vector<8x128xi1>, vector<8x128xf32>
    %459 = math.tanh %458 : vector<8x128xf32>
    %cst_105 = arith.constant 5.000000e-01 : f32
    %460 = vector.broadcast %cst_105 : f32 to vector<8x128xf32>
    %461 = arith.mulf %460, %459 : vector<8x128xf32>
    %cst_106 = arith.constant 5.000000e-01 : f32
    %462 = vector.broadcast %cst_106 : f32 to vector<8x128xf32>
    %463 = arith.addf %461, %462 : vector<8x128xf32>
    %464 = arith.select %19, %459, %463 : vector<8x128xi1>, vector<8x128xf32>
    %465 = vector.extract_strided_slice %464 {offsets = [0, 0], sizes = [8, 32], strides = [1, 1]} : vector<8x128xf32> to vector<8x32xf32>
    %466 = vector.extract_strided_slice %464 {offsets = [0, 32], sizes = [8, 32], strides = [1, 1]} : vector<8x128xf32> to vector<8x32xf32>
    %467 = vector.extract_strided_slice %464 {offsets = [0, 64], sizes = [8, 32], strides = [1, 1]} : vector<8x128xf32> to vector<8x32xf32>
    %468 = vector.extract_strided_slice %464 {offsets = [0, 96], sizes = [8, 32], strides = [1, 1]} : vector<8x128xf32> to vector<8x32xf32>
    %469 = arith.mulf %466, %426 : vector<8x32xf32>
    %470 = arith.mulf %465, %467 : vector<8x32xf32>
    %471 = arith.addf %469, %470 : vector<8x32xf32>
    %472 = math.tanh %471 : vector<8x32xf32>
    %473 = arith.mulf %468, %472 : vector<8x32xf32>
    %cst_107 = arith.constant dense<0.000000e+00> : vector<8x128xf32>
    %474 = tpu.matmul %473, %12, %cst_107 {dimension_numbers = #tpu.dot_dimension_numbers<[1], [0], [0], [1], [0, 0, 1, 1], [], []>} : vector<8x32xf32>, vector<32x128xf32>, vector<8x128xf32> -> vector<8x128xf32>
    %475 = vector.broadcast %13 : vector<1x128xf32> to vector<8x128xf32>
    %476 = arith.addf %474, %475 : vector<8x128xf32>
    %477 = vector.extract_strided_slice %9 {offsets = [0, 10, 0], sizes = [8, 1, 128], strides = [1, 1, 1]} : vector<8x12x128xf32> to vector<8x1x128xf32>
    %478 = vector.shape_cast %477 : vector<8x1x128xf32> to vector<8x128xf32>
    %cst_108 = arith.constant dense<0.000000e+00> : vector<8x128xf32>
    %479 = tpu.matmul %453, %10, %cst_108 {dimension_numbers = #tpu.dot_dimension_numbers<[1], [0], [0], [1], [0, 0, 1, 1], [], []>} : vector<8x32xf32>, vector<32x128xf32>, vector<8x128xf32> -> vector<8x128xf32>
    %480 = arith.addf %478, %479 : vector<8x128xf32>
    %cst_109 = arith.constant 5.000000e-01 : f32
    %481 = vector.broadcast %cst_109 : f32 to vector<8x128xf32>
    %482 = arith.mulf %481, %480 : vector<8x128xf32>
    %483 = arith.select %19, %480, %482 : vector<8x128xi1>, vector<8x128xf32>
    %484 = math.tanh %483 : vector<8x128xf32>
    %cst_110 = arith.constant 5.000000e-01 : f32
    %485 = vector.broadcast %cst_110 : f32 to vector<8x128xf32>
    %486 = arith.mulf %485, %484 : vector<8x128xf32>
    %cst_111 = arith.constant 5.000000e-01 : f32
    %487 = vector.broadcast %cst_111 : f32 to vector<8x128xf32>
    %488 = arith.addf %486, %487 : vector<8x128xf32>
    %489 = arith.select %19, %484, %488 : vector<8x128xi1>, vector<8x128xf32>
    %490 = vector.extract_strided_slice %489 {offsets = [0, 0], sizes = [8, 32], strides = [1, 1]} : vector<8x128xf32> to vector<8x32xf32>
    %491 = vector.extract_strided_slice %489 {offsets = [0, 32], sizes = [8, 32], strides = [1, 1]} : vector<8x128xf32> to vector<8x32xf32>
    %492 = vector.extract_strided_slice %489 {offsets = [0, 64], sizes = [8, 32], strides = [1, 1]} : vector<8x128xf32> to vector<8x32xf32>
    %493 = vector.extract_strided_slice %489 {offsets = [0, 96], sizes = [8, 32], strides = [1, 1]} : vector<8x128xf32> to vector<8x32xf32>
    %494 = arith.mulf %491, %451 : vector<8x32xf32>
    %495 = arith.mulf %490, %492 : vector<8x32xf32>
    %496 = arith.addf %494, %495 : vector<8x32xf32>
    %497 = math.tanh %496 : vector<8x32xf32>
    %498 = arith.mulf %493, %497 : vector<8x32xf32>
    %cst_112 = arith.constant dense<0.000000e+00> : vector<8x128xf32>
    %499 = tpu.matmul %498, %11, %cst_112 {dimension_numbers = #tpu.dot_dimension_numbers<[1], [0], [0], [1], [0, 0, 1, 1], [], []>} : vector<8x32xf32>, vector<32x128xf32>, vector<8x128xf32> -> vector<8x128xf32>
    %500 = arith.addf %476, %499 : vector<8x128xf32>
    %cst_113 = arith.constant 5.000000e-01 : f32
    %501 = vector.broadcast %cst_113 : f32 to vector<8x128xf32>
    %502 = arith.mulf %501, %500 : vector<8x128xf32>
    %503 = arith.select %19, %500, %502 : vector<8x128xi1>, vector<8x128xf32>
    %504 = math.tanh %503 : vector<8x128xf32>
    %cst_114 = arith.constant 5.000000e-01 : f32
    %505 = vector.broadcast %cst_114 : f32 to vector<8x128xf32>
    %506 = arith.mulf %505, %504 : vector<8x128xf32>
    %cst_115 = arith.constant 5.000000e-01 : f32
    %507 = vector.broadcast %cst_115 : f32 to vector<8x128xf32>
    %508 = arith.addf %506, %507 : vector<8x128xf32>
    %509 = arith.select %19, %504, %508 : vector<8x128xi1>, vector<8x128xf32>
    %510 = vector.extract_strided_slice %509 {offsets = [0, 0], sizes = [8, 32], strides = [1, 1]} : vector<8x128xf32> to vector<8x32xf32>
    %511 = vector.extract_strided_slice %509 {offsets = [0, 32], sizes = [8, 32], strides = [1, 1]} : vector<8x128xf32> to vector<8x32xf32>
    %512 = vector.extract_strided_slice %509 {offsets = [0, 64], sizes = [8, 32], strides = [1, 1]} : vector<8x128xf32> to vector<8x32xf32>
    %513 = vector.extract_strided_slice %509 {offsets = [0, 96], sizes = [8, 32], strides = [1, 1]} : vector<8x128xf32> to vector<8x32xf32>
    %514 = arith.mulf %511, %471 : vector<8x32xf32>
    %515 = arith.mulf %510, %512 : vector<8x32xf32>
    %516 = arith.addf %514, %515 : vector<8x32xf32>
    %517 = math.tanh %516 : vector<8x32xf32>
    %518 = arith.mulf %513, %517 : vector<8x32xf32>
    %cst_116 = arith.constant dense<0.000000e+00> : vector<8x128xf32>
    %519 = tpu.matmul %518, %12, %cst_116 {dimension_numbers = #tpu.dot_dimension_numbers<[1], [0], [0], [1], [0, 0, 1, 1], [], []>} : vector<8x32xf32>, vector<32x128xf32>, vector<8x128xf32> -> vector<8x128xf32>
    %520 = vector.broadcast %13 : vector<1x128xf32> to vector<8x128xf32>
    %521 = arith.addf %519, %520 : vector<8x128xf32>
    %522 = vector.extract_strided_slice %9 {offsets = [0, 11, 0], sizes = [8, 1, 128], strides = [1, 1, 1]} : vector<8x12x128xf32> to vector<8x1x128xf32>
    %523 = vector.shape_cast %522 : vector<8x1x128xf32> to vector<8x128xf32>
    %cst_117 = arith.constant dense<0.000000e+00> : vector<8x128xf32>
    %524 = tpu.matmul %498, %10, %cst_117 {dimension_numbers = #tpu.dot_dimension_numbers<[1], [0], [0], [1], [0, 0, 1, 1], [], []>} : vector<8x32xf32>, vector<32x128xf32>, vector<8x128xf32> -> vector<8x128xf32>
    %525 = arith.addf %523, %524 : vector<8x128xf32>
    %cst_118 = arith.constant 5.000000e-01 : f32
    %526 = vector.broadcast %cst_118 : f32 to vector<8x128xf32>
    %527 = arith.mulf %526, %525 : vector<8x128xf32>
    %528 = arith.select %19, %525, %527 : vector<8x128xi1>, vector<8x128xf32>
    %529 = math.tanh %528 : vector<8x128xf32>
    %cst_119 = arith.constant 5.000000e-01 : f32
    %530 = vector.broadcast %cst_119 : f32 to vector<8x128xf32>
    %531 = arith.mulf %530, %529 : vector<8x128xf32>
    %cst_120 = arith.constant 5.000000e-01 : f32
    %532 = vector.broadcast %cst_120 : f32 to vector<8x128xf32>
    %533 = arith.addf %531, %532 : vector<8x128xf32>
    %534 = arith.select %19, %529, %533 : vector<8x128xi1>, vector<8x128xf32>
    %535 = vector.extract_strided_slice %534 {offsets = [0, 0], sizes = [8, 32], strides = [1, 1]} : vector<8x128xf32> to vector<8x32xf32>
    %536 = vector.extract_strided_slice %534 {offsets = [0, 32], sizes = [8, 32], strides = [1, 1]} : vector<8x128xf32> to vector<8x32xf32>
    %537 = vector.extract_strided_slice %534 {offsets = [0, 64], sizes = [8, 32], strides = [1, 1]} : vector<8x128xf32> to vector<8x32xf32>
    %538 = vector.extract_strided_slice %534 {offsets = [0, 96], sizes = [8, 32], strides = [1, 1]} : vector<8x128xf32> to vector<8x32xf32>
    %539 = arith.mulf %536, %496 : vector<8x32xf32>
    %540 = arith.mulf %535, %537 : vector<8x32xf32>
    %541 = arith.addf %539, %540 : vector<8x32xf32>
    %542 = math.tanh %541 : vector<8x32xf32>
    %543 = arith.mulf %538, %542 : vector<8x32xf32>
    %cst_121 = arith.constant dense<0.000000e+00> : vector<8x128xf32>
    %544 = tpu.matmul %543, %11, %cst_121 {dimension_numbers = #tpu.dot_dimension_numbers<[1], [0], [0], [1], [0, 0, 1, 1], [], []>} : vector<8x32xf32>, vector<32x128xf32>, vector<8x128xf32> -> vector<8x128xf32>
    %545 = arith.addf %521, %544 : vector<8x128xf32>
    %cst_122 = arith.constant 5.000000e-01 : f32
    %546 = vector.broadcast %cst_122 : f32 to vector<8x128xf32>
    %547 = arith.mulf %546, %545 : vector<8x128xf32>
    %548 = arith.select %19, %545, %547 : vector<8x128xi1>, vector<8x128xf32>
    %549 = math.tanh %548 : vector<8x128xf32>
    %cst_123 = arith.constant 5.000000e-01 : f32
    %550 = vector.broadcast %cst_123 : f32 to vector<8x128xf32>
    %551 = arith.mulf %550, %549 : vector<8x128xf32>
    %cst_124 = arith.constant 5.000000e-01 : f32
    %552 = vector.broadcast %cst_124 : f32 to vector<8x128xf32>
    %553 = arith.addf %551, %552 : vector<8x128xf32>
    %554 = arith.select %19, %549, %553 : vector<8x128xi1>, vector<8x128xf32>
    %555 = vector.extract_strided_slice %554 {offsets = [0, 0], sizes = [8, 32], strides = [1, 1]} : vector<8x128xf32> to vector<8x32xf32>
    %556 = vector.extract_strided_slice %554 {offsets = [0, 32], sizes = [8, 32], strides = [1, 1]} : vector<8x128xf32> to vector<8x32xf32>
    %557 = vector.extract_strided_slice %554 {offsets = [0, 64], sizes = [8, 32], strides = [1, 1]} : vector<8x128xf32> to vector<8x32xf32>
    %558 = vector.extract_strided_slice %554 {offsets = [0, 96], sizes = [8, 32], strides = [1, 1]} : vector<8x128xf32> to vector<8x32xf32>
    %559 = arith.mulf %556, %516 : vector<8x32xf32>
    %560 = arith.mulf %555, %557 : vector<8x32xf32>
    %561 = arith.addf %559, %560 : vector<8x32xf32>
    %562 = math.tanh %561 : vector<8x32xf32>
    %563 = arith.mulf %558, %562 : vector<8x32xf32>
    %c0_125 = arith.constant 0 : index
    %c0_126 = arith.constant 0 : index
    %564 = vector.load %arg8[%c0_125, %c0_126] : memref<1x32xf32, #tpu.memory_space<vmem>>, vector<1x32xf32>
    %565 = vector.broadcast %564 : vector<1x32xf32> to vector<8x32xf32>
    %566 = arith.mulf %563, %565 : vector<8x32xf32>
    %cst_127 = arith.constant dense<0.000000e+00> : vector<8xf32>
    %567 = vector.multi_reduction <add>, %566, %cst_127 [1] : vector<8x32xf32> to vector<8xf32>
    %568 = vector.shape_cast %567 : vector<8xf32> to vector<8x1xf32>
    %c0_128 = arith.constant 0 : index
    %c0_129 = arith.constant 0 : index
    %569 = vector.load %arg9[%c0_128, %c0_129] : memref<1x1xf32, #tpu.memory_space<vmem>>, vector<1x1xf32>
    %570 = vector.broadcast %569 : vector<1x1xf32> to vector<8x1xf32>
    %571 = arith.addf %568, %570 : vector<8x1xf32>
    %c0_130 = arith.constant 0 : index
    %c0_131 = arith.constant 0 : index
    %572 = vector.load %arg10[%c0_130, %c0_131] : memref<8x1xf32, #tpu.memory_space<vmem>>, vector<8x1xf32>
    tpu.vector_store %arg10[%c0_130, %c0_131], %571 {strides = array<i32>} : memref<8x1xf32, #tpu.memory_space<vmem>>, vector<8x1xf32>,
    return
  }
  func.func @transform_0(%arg0: i32) -> (i32, i32, i32) {
    %c0_i32 = arith.constant 0 : i32
    %c0_i32_0 = arith.constant 0 : i32
    %c0_i32_1 = arith.constant 0 : i32
    return %arg0, %c0_i32, %c0_i32_0 : i32, i32, i32
  }
  func.func @transform_1(%arg0: i32) -> (i32, i32) {
    %c0_i32 = arith.constant 0 : i32
    %c0_i32_0 = arith.constant 0 : i32
    %c0_i32_1 = arith.constant 0 : i32
    return %c0_i32, %c0_i32_0 : i32, i32
  }
  func.func @transform_2(%arg0: i32) -> (i32, i32) {
    %c0_i32 = arith.constant 0 : i32
    %c0_i32_0 = arith.constant 0 : i32
    %c0_i32_1 = arith.constant 0 : i32
    return %c0_i32, %c0_i32_0 : i32, i32
  }
  func.func @transform_3(%arg0: i32) -> (i32, i32) {
    %c0_i32 = arith.constant 0 : i32
    %c0_i32_0 = arith.constant 0 : i32
    %c0_i32_1 = arith.constant 0 : i32
    return %c0_i32, %c0_i32_0 : i32, i32
  }
  func.func @transform_4(%arg0: i32) -> (i32, i32) {
    %c0_i32 = arith.constant 0 : i32
    %c0_i32_0 = arith.constant 0 : i32
    %c0_i32_1 = arith.constant 0 : i32
    return %c0_i32, %c0_i32_0 : i32, i32
  }
  func.func @transform_5(%arg0: i32) -> (i32, i32) {
    %c0_i32 = arith.constant 0 : i32
    %c0_i32_0 = arith.constant 0 : i32
    %c0_i32_1 = arith.constant 0 : i32
    return %c0_i32, %c0_i32_0 : i32, i32
  }
  func.func @transform_6(%arg0: i32) -> (i32, i32) {
    %c0_i32 = arith.constant 0 : i32
    %c0_i32_0 = arith.constant 0 : i32
    %c0_i32_1 = arith.constant 0 : i32
    return %c0_i32, %c0_i32_0 : i32, i32
  }
  func.func @transform_7(%arg0: i32) -> (i32, i32) {
    %c0_i32 = arith.constant 0 : i32
    %c0_i32_0 = arith.constant 0 : i32
    %c0_i32_1 = arith.constant 0 : i32
    return %c0_i32, %c0_i32_0 : i32, i32
  }
  func.func @transform_8(%arg0: i32) -> (i32, i32) {
    %c0_i32 = arith.constant 0 : i32
    %c0_i32_0 = arith.constant 0 : i32
    %c0_i32_1 = arith.constant 0 : i32
    return %c0_i32, %c0_i32_0 : i32, i32
  }
  func.func @transform_9(%arg0: i32) -> (i32, i32) {
    %c0_i32 = arith.constant 0 : i32
    %c0_i32_0 = arith.constant 0 : i32
    return %arg0, %c0_i32 : i32, i32
  }
}

</mosaic_0001>

<bundles_post_ra>
// kernel: tpu_custom_call.1
= control target key start
LH: loop header
LB: loop body
LE: loop exit
PB: predicated region body
PF: predicated region fallthrough
CT: control target
= control target key end

     0   :  { %v5341_v0 = vmov 0.0|0.0   ;;  %vm5342_vm0 = vmmov 0   ;;  %v5343_v4 = vmov 0.0   ;;  %v5344_v7 = vmov 0   ;;  %s5345_s15 = smov 64   ;;  %s5346_s16 = smov 32   ;;  %s6379_s2 = inlined_call_operand.vmem [shape: f32[32,128], index: 2, kind: input, shape index: {}]   ;;  %s6380_s0 = inlined_call_operand.vmem [shape: f32[8,12,1], index: 0, kind: input, shape index: {}]   ;;  %s6381_s1 = inlined_call_operand.vmem [shape: f32[1,128], index: 1, kind: input, shape index: {}]   ;;  %s6382_s3 = inlined_call_operand.vmem [shape: f32[1,128], index: 3, kind: input, shape index: {}]   ;;  %s6383_s5 = inlined_call_operand.vmem [shape: f32[32,128], index: 5, kind: input, shape index: {}]   ;;  %s6384_s4 = inlined_call_operand.vmem [shape: f32[32,128], index: 4, kind: input, shape index: {}]   ;;  %s6385_s6 = inlined_call_operand.vmem [shape: f32[1,128], index: 6, kind: input, shape index: {}]   ;;  %s6386_s7 = inlined_call_operand.vmem [shape: f32[1,32], index: 7, kind: input, shape index: {}]   ;;  %s6387_s8 = inlined_call_operand.<no memory space> [shape: f32[1,1], index: 8, kind: input, shape index: {}]   ;;  %s6388_s9 = inlined_call_operand.vmem [shape: f32[8,1], index: 9, kind: output, shape index: {}]  }
   0x1   :  { %4986 = vmatprep.subr.bf16.mxu1 %v5341_v0  ;;  %v176_v1 = vld [vmem:[%s6379_s2] sm:$0xff]  ;;  %v177_v2 = vld [vmem:[%s6379_s2 + $0x8] sm:$0xff]  ;;  %v178_v3 = vld [vmem:[%s6379_s2 + $0x10] sm:$0xff]  ;;  %4603 = vmatprep.mubr.msk.f32.mxu1 %vm5342_vm0, %v5343_v4  ;;  %v189_v26 = vlaneseq  ;;  %vm385_vm1 = vcmask 1041409   ;;  %vm388_vm2 = vcmask 1042434   ;;  %vm391_vm3 = vcmask 1043459  }
   0x2   :  { %v5410_v5 = vpack.c.bf16 %v177_v2, %v176_v1  ;;  %v179_v6 = vld [vmem:[%s6379_s2 + $0x18] sm:$0xff]  ;;  %5239 = vset.pattern.permute.xlu0 %v5344_v7  ;;  %5240 = vset.pattern.permute.xlu1 %v5344_v7  ;;  %v36_v8 = vld [vmem:[%s6380_s0 + $0x10] sm:$0xff]  ;;  %v34_v9 = vld [vmem:[%s6380_s0] sm:$0xff]  ;;  %vm394_vm4 = vcmask 1044484   ;;  %vm397_vm5 = vcmask 1045509   ;;  %vm400_vm6 = vcmask 1046534  }
   0x3   :  { %63 = vperm.xlu0 %5239, %v36_v8   ;;  %53 = vperm.xlu1 %5240, %v34_v9   ;;  %v5422_v10 = vpack.c.bf16 %v179_v6, %v178_v3  ;;  %v38_v11 = vld [vmem:[%s6380_s0 + $0x20] sm:$0xff]  ;;  %v40_v12 = vld [vmem:[%s6380_s0 + $0x30] sm:$0xff]  ;;  %v5457_v36 = vand.u32 127, %v189_v26  ;;  %vm403_vm9 = vcmask 1047559   ;;  %vm200_vm11 = vcmask 261120   ;;  %s5347_s11 = smov 96  }
   0x4   :  { %4988 = vmatpush3.bf16.msra.mxu1 %v5410_v5  ;;  %4980 = vmatprep.subr.bf16.mxu0 %v5341_v0  ;;  %v42_v13 = vld [vmem:[%s6380_s0 + $0x40] sm:$0xff]  ;;  %v44_v14 = vld [vmem:[%s6380_s0 + $0x50] sm:$0xff]  ;;  %vm4359_vm12 = vcmask 7168  }
   0x5   :  { %4989 = vmatprep.subr.bf16.mxu1 %v5341_v0  ;;  %4592 = vmatprep.mubr.msk.f32.mxu0 %vm5342_vm0, %v5343_v4  ;;  %v46_v15 = vld [vmem:[%s6380_s0 + $0x60] sm:$0xff]  ;;  %v48_v16 = vld [vmem:[%s6380_s0 + $0x70] sm:$0xff]  ;;  %vm191_vm7 = vcmp.ge.s32.totalorder %v5457_v36, 64  ;;  %vm192_vm8 = vcmp.lt.s32.totalorder %v5457_v36, 96 }
   0x6   :  { %v4365_v23 = vld [vmem:[%s6381_s1] ss:$0 sm:$0xff]  ;;  %vm5499_vm10 = vmand %vm191_vm7, %vm192_vm8 }
   0x7   :  { %73 = vperm.xlu0 %5239, %v38_v11   ;;  %83 = vperm.xlu1 %5240, %v40_v12   ;;  %v4366_v31 = vld [vmem:[%s6382_s3] ss:$0 sm:$0xff] }
   0x8   :  { %4991 = vmatpush3.bf16.msra.mxu1 %v5422_v10 }
   0x9   :  { %4998 = vmatprep.subr.bf16.mxu1 %v5341_v0 }
   0xb   :  { %4604 = vmatmul.mubr.f32.vlgmr.msra.gmra.mrb[0].mxu1 %v5343_v4  ;;  %93 = vperm.xlu0 %5239, %v42_v13  }
   0xc   :  { %103 = vperm.xlu1 %5240, %v44_v14   ;;  %4625 = vmatprep.mubr.msk.f32.mxu1 %vm5342_vm0, %v5343_v4 }
   0xf   :  { %113 = vperm.xlu0 %5239, %v46_v15  }
  0x10   :  { %123 = vperm.xlu1 %5240, %v48_v16  }
  0x82   :  { %v64_v17 = vpop.permute.xlu0 %63  ;;  %v54_v18 = vpop.permute.xlu1 %53 }
  0x83   :  { %v139_v27 = vmul.f32 %v4365_v23, %v64_v17  ;;  %v137_v28 = vmul.f32 %v4365_v23, %v54_v18 }
  0x85   :  { %v5459_v37 = vadd.f32 %v4366_v31, %v139_v27  ;;  %v5461_v38 = vadd.f32 %v4366_v31, %v137_v28 }
  0x86   :  { %v74_v19 = vpop.permute.xlu0 %73  ;;  %v84_v20 = vpop.permute.xlu1 %83 }
  0x87   :  { %v141_v29 = vmul.f32 %v4365_v23, %v74_v19  ;;  %v143_v30 = vmul.f32 %v4365_v23, %v84_v20 }
  0x89   :  { %v5463_v39 = vadd.f32 %v4366_v31, %v141_v29  ;;  %v5465_v40 = vadd.f32 %v4366_v31, %v143_v30 }
  0x8a   :  { %v94_v21 = vpop.permute.xlu0 %93 }
  0x8b   :  { %v104_v22 = vpop.permute.xlu1 %103  ;;  %v145_v32 = vmul.f32 %v4365_v23, %v94_v21 }
  0x8c   :  { %v147_v33 = vmul.f32 %v4365_v23, %v104_v22 }
  0x8d   :  { %v5467_v41 = vadd.f32 %v4366_v31, %v145_v32 }
  0x8e   :  { %v114_v24 = vpop.permute.xlu0 %113  ;;  %v5469_v42 = vadd.f32 %v4366_v31, %v147_v33 }
  0x8f   :  { %v124_v25 = vpop.permute.xlu1 %123  ;;  %v149_v34 = vmul.f32 %v4365_v23, %v114_v24 }
  0x90   :  { %v151_v35 = vmul.f32 %v4365_v23, %v124_v25 }
  0x91   :  { %v5471_v43 = vadd.f32 %v4366_v31, %v149_v34  ;;  %v14_v34 = vstv %s6387_s8 }
  0x92   :  { %v5473_v44 = vadd.f32 %v4366_v31, %v151_v35  ;;  %15 = vst [vmem:[#allocation2] sm:$0x1] %v14_v34 }
  0xde   :  { %v340_v45 = vpop.f32.mrb[0].mxu1 }
  0xdf   :  { %v345_v46 = vrot.slane %v340_v45, 1  ;;  %v346_v47 = vrot.slane %v340_v45, 2  ;;  %v347_v48 = vrot.slane %v340_v45, 3  ;;  %v348_v49 = vrot.slane %v340_v45, 4  ;;  %v4605_v50 = vpop.f32.mrb[1].mxu1 }
  0xe0   :  { %v349_v51 = vrot.slane %v340_v45, 5  ;;  %v350_v52 = vrot.slane %v340_v45, 6  ;;  %v351_v53 = vrot.slane %v340_v45, 7  ;;  %v360_v54 = vadd.f32 %v340_v45, %v5461_v38 }
  0xe1   :  { %v361_v55 = vadd.f32 %v345_v46, %v5459_v37  ;;  %v362_v56 = vadd.f32 %v346_v47, %v5463_v39  ;;  %v363_v57 = vadd.f32 %v347_v48, %v5465_v40  ;;  %v364_v58 = vadd.f32 %v348_v49, %v5467_v41 }
  0xe2   :  { %v365_v59 = vadd.f32 %v349_v51, %v5469_v42  ;;  %v366_v60 = vadd.f32 %v350_v52, %v5471_v43  ;;  %v367_v61 = vadd.f32 %v351_v53, %v5473_v44  ;;  %v368_v3 = vmul.f32 0.5, %v360_v54 }
  0xe3   :  { %v369_v62 = vmul.f32 0.5, %v361_v55  ;;  %v370_v63 = vmul.f32 0.5, %v362_v56  ;;  %v371_v1 = vmul.f32 0.5, %v363_v57  ;;  %v384_v2 = vrot.slane %v361_v55, 7 }
  0xe4   :  { %v372_v6 = vmul.f32 0.5, %v364_v58  ;;  %v373_v7 = vmul.f32 0.5, %v365_v59  ;;  %v387_v8 = vrot.slane %v362_v56, 6  ;;  %v374_v9 = vmul.f32 0.5, %v366_v60 }
  0xe5   :  { %v386_v11 = vsel %vm385_vm1, %v384_v2, %v360_v54  ;;  %v390_v12 = vrot.slane %v363_v57, 5  ;;  %v414_v13 = vrot.slane %v369_v62, 7  ;;  %v375_v14 = vmul.f32 0.5, %v367_v61  ;;  %v184_v57 = vld [vmem:[%s6383_s5] sm:$0xff] }
  0xe6   :  { %v389_v15 = vsel %vm388_vm2, %v387_v8, %v386_v11  ;;  %v393_v16 = vrot.slane %v364_v58, 4  ;;  %v416_v17 = vrot.slane %v370_v63, 6  ;;  %v396_v19 = vrot.slane %v365_v59, 3  ;;  %v185_v58 = vld [vmem:[%s6383_s5 + $0x8] sm:$0xff]  ;;  %v186_v59 = vld [vmem:[%s6383_s5 + $0x10] sm:$0xff]  ;;  %v180_v63 = vld [vmem:[%s6384_s4] sm:$0xff] }
  0xe7   :  { %v392_v18 = vsel %vm391_vm3, %v390_v12, %v389_v15  ;;  %v415_v20 = vsel %vm385_vm1, %v414_v13, %v368_v3  ;;  %v418_v21 = vrot.slane %v371_v1, 5  ;;  %v399_v23 = vrot.slane %v366_v60, 2  ;;  %v181_v1 = vld [vmem:[%s6384_s4 + $0x8] sm:$0xff]  ;;  %v182_v3 = vld [vmem:[%s6384_s4 + $0x10] sm:$0xff]  ;;  %v5582_v13 = vld [vmem:[%s6385_s6] ss:$0 sm:$0xff] }
  0xe8   :  { %v395_v22 = vsel %vm394_vm4, %v393_v16, %v392_v18  ;;  %v417_v24 = vsel %vm388_vm2, %v416_v17, %v415_v20  ;;  %v420_v25 = vrot.slane %v372_v6, 4  ;;  %v422_v27 = vrot.slane %v373_v7, 3  ;;  %v183_v6 = vld [vmem:[%s6384_s4 + $0x18] sm:$0xff] }
  0xe9   :  { %v419_v26 = vsel %vm391_vm3, %v418_v21, %v417_v24  ;;  %v398_v28 = vsel %vm397_vm5, %v396_v19, %v395_v22  ;;  %v424_v29 = vrot.slane %v374_v9, 2  ;;  %v402_v32 = vrot.slane %v367_v61, 1  ;;  %v187_v61 = vld [vmem:[%s6383_s5 + $0x18] sm:$0xff] }
  0xea   :  { %v401_v30 = vsel %vm400_vm6, %v399_v23, %v398_v28  ;;  %v421_v31 = vsel %vm394_vm4, %v420_v25, %v419_v26  ;;  %v426_v33 = vrot.slane %v375_v14, 1  ;;  %v5525_v60 = vpack.c.bf16 %v185_v58, %v184_v57 }
  0xeb   :  { %v423_v35 = vsel %vm397_vm5, %v422_v27, %v421_v31  ;;  %v404_v46 = vsel %vm403_vm9, %v402_v32, %v401_v30  ;;  %v5531_v62 = vpack.c.bf16 %v187_v61, %v186_v59  ;;  %v5543_v2 = vpack.c.bf16 %v181_v1, %v180_v63 }
  0xec   :  { %v425_v45 = vsel %vm400_vm6, %v424_v29, %v423_v35  ;;  %4982 = vmatpush3.bf16.msra.mxu0 %v5525_v60  ;;  %5000 = vmatpush3.bf16.msra.mxu1 %v5525_v60  ;;  %v5557_v8 = vpack.c.bf16 %v183_v6, %v182_v3 }
  0xed   :  { %v427_v47 = vsel %vm403_vm9, %v426_v33, %v425_v45  ;;  %4983 = vmatprep.subr.bf16.mxu0 %v5341_v0  ;;  %5001 = vmatprep.subr.bf16.mxu1 %v5341_v0 }
  0xee   :  { %v429_v48 = vsel %vm5499_vm10, %v404_v46, %v427_v47 }
  0xef   :  { %5241 = vtanh.f32 %v429_v48 }
  0xf0   :  { %4985 = vmatpush3.bf16.msra.mxu0 %v5531_v62  ;;  %5003 = vmatpush3.bf16.msra.mxu1 %v5531_v62 }
  0xf1   :  { %4992 = vmatprep.subr.bf16.mxu0 %v5341_v0  ;;  %5010 = vmatprep.subr.bf16.mxu1 %v5341_v0 }
  0xf3   :  { %4593 = vmatmul.mubr.f32.vlgmr.msra.gmra.mrb[0].mxu0 %v5343_v4 }
  0xf4   :  { %4994 = vmatpush3.bf16.msra.mxu0 %v5543_v2  ;;  %4614 = vmatprep.mubr.msk.f32.mxu0 %vm5342_vm0, %v5343_v4 }
  0xf5   :  { %4995 = vmatprep.subr.bf16.mxu0 %v5341_v0 }
  0xf8   :  { %4997 = vmatpush3.bf16.msra.mxu0 %v5557_v8 }
  0xf9   :  { %v5242_v49 = vpop.eup %5241  ;;  %5004 = vmatprep.subr.bf16.mxu0 %v5341_v0 }
  0xfa   :  { %v431_v50 = vmul.f32 0.5, %v5242_v49 }
  0xfc   :  { %v432_v51 = vadd.f32 0.5, %v431_v50 }
  0xfe   :  { %v433_v36 = vsel %vm5499_vm10, %v5242_v49, %v432_v51 }
  0xff   :  { %436 = vrot.lane.b32.xlu0 %v433_v36, %s5345_s15  ;;  %v434_v54 = vmul.f32 0.0, %v433_v36 }
 0x171   :  { %v437_v52 = vpop.permute.xlu0 %436 }
 0x172   :  { %v439_v53 = vmul.f32 %v437_v52, %v433_v36 }
 0x174   :  { %441 = vrot.lane.b32.xlu1 %v439_v53, %s5346_s16 }
 0x1e6   :  { %v442_v55 = vpop.permute.xlu1 %441 }
 0x1e7   :  { %v5513_v56 = vadd.f32 %v442_v55, %v434_v54 }
 0x1e9   :  { %5243 = vtanh.f32 %v5513_v56 }
 0x1f3   :  { %v5244_v7 = vpop.eup %5243 }
 0x1f4   :  { %447 = vrot.lane.b32.xlu0 %v5244_v7, %s5345_s15 }
 0x266   :  { %v448_v9 = vpop.permute.xlu0 %447 }
 0x267   :  { %v450_v11 = vmul.f32 %v448_v9, %v433_v36 }
 0x269   :  { %452 = vrot.lane.b32.xlu1 %v450_v11, %s5346_s16 }
 0x2db   :  { %v453_v12 = vpop.permute.xlu1 %452 }
 0x2dc   :  { %4615 = vmatmul.mubr.msk.f32.vlgmr.msra.gmra.mrb[0].mxu0 %vm200_vm11, %v453_v12 }
 0x2dd   :  { %5006 = vmatpush3.bf16.msra.mxu0 %v5410_v5  ;;  %4636 = vmatprep.mubr.msk.f32.mxu0 %vm5342_vm0, %v5343_v4 }
 0x2de   :  { %5007 = vmatprep.subr.bf16.mxu0 %v5341_v0 }
 0x2e1   :  { %5009 = vmatpush3.bf16.msra.mxu0 %v5422_v10 }
 0x2e2   :  { %5016 = vmatprep.subr.bf16.mxu0 %v5341_v0 }
 0x2e4   :  { %4637 = vmatmul.mubr.msk.f32.vlgmr.msra.gmra.mrb[2].mxu0 %vm200_vm11, %v453_v12 }
 0x2e5   :  { %5018 = vmatpush3.bf16.msra.mxu0 %v5525_v60  ;;  %4658 = vmatprep.mubr.msk.f32.mxu0 %vm5342_vm0, %v5343_v4 }
 0x2e6   :  { %5019 = vmatprep.subr.bf16.mxu0 %v5341_v0 }
 0x2e9   :  { %5021 = vmatpush3.bf16.msra.mxu0 %v5531_v62 }
 0x2ea   :  { %5028 = vmatprep.subr.bf16.mxu0 %v5341_v0 }
 0x3af   :  { %v522_v14 = vpop.f32.mrb[0].mxu0 }
 0x3b0   :  { %v5196_v15 = vadd.f32 %v5582_v13, %v522_v14  ;;  %v4616_v16 = vpop.f32.mrb[1].mxu0 }
 0x3b2   :  { %v527_v17 = vmul.f32 0.5, %v5196_v15 }
 0x3b4   :  { %v528_v18 = vsel %vm5499_vm10, %v5196_v15, %v527_v17 }
 0x3b5   :  { %5245 = vtanh.f32 %v528_v18 }
 0x3b7   :  { %v691_v19 = vpop.f32.mrb[2].mxu0 }
 0x3b8   :  { %v696_v20 = vrot.slane %v691_v19, 7  ;;  %v697_v21 = vrot.slane %v691_v19, 1  ;;  %v698_v22 = vrot.slane %v691_v19, 2  ;;  %v699_v23 = vrot.slane %v691_v19, 3  ;;  %v4638_v24 = vpop.f32.mrb[3].mxu0 }
 0x3b9   :  { %v700_v25 = vrot.slane %v691_v19, 4  ;;  %v701_v26 = vrot.slane %v691_v19, 5  ;;  %v702_v27 = vrot.slane %v691_v19, 6  ;;  %v712_v28 = vadd.f32 %v691_v19, %v5459_v37 }
 0x3ba   :  { %v711_v29 = vadd.f32 %v696_v20, %v5461_v38  ;;  %v713_v30 = vadd.f32 %v697_v21, %v5463_v39  ;;  %v714_v31 = vadd.f32 %v698_v22, %v5465_v40  ;;  %v715_v32 = vadd.f32 %v699_v23, %v5467_v41 }
 0x3bb   :  { %v716_v33 = vadd.f32 %v700_v25, %v5469_v42  ;;  %v717_v35 = vadd.f32 %v701_v26, %v5471_v43  ;;  %v718_v45 = vadd.f32 %v702_v27, %v5473_v44  ;;  %v720_v48 = vmul.f32 0.5, %v712_v28 }
 0x3bc   :  { %v719_v46 = vmul.f32 0.5, %v711_v29  ;;  %v721_v47 = vmul.f32 0.5, %v713_v30  ;;  %v722_v49 = vmul.f32 0.5, %v714_v31  ;;  %v735_v50 = vrot.slane %v711_v29, 1 }
 0x3bd   :  { %v723_v51 = vmul.f32 0.5, %v715_v32  ;;  %v724_v36 = vmul.f32 0.5, %v716_v33  ;;  %v725_v52 = vmul.f32 0.5, %v717_v35  ;;  %v737_v53 = vrot.slane %v713_v30, 7 }
 0x3be   :  { %v726_v55 = vmul.f32 0.5, %v718_v45  ;;  %v736_v57 = vsel %vm385_vm1, %v712_v28, %v735_v50  ;;  %v739_v58 = vrot.slane %v714_v31, 6  ;;  %v758_v59 = vrot.slane %v719_v46, 1 }
 0x3bf   :  { %v5246_v54 = vpop.eup %5245  ;;  %v738_v61 = vsel %vm388_vm2, %v737_v53, %v736_v57  ;;  %v741_v63 = vrot.slane %v715_v32, 5  ;;  %v743_v1 = vrot.slane %v716_v33, 4  ;;  %v760_v3 = vrot.slane %v721_v47, 7 }
 0x3c0   :  { %v740_v6 = vsel %vm391_vm3, %v739_v58, %v738_v61  ;;  %v745_v7 = vrot.slane %v717_v35, 3  ;;  %v759_v9 = vsel %vm385_vm1, %v720_v48, %v758_v59  ;;  %v762_v11 = vrot.slane %v722_v49, 6 }
 0x3c1   :  { %v742_v12 = vsel %vm394_vm4, %v741_v63, %v740_v6  ;;  %v761_v14 = vsel %vm388_vm2, %v760_v3, %v759_v9  ;;  %v764_v15 = vrot.slane %v723_v51, 5  ;;  %v530_v16 = vmul.f32 0.5, %v5246_v54 }
 0x3c2   :  { %v763_v17 = vsel %vm391_vm3, %v762_v11, %v761_v14  ;;  %v766_v18 = vrot.slane %v724_v36, 4  ;;  %v744_v19 = vsel %vm397_vm5, %v743_v1, %v742_v12  ;;  %v768_v20 = vrot.slane %v725_v52, 3 }
 0x3c3   :  { %v531_v21 = vadd.f32 0.5, %v530_v16  ;;  %v746_v22 = vsel %vm400_vm6, %v745_v7, %v744_v19  ;;  %v765_v23 = vsel %vm394_vm4, %v764_v15, %v763_v17  ;;  %v747_v24 = vrot.slane %v718_v45, 2 }
 0x3c4   :  { %v770_v25 = vrot.slane %v726_v55, 2  ;;  %v767_v26 = vsel %vm397_vm5, %v766_v18, %v765_v23 }
 0x3c5   :  { %v532_v27 = vsel %vm5499_vm10, %v5246_v54, %v531_v21  ;;  %v769_v28 = vsel %vm400_vm6, %v768_v20, %v767_v26  ;;  %v748_v29 = vsel %vm403_vm9, %v747_v24, %v746_v22 }
 0x3c6   :  { %535 = vrot.lane.b32.xlu0 %v532_v27, %s5345_s15  ;;  %v771_v30 = vsel %vm403_vm9, %v770_v25, %v769_v28  ;;  %v533_v50 = vmul.f32 0.0, %v532_v27 }
 0x3c7   :  { %v773_v31 = vsel %vm5499_vm10, %v748_v29, %v771_v30 }
 0x3c8   :  { %5247 = vtanh.f32 %v773_v31 }
 0x3d2   :  { %v5248_v32 = vpop.eup %5247 }
 0x3d3   :  { %v775_v33 = vmul.f32 0.5, %v5248_v32 }
 0x3d5   :  { %v776_v35 = vadd.f32 0.5, %v775_v33 }
 0x3d7   :  { %v777_v45 = vsel %vm5499_vm10, %v5248_v32, %v776_v35 }
 0x3d8   :  { %780 = vrot.lane.b32.xlu1 %v777_v45, %s5345_s15  ;;  %v778_v53 = vmul.f32 %v777_v45, %v5513_v56 }
 0x438   :  { %v536_v46 = vpop.permute.xlu0 %535 }
 0x439   :  { %v538_v47 = vmul.f32 %v536_v46, %v532_v27 }
 0x43b   :  { %540 = vrot.lane.b32.xlu0 %v538_v47, %s5346_s16 }
 0x44a   :  { %v781_v48 = vpop.permute.xlu1 %780 }
 0x44b   :  { %v783_v49 = vmul.f32 %v781_v48, %v777_v45 }
 0x44d   :  { %785 = vrot.lane.b32.xlu1 %v783_v49, %s5346_s16 }
 0x4ad   :  { %v541_v51 = vpop.permute.xlu0 %540 }
 0x4ae   :  { %v5619_v36 = vadd.f32 %v541_v51, %v533_v50 }
 0x4b0   :  { %5249 = vtanh.f32 %v5619_v36 }
 0x4ba   :  { %v5250_v52 = vpop.eup %5249 }
 0x4bb   :  { %546 = vrot.lane.b32.xlu0 %v5250_v52, %s5345_s15 }
 0x4bf   :  { %v786_v54 = vpop.permute.xlu1 %785 }
 0x4c0   :  { %v5624_v55 = vadd.f32 %v786_v54, %v778_v53 }
 0x4c2   :  { %5251 = vtanh.f32 %v5624_v55 }
 0x4cc   :  { %v5252_v57 = vpop.eup %5251 }
 0x4cd   :  { %791 = vrot.lane.b32.xlu1 %v5252_v57, %s5345_s15 }
 0x52d   :  { %v547_v58 = vpop.permute.xlu0 %546 }
 0x52e   :  { %v549_v59 = vmul.f32 %v547_v58, %v532_v27 }
 0x530   :  { %551 = vrot.lane.b32.xlu0 %v549_v59, %s5346_s16 }
 0x53f   :  { %v792_v61 = vpop.permute.xlu1 %791 }
 0x540   :  { %v794_v63 = vmul.f32 %v792_v61, %v777_v45 }
 0x542   :  { %796 = vrot.lane.b32.xlu1 %v794_v63, %s5346_s16 }
 0x5a2   :  { %v552_v1 = vpop.permute.xlu0 %551 }
 0x5a3   :  { %4626 = vmatmul.mubr.msk.f32.vlgmr.msra.gmra.mrb[2].mxu1 %vm200_vm11, %v552_v1 }
 0x5a4   :  { %5012 = vmatpush3.bf16.msra.mxu1 %v5543_v2  ;;  %4647 = vmatprep.mubr.msk.f32.mxu1 %vm5342_vm0, %v5343_v4 }
 0x5a5   :  { %5013 = vmatprep.subr.bf16.mxu1 %v5341_v0 }
 0x5a8   :  { %5015 = vmatpush3.bf16.msra.mxu1 %v5557_v8 }
 0x5a9   :  { %5022 = vmatprep.subr.bf16.mxu1 %v5341_v0 }
 0x5b4   :  { %v797_v56 = vpop.permute.xlu1 %796 }
 0x5b5   :  { %4648 = vmatmul.mubr.msk.f32.vlgmr.msra.gmra.mrb[2].mxu1 %vm200_vm11, %v797_v56 }
 0x5b6   :  { %5024 = vmatpush3.bf16.msra.mxu1 %v5410_v5  ;;  %4669 = vmatprep.mubr.msk.f32.mxu1 %vm5342_vm0, %v5343_v4 }
 0x5b7   :  { %5025 = vmatprep.subr.bf16.mxu1 %v5341_v0 }
 0x5ba   :  { %5027 = vmatpush3.bf16.msra.mxu1 %v5422_v10 }
 0x5bb   :  { %5034 = vmatprep.subr.bf16.mxu1 %v5341_v0 }
 0x5bd   :  { %4670 = vmatmul.mubr.msk.f32.vlgmr.msra.gmra.mrb[4].mxu1 %vm200_vm11, %v797_v56 }
 0x5be   :  { %5036 = vmatpush3.bf16.msra.mxu1 %v5525_v60  ;;  %4691 = vmatprep.mubr.msk.f32.mxu1 %vm5342_vm0, %v5343_v4 }
 0x5bf   :  { %5037 = vmatprep.subr.bf16.mxu1 %v5341_v0 }
 0x5c2   :  { %5039 = vmatpush3.bf16.msra.mxu1 %v5531_v62 }
 0x5c3   :  { %5046 = vmatprep.subr.bf16.mxu1 %v5341_v0 }
 0x688   :  { %v866_v3 = vpop.f32.mrb[2].mxu1 }
 0x689   :  { %v5197_v6 = vadd.f32 %v5582_v13, %v866_v3  ;;  %v4649_v7 = vpop.f32.mrb[3].mxu1 }
 0x68b   :  { %v871_v9 = vmul.f32 0.5, %v5197_v6 }
 0x68d   :  { %v872_v11 = vsel %vm5499_vm10, %v5197_v6, %v871_v9 }
 0x68e   :  { %5253 = vtanh.f32 %v872_v11 }
 0x690   :  { %v1035_v12 = vpop.f32.mrb[4].mxu1 }
 0x691   :  { %v1040_v14 = vrot.slane %v1035_v12, 6  ;;  %v1041_v15 = vrot.slane %v1035_v12, 7  ;;  %v1042_v16 = vrot.slane %v1035_v12, 1  ;;  %v1043_v17 = vrot.slane %v1035_v12, 2  ;;  %v4671_v18 = vpop.f32.mrb[5].mxu1 }
 0x692   :  { %v1044_v19 = vrot.slane %v1035_v12, 3  ;;  %v1045_v20 = vrot.slane %v1035_v12, 4  ;;  %v1046_v21 = vrot.slane %v1035_v12, 5  ;;  %v1057_v22 = vadd.f32 %v1035_v12, %v5463_v39 }
 0x693   :  { %v1055_v23 = vadd.f32 %v1040_v14, %v5461_v38  ;;  %v1056_v24 = vadd.f32 %v1041_v15, %v5459_v37  ;;  %v1058_v25 = vadd.f32 %v1042_v16, %v5465_v40  ;;  %v1059_v26 = vadd.f32 %v1043_v17, %v5467_v41 }
 0x694   :  { %v1060_v27 = vadd.f32 %v1044_v19, %v5469_v42  ;;  %v1061_v28 = vadd.f32 %v1045_v20, %v5471_v43  ;;  %v1062_v29 = vadd.f32 %v1046_v21, %v5473_v44  ;;  %v1065_v35 = vmul.f32 0.5, %v1057_v22 }
 0x695   :  { %v1063_v30 = vmul.f32 0.5, %v1055_v23  ;;  %v1064_v31 = vmul.f32 0.5, %v1056_v24  ;;  %v1066_v32 = vmul.f32 0.5, %v1058_v25  ;;  %v1079_v33 = vrot.slane %v1055_v23, 2 }
 0x696   :  { %v1067_v45 = vmul.f32 0.5, %v1059_v26  ;;  %v1080_v46 = vrot.slane %v1056_v24, 1  ;;  %v1068_v48 = vmul.f32 0.5, %v1060_v27  ;;  %v1069_v49 = vmul.f32 0.5, %v1061_v28 }
 0x697   :  { %v1102_v50 = vrot.slane %v1063_v30, 2  ;;  %v1103_v51 = vrot.slane %v1064_v31, 1  ;;  %v1070_v52 = vmul.f32 0.5, %v1062_v29  ;;  %v1083_v54 = vrot.slane %v1058_v25, 7 }
 0x698   :  { %v5254_v47 = vpop.eup %5253  ;;  %v1081_v53 = vsel %vm385_vm1, %v1080_v46, %v1079_v33  ;;  %v1085_v57 = vrot.slane %v1059_v26, 6  ;;  %v1087_v59 = vrot.slane %v1060_v27, 5  ;;  %v1106_v63 = vrot.slane %v1066_v32, 7 }
 0x699   :  { %v1082_v58 = vsel %vm388_vm2, %v1057_v22, %v1081_v53  ;;  %v1104_v61 = vsel %vm385_vm1, %v1103_v51, %v1102_v50  ;;  %v1108_v3 = vrot.slane %v1067_v45, 6  ;;  %v874_v6 = vmul.f32 0.5, %v5254_v47 }
 0x69a   :  { %v1084_v1 = vsel %vm391_vm3, %v1083_v54, %v1082_v58  ;;  %v1105_v56 = vsel %vm388_vm2, %v1065_v35, %v1104_v61  ;;  %v1089_v9 = vrot.slane %v1061_v28, 4  ;;  %v1110_v12 = vrot.slane %v1068_v48, 5 }
 0x69b   :  { %v1086_v7 = vsel %vm394_vm4, %v1085_v57, %v1084_v1  ;;  %v1107_v11 = vsel %vm391_vm3, %v1106_v63, %v1105_v56  ;;  %v1112_v14 = vrot.slane %v1069_v49, 4  ;;  %v875_v15 = vadd.f32 0.5, %v874_v6 }
 0x69c   :  { %v1088_v16 = vsel %vm397_vm5, %v1087_v59, %v1086_v7  ;;  %v1109_v17 = vsel %vm394_vm4, %v1108_v3, %v1107_v11  ;;  %v1091_v18 = vrot.slane %v1062_v29, 3  ;;  %v1114_v19 = vrot.slane %v1070_v52, 3 }
 0x69d   :  { %v1090_v20 = vsel %vm400_vm6, %v1089_v9, %v1088_v16  ;;  %v1111_v21 = vsel %vm397_vm5, %v1110_v12, %v1109_v17  ;;  %v876_v22 = vsel %vm5499_vm10, %v5254_v47, %v875_v15 }
 0x69e   :  { %v1113_v23 = vsel %vm400_vm6, %v1112_v14, %v1111_v21  ;;  %879 = vrot.lane.b32.xlu0 %v876_v22, %s5345_s15  ;;  %v1092_v24 = vsel %vm403_vm9, %v1091_v18, %v1090_v20  ;;  %v877_v45 = vmul.f32 %v876_v22, %v5619_v36 }
 0x69f   :  { %v1115_v25 = vsel %vm403_vm9, %v1114_v19, %v1113_v23 }
 0x6a0   :  { %v1117_v26 = vsel %vm5499_vm10, %v1092_v24, %v1115_v25 }
 0x6a1   :  { %5255 = vtanh.f32 %v1117_v26 }
 0x6ab   :  { %v5256_v27 = vpop.eup %5255 }
 0x6ac   :  { %v1119_v28 = vmul.f32 0.5, %v5256_v27 }
 0x6ae   :  { %v1120_v29 = vadd.f32 0.5, %v1119_v28 }
 0x6b0   :  { %v1121_v30 = vsel %vm5499_vm10, %v5256_v27, %v1120_v29 }
 0x6b1   :  { %1124 = vrot.lane.b32.xlu1 %v1121_v30, %s5345_s15  ;;  %v1122_v49 = vmul.f32 %v1121_v30, %v5624_v55 }
 0x710   :  { %v880_v31 = vpop.permute.xlu0 %879 }
 0x711   :  { %v882_v32 = vmul.f32 %v880_v31, %v876_v22 }
 0x713   :  { %884 = vrot.lane.b32.xlu0 %v882_v32, %s5346_s16 }
 0x723   :  { %v1125_v33 = vpop.permute.xlu1 %1124 }
 0x724   :  { %v1127_v35 = vmul.f32 %v1125_v33, %v1121_v30 }
 0x726   :  { %1129 = vrot.lane.b32.xlu1 %v1127_v35, %s5346_s16 }
 0x785   :  { %v885_v46 = vpop.permute.xlu0 %884 }
 0x786   :  { %v5687_v47 = vadd.f32 %v885_v46, %v877_v45 }
 0x788   :  { %5257 = vtanh.f32 %v5687_v47 }
 0x792   :  { %v5258_v48 = vpop.eup %5257 }
 0x793   :  { %890 = vrot.lane.b32.xlu0 %v5258_v48, %s5345_s15 }
 0x798   :  { %v1130_v50 = vpop.permute.xlu1 %1129 }
 0x799   :  { %v5692_v51 = vadd.f32 %v1130_v50, %v1122_v49 }
 0x79b   :  { %5259 = vtanh.f32 %v5692_v51 }
 0x7a5   :  { %v5260_v52 = vpop.eup %5259 }
 0x7a6   :  { %1135 = vrot.lane.b32.xlu1 %v5260_v52, %s5345_s15 }
 0x805   :  { %v891_v53 = vpop.permute.xlu0 %890 }
 0x806   :  { %v893_v36 = vmul.f32 %v891_v53, %v876_v22 }
 0x808   :  { %895 = vrot.lane.b32.xlu0 %v893_v36, %s5346_s16 }
 0x818   :  { %v1136_v54 = vpop.permute.xlu1 %1135 }
 0x819   :  { %v1138_v57 = vmul.f32 %v1136_v54, %v1121_v30 }
 0x81b   :  { %1140 = vrot.lane.b32.xlu1 %v1138_v57, %s5346_s16 }
 0x87a   :  { %v896_v58 = vpop.permute.xlu0 %895 }
 0x87b   :  { %4659 = vmatmul.mubr.msk.f32.vlgmr.msra.gmra.mrb[4].mxu0 %vm200_vm11, %v896_v58 }
 0x87c   :  { %5030 = vmatpush3.bf16.msra.mxu0 %v5543_v2  ;;  %4680 = vmatprep.mubr.msk.f32.mxu0 %vm5342_vm0, %v5343_v4 }
 0x87d   :  { %5031 = vmatprep.subr.bf16.mxu0 %v5341_v0 }
 0x880   :  { %5033 = vmatpush3.bf16.msra.mxu0 %v5557_v8 }
 0x881   :  { %5040 = vmatprep.subr.bf16.mxu0 %v5341_v0 }
 0x88d   :  { %v1141_v55 = vpop.permute.xlu1 %1140 }
 0x88e   :  { %4681 = vmatmul.mubr.msk.f32.vlgmr.msra.gmra.mrb[4].mxu0 %vm200_vm11, %v1141_v55 }
 0x88f   :  { %5042 = vmatpush3.bf16.msra.mxu0 %v5410_v5  ;;  %4702 = vmatprep.mubr.msk.f32.mxu0 %vm5342_vm0, %v5343_v4 }
 0x890   :  { %5043 = vmatprep.subr.bf16.mxu0 %v5341_v0 }
 0x893   :  { %5045 = vmatpush3.bf16.msra.mxu0 %v5422_v10 }
 0x894   :  { %5052 = vmatprep.subr.bf16.mxu0 %v5341_v0 }
 0x896   :  { %4703 = vmatmul.mubr.msk.f32.vlgmr.msra.gmra.mrb[6].mxu0 %vm200_vm11, %v1141_v55 }
 0x897   :  { %5054 = vmatpush3.bf16.msra.mxu0 %v5525_v60  ;;  %4724 = vmatprep.mubr.msk.f32.mxu0 %vm5342_vm0, %v5343_v4 }
 0x898   :  { %5055 = vmatprep.subr.bf16.mxu0 %v5341_v0 }
 0x89b   :  { %5057 = vmatpush3.bf16.msra.mxu0 %v5531_v62 }
 0x89c   :  { %5064 = vmatprep.subr.bf16.mxu0 %v5341_v0 }
 0x961   :  { %v1210_v59 = vpop.f32.mrb[4].mxu0 }
 0x962   :  { %v5198_v61 = vadd.f32 %v5582_v13, %v1210_v59  ;;  %v4682_v63 = vpop.f32.mrb[5].mxu0 }
 0x964   :  { %v1215_v1 = vmul.f32 0.5, %v5198_v61 }
 0x966   :  { %v1216_v56 = vsel %vm5499_vm10, %v5198_v61, %v1215_v1 }
 0x967   :  { %5261 = vtanh.f32 %v1216_v56 }
 0x969   :  { %v1379_v3 = vpop.f32.mrb[6].mxu0 }
 0x96a   :  { %v1384_v6 = vrot.slane %v1379_v3, 5  ;;  %v1385_v7 = vrot.slane %v1379_v3, 6  ;;  %v1386_v9 = vrot.slane %v1379_v3, 7  ;;  %v1387_v11 = vrot.slane %v1379_v3, 1  ;;  %v4704_v12 = vpop.f32.mrb[7].mxu0 }
 0x96b   :  { %v1388_v14 = vrot.slane %v1379_v3, 2  ;;  %v1389_v15 = vrot.slane %v1379_v3, 3  ;;  %v1390_v16 = vrot.slane %v1379_v3, 4  ;;  %v1402_v21 = vadd.f32 %v1379_v3, %v5465_v40 }
 0x96c   :  { %v1399_v17 = vadd.f32 %v1384_v6, %v5461_v38  ;;  %v1400_v18 = vadd.f32 %v1385_v7, %v5459_v37  ;;  %v1401_v19 = vadd.f32 %v1386_v9, %v5463_v39  ;;  %v1403_v20 = vadd.f32 %v1387_v11, %v5467_v41 }
 0x96d   :  { %v1404_v22 = vadd.f32 %v1388_v14, %v5469_v42  ;;  %v1405_v23 = vadd.f32 %v1389_v15, %v5471_v43  ;;  %v1406_v24 = vadd.f32 %v1390_v16, %v5473_v44  ;;  %v1410_v33 = vmul.f32 0.5, %v1402_v21 }
 0x96e   :  { %v1407_v25 = vmul.f32 0.5, %v1399_v17  ;;  %v1408_v26 = vmul.f32 0.5, %v1400_v18  ;;  %v1409_v27 = vmul.f32 0.5, %v1401_v19  ;;  %v1423_v28 = vrot.slane %v1399_v17, 3 }
 0x96f   :  { %v1411_v29 = vmul.f32 0.5, %v1403_v20  ;;  %v1424_v30 = vrot.slane %v1400_v18, 2  ;;  %v1426_v31 = vrot.slane %v1401_v19, 1  ;;  %v1412_v35 = vmul.f32 0.5, %v1404_v22 }
 0x970   :  { %v1446_v45 = vrot.slane %v1407_v25, 3  ;;  %v1447_v46 = vrot.slane %v1408_v26, 2  ;;  %v1413_v48 = vmul.f32 0.5, %v1405_v23  ;;  %v1414_v49 = vmul.f32 0.5, %v1406_v24 }
 0x971   :  { %v5262_v32 = vpop.eup %5261  ;;  %v1425_v50 = vsel %vm385_vm1, %v1424_v30, %v1423_v28  ;;  %v1449_v52 = vrot.slane %v1409_v27, 1  ;;  %v1429_v36 = vrot.slane %v1403_v20, 7  ;;  %v1431_v54 = vrot.slane %v1404_v22, 6 }
 0x972   :  { %v1427_v53 = vsel %vm388_vm2, %v1426_v31, %v1425_v50  ;;  %v1448_v57 = vsel %vm385_vm1, %v1447_v46, %v1446_v45  ;;  %v1452_v59 = vrot.slane %v1411_v29, 7  ;;  %v1218_v61 = vmul.f32 0.5, %v5262_v32 }
 0x973   :  { %v1428_v58 = vsel %vm391_vm3, %v1402_v21, %v1427_v53  ;;  %v1450_v55 = vsel %vm388_vm2, %v1449_v52, %v1448_v57  ;;  %v1433_v1 = vrot.slane %v1405_v23, 5  ;;  %v1454_v3 = vrot.slane %v1412_v35, 6 }
 0x974   :  { %v1430_v63 = vsel %vm394_vm4, %v1429_v36, %v1428_v58  ;;  %v1451_v56 = vsel %vm391_vm3, %v1410_v33, %v1450_v55  ;;  %v1456_v7 = vrot.slane %v1413_v48, 5  ;;  %v1219_v9 = vadd.f32 0.5, %v1218_v61 }
 0x975   :  { %v1453_v6 = vsel %vm394_vm4, %v1452_v59, %v1451_v56  ;;  %v1432_v11 = vsel %vm397_vm5, %v1431_v54, %v1430_v63  ;;  %v1435_v12 = vrot.slane %v1406_v24, 4  ;;  %v1458_v14 = vrot.slane %v1414_v49, 4 }
 0x976   :  { %v1434_v15 = vsel %vm400_vm6, %v1433_v1, %v1432_v11  ;;  %v1455_v16 = vsel %vm397_vm5, %v1454_v3, %v1453_v6  ;;  %v1220_v17 = vsel %vm5499_vm10, %v5262_v32, %v1219_v9 }
 0x977   :  { %v1457_v18 = vsel %vm400_vm6, %v1456_v7, %v1455_v16  ;;  %1223 = vrot.lane.b32.xlu0 %v1220_v17, %s5345_s15  ;;  %v1436_v19 = vsel %vm403_vm9, %v1435_v12, %v1434_v15  ;;  %v1221_v30 = vmul.f32 %v1220_v17, %v5687_v47 }
 0x978   :  { %v1459_v20 = vsel %vm403_vm9, %v1458_v14, %v1457_v18 }
 0x979   :  { %v1461_v21 = vsel %vm5499_vm10, %v1436_v19, %v1459_v20 }
 0x97a   :  { %5263 = vtanh.f32 %v1461_v21 }
 0x984   :  { %v5264_v22 = vpop.eup %5263 }
 0x985   :  { %v1463_v23 = vmul.f32 0.5, %v5264_v22 }
 0x987   :  { %v1464_v24 = vadd.f32 0.5, %v1463_v23 }
 0x989   :  { %v1465_v25 = vsel %vm5499_vm10, %v5264_v22, %v1464_v24 }
 0x98a   :  { %1468 = vrot.lane.b32.xlu1 %v1465_v25, %s5345_s15  ;;  %v1466_v35 = vmul.f32 %v1465_v25, %v5692_v51 }
 0x9e9   :  { %v1224_v26 = vpop.permute.xlu0 %1223 }
 0x9ea   :  { %v1226_v27 = vmul.f32 %v1224_v26, %v1220_v17 }
 0x9ec   :  { %1228 = vrot.lane.b32.xlu0 %v1226_v27, %s5346_s16 }
 0x9fc   :  { %v1469_v28 = vpop.permute.xlu1 %1468 }
 0x9fd   :  { %v1471_v29 = vmul.f32 %v1469_v28, %v1465_v25 }
 0x9ff   :  { %1473 = vrot.lane.b32.xlu1 %v1471_v29, %s5346_s16 }
 0xa5e   :  { %v1229_v31 = vpop.permute.xlu0 %1228 }
 0xa5f   :  { %v5755_v32 = vadd.f32 %v1229_v31, %v1221_v30 }
 0xa61   :  { %5265 = vtanh.f32 %v5755_v32 }
 0xa6b   :  { %v5266_v33 = vpop.eup %5265 }
 0xa6c   :  { %1234 = vrot.lane.b32.xlu0 %v5266_v33, %s5345_s15 }
 0xa71   :  { %v1474_v45 = vpop.permute.xlu1 %1473 }
 0xa72   :  { %v5760_v46 = vadd.f32 %v1474_v45, %v1466_v35 }
 0xa74   :  { %5267 = vtanh.f32 %v5760_v46 }
 0xa7e   :  { %v5268_v48 = vpop.eup %5267 }
 0xa7f   :  { %1479 = vrot.lane.b32.xlu1 %v5268_v48, %s5345_s15 }
 0xade   :  { %v1235_v49 = vpop.permute.xlu0 %1234 }
 0xadf   :  { %v1237_v47 = vmul.f32 %v1235_v49, %v1220_v17 }
 0xae1   :  { %1239 = vrot.lane.b32.xlu0 %v1237_v47, %s5346_s16 }
 0xaf1   :  { %v1480_v50 = vpop.permute.xlu1 %1479 }
 0xaf2   :  { %v1482_v52 = vmul.f32 %v1480_v50, %v1465_v25 }
 0xaf4   :  { %1484 = vrot.lane.b32.xlu1 %v1482_v52, %s5346_s16 }
 0xb53   :  { %v1240_v53 = vpop.permute.xlu0 %1239 }
 0xb54   :  { %4692 = vmatmul.mubr.msk.f32.vlgmr.msra.gmra.mrb[6].mxu1 %vm200_vm11, %v1240_v53 }
 0xb55   :  { %5048 = vmatpush3.bf16.msra.mxu1 %v5543_v2  ;;  %4713 = vmatprep.mubr.msk.f32.mxu1 %vm5342_vm0, %v5343_v4 }
 0xb56   :  { %5049 = vmatprep.subr.bf16.mxu1 %v5341_v0 }
 0xb59   :  { %5051 = vmatpush3.bf16.msra.mxu1 %v5557_v8 }
 0xb5a   :  { %5058 = vmatprep.subr.bf16.mxu1 %v5341_v0 }
 0xb66   :  { %v1485_v51 = vpop.permute.xlu1 %1484 }
 0xb67   :  { %4714 = vmatmul.mubr.msk.f32.vlgmr.msra.gmra.mrb[6].mxu1 %vm200_vm11, %v1485_v51 }
 0xb68   :  { %5060 = vmatpush3.bf16.msra.mxu1 %v5410_v5  ;;  %4735 = vmatprep.mubr.msk.f32.mxu1 %vm5342_vm0, %v5343_v4 }
 0xb69   :  { %5061 = vmatprep.subr.bf16.mxu1 %v5341_v0 }
 0xb6c   :  { %5063 = vmatpush3.bf16.msra.mxu1 %v5422_v10 }
 0xb6d   :  { %5070 = vmatprep.subr.bf16.mxu1 %v5341_v0 }
 0xb6f   :  { %4736 = vmatmul.mubr.msk.f32.vlgmr.msra.gmra.mrb[8].mxu1 %vm200_vm11, %v1485_v51 }
 0xb70   :  { %5072 = vmatpush3.bf16.msra.mxu1 %v5525_v60  ;;  %4757 = vmatprep.mubr.msk.f32.mxu1 %vm5342_vm0, %v5343_v4 }
 0xb71   :  { %5073 = vmatprep.subr.bf16.mxu1 %v5341_v0 }
 0xb74   :  { %5075 = vmatpush3.bf16.msra.mxu1 %v5531_v62 }
 0xb75   :  { %5082 = vmatprep.subr.bf16.mxu1 %v5341_v0 }
 0xc3a   :  { %v1554_v36 = vpop.f32.mrb[6].mxu1 }
 0xc3b   :  { %v5199_v54 = vadd.f32 %v5582_v13, %v1554_v36  ;;  %v4715_v57 = vpop.f32.mrb[7].mxu1 }
 0xc3d   :  { %v1559_v58 = vmul.f32 0.5, %v5199_v54 }
 0xc3f   :  { %v1560_v55 = vsel %vm5499_vm10, %v5199_v54, %v1559_v58 }
 0xc40   :  { %5269 = vtanh.f32 %v1560_v55 }
 0xc42   :  { %v1723_v59 = vpop.f32.mrb[8].mxu1 }
 0xc43   :  { %v1728_v61 = vrot.slane %v1723_v59, 4  ;;  %v1729_v63 = vrot.slane %v1723_v59, 5  ;;  %v1730_v1 = vrot.slane %v1723_v59, 6  ;;  %v1731_v56 = vrot.slane %v1723_v59, 7  ;;  %v4737_v3 = vpop.f32.mrb[9].mxu1 }
 0xc44   :  { %v1732_v6 = vrot.slane %v1723_v59, 1  ;;  %v1733_v7 = vrot.slane %v1723_v59, 2  ;;  %v1734_v9 = vrot.slane %v1723_v59, 3  ;;  %v1747_v16 = vadd.f32 %v1723_v59, %v5467_v41 }
 0xc45   :  { %v1743_v11 = vadd.f32 %v1728_v61, %v5461_v38  ;;  %v1744_v12 = vadd.f32 %v1729_v63, %v5459_v37  ;;  %v1745_v14 = vadd.f32 %v1730_v1, %v5463_v39  ;;  %v1746_v15 = vadd.f32 %v1731_v56, %v5465_v40 }
 0xc46   :  { %v1748_v17 = vadd.f32 %v1732_v6, %v5469_v42  ;;  %v1749_v18 = vadd.f32 %v1733_v7, %v5471_v43  ;;  %v1750_v22 = vadd.f32 %v1734_v9, %v5473_v44  ;;  %v1755_v28 = vmul.f32 0.5, %v1747_v16 }
 0xc47   :  { %v1751_v19 = vmul.f32 0.5, %v1743_v11  ;;  %v1752_v20 = vmul.f32 0.5, %v1744_v12  ;;  %v1753_v21 = vmul.f32 0.5, %v1745_v14  ;;  %v1754_v23 = vmul.f32 0.5, %v1746_v15 }
 0xc48   :  { %v1767_v24 = vrot.slane %v1743_v11, 4  ;;  %v1768_v25 = vrot.slane %v1744_v12, 3  ;;  %v1770_v26 = vrot.slane %v1745_v14, 2  ;;  %v1756_v29 = vmul.f32 0.5, %v1748_v17 }
 0xc49   :  { %v1790_v30 = vrot.slane %v1751_v19, 4  ;;  %v1791_v31 = vrot.slane %v1752_v20, 3  ;;  %v1757_v33 = vmul.f32 0.5, %v1749_v18  ;;  %v1772_v45 = vrot.slane %v1746_v15, 1 }
 0xc4a   :  { %v5270_v27 = vpop.eup %5269  ;;  %v1769_v35 = vsel %vm385_vm1, %v1768_v25, %v1767_v24  ;;  %v1793_v48 = vrot.slane %v1753_v21, 2  ;;  %v1758_v49 = vmul.f32 0.5, %v1750_v22  ;;  %v1795_v52 = vrot.slane %v1754_v23, 1 }
 0xc4b   :  { %v1771_v47 = vsel %vm388_vm2, %v1770_v26, %v1769_v35  ;;  %v1792_v50 = vsel %vm385_vm1, %v1791_v31, %v1790_v30  ;;  %v1775_v51 = vrot.slane %v1748_v17, 7  ;;  %v1562_v54 = vmul.f32 0.5, %v5270_v27 }
 0xc4c   :  { %v1773_v53 = vsel %vm391_vm3, %v1772_v45, %v1771_v47  ;;  %v1794_v36 = vsel %vm388_vm2, %v1793_v48, %v1792_v50  ;;  %v1777_v58 = vrot.slane %v1749_v18, 6  ;;  %v1798_v59 = vrot.slane %v1756_v29, 7 }
 0xc4d   :  { %v1774_v57 = vsel %vm394_vm4, %v1747_v16, %v1773_v53  ;;  %v1796_v55 = vsel %vm391_vm3, %v1795_v52, %v1794_v36  ;;  %v1800_v63 = vrot.slane %v1757_v33, 6  ;;  %v1563_v1 = vadd.f32 0.5, %v1562_v54 }
 0xc4e   :  { %v1797_v61 = vsel %vm394_vm4, %v1755_v28, %v1796_v55  ;;  %v1776_v56 = vsel %vm397_vm5, %v1775_v51, %v1774_v57  ;;  %v1779_v3 = vrot.slane %v1750_v22, 5  ;;  %v1802_v6 = vrot.slane %v1758_v49, 5 }
 0xc4f   :  { %v1778_v7 = vsel %vm400_vm6, %v1777_v58, %v1776_v56  ;;  %v1799_v9 = vsel %vm397_vm5, %v1798_v59, %v1797_v61  ;;  %v1564_v11 = vsel %vm5499_vm10, %v5270_v27, %v1563_v1 }
 0xc50   :  { %v1801_v12 = vsel %vm400_vm6, %v1800_v63, %v1799_v9  ;;  %1567 = vrot.lane.b32.xlu0 %v1564_v11, %s5345_s15  ;;  %v1780_v14 = vsel %vm403_vm9, %v1779_v3, %v1778_v7  ;;  %v1565_v25 = vmul.f32 %v1564_v11, %v5755_v32 }
 0xc51   :  { %v1803_v15 = vsel %vm403_vm9, %v1802_v6, %v1801_v12 }
 0xc52   :  { %v1805_v16 = vsel %vm5499_vm10, %v1780_v14, %v1803_v15 }
 0xc53   :  { %5271 = vtanh.f32 %v1805_v16 }
 0xc5d   :  { %v5272_v17 = vpop.eup %5271 }
 0xc5e   :  { %v1807_v18 = vmul.f32 0.5, %v5272_v17 }
 0xc60   :  { %v1808_v19 = vadd.f32 0.5, %v1807_v18 }
 0xc62   :  { %v1809_v20 = vsel %vm5499_vm10, %v5272_v17, %v1808_v19 }
 0xc63   :  { %1812 = vrot.lane.b32.xlu1 %v1809_v20, %s5345_s15  ;;  %v1810_v29 = vmul.f32 %v1809_v20, %v5760_v46 }
 0xcc2   :  { %v1568_v21 = vpop.permute.xlu0 %1567 }
 0xcc3   :  { %v1570_v22 = vmul.f32 %v1568_v21, %v1564_v11 }
 0xcc5   :  { %1572 = vrot.lane.b32.xlu0 %v1570_v22, %s5346_s16 }
 0xcd5   :  { %v1813_v23 = vpop.permute.xlu1 %1812 }
 0xcd6   :  { %v1815_v24 = vmul.f32 %v1813_v23, %v1809_v20 }
 0xcd8   :  { %1817 = vrot.lane.b32.xlu1 %v1815_v24, %s5346_s16 }
 0xd37   :  { %v1573_v26 = vpop.permute.xlu0 %1572 }
 0xd38   :  { %v5823_v27 = vadd.f32 %v1573_v26, %v1565_v25 }
 0xd3a   :  { %5273 = vtanh.f32 %v5823_v27 }
 0xd44   :  { %v5274_v28 = vpop.eup %5273 }
 0xd45   :  { %1578 = vrot.lane.b32.xlu0 %v5274_v28, %s5345_s15 }
 0xd4a   :  { %v1818_v30 = vpop.permute.xlu1 %1817 }
 0xd4b   :  { %v5828_v31 = vadd.f32 %v1818_v30, %v1810_v29 }
 0xd4d   :  { %5275 = vtanh.f32 %v5828_v31 }
 0xd57   :  { %v5276_v33 = vpop.eup %5275 }
 0xd58   :  { %1823 = vrot.lane.b32.xlu1 %v5276_v33, %s5345_s15 }
 0xdb7   :  { %v1579_v35 = vpop.permute.xlu0 %1578 }
 0xdb8   :  { %v1581_v32 = vmul.f32 %v1579_v35, %v1564_v11 }
 0xdba   :  { %1583 = vrot.lane.b32.xlu0 %v1581_v32, %s5346_s16 }
 0xdca   :  { %v1824_v45 = vpop.permute.xlu1 %1823 }
 0xdcb   :  { %v1826_v48 = vmul.f32 %v1824_v45, %v1809_v20 }
 0xdcd   :  { %1828 = vrot.lane.b32.xlu1 %v1826_v48, %s5346_s16 }
 0xe2c   :  { %v1584_v49 = vpop.permute.xlu0 %1583 }
 0xe2d   :  { %4725 = vmatmul.mubr.msk.f32.vlgmr.msra.gmra.mrb[8].mxu0 %vm200_vm11, %v1584_v49 }
 0xe2e   :  { %5066 = vmatpush3.bf16.msra.mxu0 %v5543_v2  ;;  %4746 = vmatprep.mubr.msk.f32.mxu0 %vm5342_vm0, %v5343_v4 }
 0xe2f   :  { %5067 = vmatprep.subr.bf16.mxu0 %v5341_v0 }
 0xe32   :  { %5069 = vmatpush3.bf16.msra.mxu0 %v5557_v8 }
 0xe33   :  { %5076 = vmatprep.subr.bf16.mxu0 %v5341_v0 }
 0xe3f   :  { %v1829_v46 = vpop.permute.xlu1 %1828 }
 0xe40   :  { %4747 = vmatmul.mubr.msk.f32.vlgmr.msra.gmra.mrb[8].mxu0 %vm200_vm11, %v1829_v46 }
 0xe41   :  { %5078 = vmatpush3.bf16.msra.mxu0 %v5410_v5  ;;  %4768 = vmatprep.mubr.msk.f32.mxu0 %vm5342_vm0, %v5343_v4 }
 0xe42   :  { %5079 = vmatprep.subr.bf16.mxu0 %v5341_v0 }
 0xe45   :  { %5081 = vmatpush3.bf16.msra.mxu0 %v5422_v10 }
 0xe46   :  { %5088 = vmatprep.subr.bf16.mxu0 %v5341_v0 }
 0xe48   :  { %4769 = vmatmul.mubr.msk.f32.vlgmr.msra.gmra.mrb[10].mxu0 %vm200_vm11, %v1829_v46 }
 0xe49   :  { %5090 = vmatpush3.bf16.msra.mxu0 %v5525_v60  ;;  %4790 = vmatprep.mubr.msk.f32.mxu0 %vm5342_vm0, %v5343_v4 }
 0xe4a   :  { %5091 = vmatprep.subr.bf16.mxu0 %v5341_v0 }
 0xe4d   :  { %5093 = vmatpush3.bf16.msra.mxu0 %v5531_v62 }
 0xe4e   :  { %5100 = vmatprep.subr.bf16.mxu0 %v5341_v0 }
 0xf13   :  { %v1898_v47 = vpop.f32.mrb[8].mxu0 }
 0xf14   :  { %v5200_v50 = vadd.f32 %v5582_v13, %v1898_v47  ;;  %v4748_v52 = vpop.f32.mrb[9].mxu0 }
 0xf16   :  { %v1903_v53 = vmul.f32 0.5, %v5200_v50 }
 0xf18   :  { %v1904_v51 = vsel %vm5499_vm10, %v5200_v50, %v1903_v53 }
 0xf19   :  { %5277 = vtanh.f32 %v1904_v51 }
 0xf1b   :  { %v2067_v36 = vpop.f32.mrb[10].mxu0 }
 0xf1c   :  { %v2072_v54 = vrot.slane %v2067_v36, 3  ;;  %v2073_v57 = vrot.slane %v2067_v36, 4  ;;  %v2074_v58 = vrot.slane %v2067_v36, 5  ;;  %v2075_v55 = vrot.slane %v2067_v36, 6  ;;  %v4770_v59 = vpop.f32.mrb[11].mxu0 }
 0xf1d   :  { %v2076_v61 = vrot.slane %v2067_v36, 7  ;;  %v2077_v63 = vrot.slane %v2067_v36, 1  ;;  %v2078_v1 = vrot.slane %v2067_v36, 2  ;;  %v2092_v22 = vadd.f32 %v2067_v36, %v5469_v42 }
 0xf1e   :  { %v2087_v56 = vadd.f32 %v2072_v54, %v5461_v38  ;;  %v2088_v3 = vadd.f32 %v2073_v57, %v5459_v37  ;;  %v2089_v13 = vadd.f32 %v2074_v58, %v5463_v39  ;;  %v2090_v6 = vadd.f32 %v2075_v55, %v5465_v40 }
 0xf1f   :  { %v2091_v7 = vadd.f32 %v2076_v61, %v5467_v41  ;;  %v2093_v9 = vadd.f32 %v2077_v63, %v5471_v43  ;;  %v2094_v11 = vadd.f32 %v2078_v1, %v5473_v44  ;;  %v2100_v50 = vmul.f32 0.5, %v2092_v22 }
 0xf20   :  { %v2095_v12 = vmul.f32 0.5, %v2087_v56  ;;  %v2096_v14 = vmul.f32 0.5, %v2088_v3  ;;  %v2097_v15 = vmul.f32 0.5, %v2089_v13  ;;  %v2098_v16 = vmul.f32 0.5, %v2090_v6 }
 0xf21   :  { %v2111_v17 = vrot.slane %v2087_v56, 5  ;;  %v2099_v18 = vmul.f32 0.5, %v2091_v7  ;;  %v2112_v19 = vrot.slane %v2088_v3, 4  ;;  %v2114_v20 = vrot.slane %v2089_v13, 3 }
 0xf22   :  { %v2101_v23 = vmul.f32 0.5, %v2093_v9  ;;  %v2134_v24 = vrot.slane %v2095_v12, 5  ;;  %v2135_v25 = vrot.slane %v2096_v14, 4  ;;  %v2102_v26 = vmul.f32 0.5, %v2094_v11 }
 0xf23   :  { %v5278_v21 = vpop.eup %5277  ;;  %v2113_v28 = vsel %vm385_vm1, %v2112_v19, %v2111_v17  ;;  %v2116_v29 = vrot.slane %v2090_v6, 2  ;;  %v2137_v30 = vrot.slane %v2097_v15, 3  ;;  %v2118_v35 = vrot.slane %v2091_v7, 1 }
 0xf24   :  { %v2115_v33 = vsel %vm388_vm2, %v2114_v20, %v2113_v28  ;;  %v2136_v32 = vsel %vm385_vm1, %v2135_v25, %v2134_v24  ;;  %v2139_v45 = vrot.slane %v2098_v16, 2  ;;  %v2141_v46 = vrot.slane %v2099_v18, 1 }
 0xf25   :  { %v2117_v48 = vsel %vm391_vm3, %v2116_v29, %v2115_v33  ;;  %v2138_v49 = vsel %vm388_vm2, %v2137_v30, %v2136_v32  ;;  %v1906_v47 = vmul.f32 0.5, %v5278_v21  ;;  %v2121_v53 = vrot.slane %v2093_v9, 7 }
 0xf26   :  { %v2119_v52 = vsel %vm394_vm4, %v2118_v35, %v2117_v48  ;;  %v2140_v51 = vsel %vm391_vm3, %v2139_v45, %v2138_v49  ;;  %v2144_v57 = vrot.slane %v2101_v23, 7  ;;  %v2123_v55 = vrot.slane %v2094_v11, 6  ;;  %v5926_v35 = vld [vmem:[%s6385_s6] ss:$0 sm:$0xff] }
 0xf27   :  { %v2120_v36 = vsel %vm397_vm5, %v2092_v22, %v2119_v52  ;;  %v2142_v54 = vsel %vm394_vm4, %v2141_v46, %v2140_v51  ;;  %v1907_v58 = vadd.f32 0.5, %v1906_v47  ;;  %v2146_v61 = vrot.slane %v2102_v26, 6 }
 0xf28   :  { %v2143_v59 = vsel %vm397_vm5, %v2100_v50, %v2142_v54  ;;  %v2122_v63 = vsel %vm400_vm6, %v2121_v53, %v2120_v36 }
 0xf29   :  { %v1908_v1 = vsel %vm5499_vm10, %v5278_v21, %v1907_v58  ;;  %v2145_v56 = vsel %vm400_vm6, %v2144_v57, %v2143_v59  ;;  %v2124_v3 = vsel %vm403_vm9, %v2123_v55, %v2122_v63 }
 0xf2a   :  { %1911 = vrot.lane.b32.xlu0 %v1908_v1, %s5345_s15  ;;  %v2147_v13 = vsel %vm403_vm9, %v2146_v61, %v2145_v56  ;;  %v1909_v18 = vmul.f32 %v1908_v1, %v5823_v27 }
 0xf2b   :  { %v2149_v6 = vsel %vm5499_vm10, %v2124_v3, %v2147_v13 }
 0xf2c   :  { %5279 = vtanh.f32 %v2149_v6 }
 0xf36   :  { %v5280_v7 = vpop.eup %5279 }
 0xf37   :  { %v2151_v9 = vmul.f32 0.5, %v5280_v7 }
 0xf39   :  { %v2152_v11 = vadd.f32 0.5, %v2151_v9 }
 0xf3b   :  { %v2153_v12 = vsel %vm5499_vm10, %v5280_v7, %v2152_v11 }
 0xf3c   :  { %2156 = vrot.lane.b32.xlu1 %v2153_v12, %s5345_s15  ;;  %v2154_v22 = vmul.f32 %v2153_v12, %v5828_v31 }
 0xf9c   :  { %v1912_v14 = vpop.permute.xlu0 %1911 }
 0xf9d   :  { %v1914_v15 = vmul.f32 %v1912_v14, %v1908_v1 }
 0xf9f   :  { %1916 = vrot.lane.b32.xlu0 %v1914_v15, %s5346_s16 }
 0xfae   :  { %v2157_v16 = vpop.permute.xlu1 %2156 }
 0xfaf   :  { %v2159_v17 = vmul.f32 %v2157_v16, %v2153_v12 }
 0xfb1   :  { %2161 = vrot.lane.b32.xlu1 %v2159_v17, %s5346_s16 }
0x1011   :  { %v1917_v19 = vpop.permute.xlu0 %1916 }
0x1012   :  { %v5891_v20 = vadd.f32 %v1917_v19, %v1909_v18 }
0x1014   :  { %5281 = vtanh.f32 %v5891_v20 }
0x101e   :  { %v5282_v21 = vpop.eup %5281 }
0x101f   :  { %1922 = vrot.lane.b32.xlu0 %v5282_v21, %s5345_s15 }
0x1023   :  { %v2162_v23 = vpop.permute.xlu1 %2161 }
0x1024   :  { %v5896_v24 = vadd.f32 %v2162_v23, %v2154_v22 }
0x1026   :  { %5283 = vtanh.f32 %v5896_v24 }
0x1030   :  { %v5284_v25 = vpop.eup %5283 }
0x1031   :  { %2167 = vrot.lane.b32.xlu1 %v5284_v25, %s5345_s15 }
0x1091   :  { %v1923_v26 = vpop.permute.xlu0 %1922 }
0x1092   :  { %v1925_v27 = vmul.f32 %v1923_v26, %v1908_v1 }
0x1094   :  { %1927 = vrot.lane.b32.xlu0 %v1925_v27, %s5346_s16 }
0x10a3   :  { %v2168_v28 = vpop.permute.xlu1 %2167 }
0x10a4   :  { %v2170_v29 = vmul.f32 %v2168_v28, %v2153_v12 }
0x10a6   :  { %2172 = vrot.lane.b32.xlu1 %v2170_v29, %s5346_s16 }
0x1106   :  { %v1928_v30 = vpop.permute.xlu0 %1927 }
0x1107   :  { %4758 = vmatmul.mubr.msk.f32.vlgmr.msra.gmra.mrb[10].mxu1 %vm200_vm11, %v1928_v30 }
0x1108   :  { %5084 = vmatpush3.bf16.msra.mxu1 %v5543_v2  ;;  %4779 = vmatprep.mubr.msk.f32.mxu1 %vm5342_vm0, %v5343_v4 }
0x1109   :  { %5085 = vmatprep.subr.bf16.mxu1 %v5341_v0 }
0x110c   :  { %5087 = vmatpush3.bf16.msra.mxu1 %v5557_v8 }
0x110d   :  { %5094 = vmatprep.subr.bf16.mxu1 %v5341_v0 }
0x1118   :  { %v2173_v31 = vpop.permute.xlu1 %2172 }
0x1119   :  { %4780 = vmatmul.mubr.msk.f32.vlgmr.msra.gmra.mrb[10].mxu1 %vm200_vm11, %v2173_v31 }
0x111a   :  { %5096 = vmatpush3.bf16.msra.mxu1 %v5410_v5  ;;  %4801 = vmatprep.mubr.msk.f32.mxu1 %vm5342_vm0, %v5343_v4 }
0x111b   :  { %5097 = vmatprep.subr.bf16.mxu1 %v5341_v0 }
0x111e   :  { %5099 = vmatpush3.bf16.msra.mxu1 %v5422_v10 }
0x111f   :  { %5106 = vmatprep.subr.bf16.mxu1 %v5341_v0 }
0x1121   :  { %4802 = vmatmul.mubr.msk.f32.vlgmr.msra.gmra.mrb[12].mxu1 %vm200_vm11, %v2173_v31 }
0x1122   :  { %5108 = vmatpush3.bf16.msra.mxu1 %v5525_v60  ;;  %4823 = vmatprep.mubr.msk.f32.mxu1 %vm5342_vm0, %v5343_v4 }
0x1123   :  { %5109 = vmatprep.subr.bf16.mxu1 %v5341_v0 }
0x1126   :  { %5111 = vmatpush3.bf16.msra.mxu1 %v5531_v62 }
0x1127   :  { %5118 = vmatprep.subr.bf16.mxu1 %v5341_v0 }
0x11ec   :  { %v2242_v33 = vpop.f32.mrb[10].mxu1 }
0x11ed   :  { %v5201_v32 = vadd.f32 %v5926_v35, %v2242_v33  ;;  %v4781_v45 = vpop.f32.mrb[11].mxu1 }
0x11ef   :  { %v2247_v48 = vmul.f32 0.5, %v5201_v32 }
0x11f1   :  { %v2248_v49 = vsel %vm5499_vm10, %v5201_v32, %v2247_v48 }
0x11f2   :  { %5285 = vtanh.f32 %v2248_v49 }
0x11f4   :  { %v2411_v46 = vpop.f32.mrb[12].mxu1 }
0x11f5   :  { %v2416_v47 = vrot.slane %v2411_v46, 2  ;;  %v2417_v50 = vrot.slane %v2411_v46, 3  ;;  %v2418_v52 = vrot.slane %v2411_v46, 4  ;;  %v2419_v53 = vrot.slane %v2411_v46, 5  ;;  %v4803_v51 = vpop.f32.mrb[13].mxu1 }
0x11f6   :  { %v2420_v36 = vrot.slane %v2411_v46, 6  ;;  %v2421_v54 = vrot.slane %v2411_v46, 7  ;;  %v2422_v57 = vrot.slane %v2411_v46, 1  ;;  %v2437_v11 = vadd.f32 %v2411_v46, %v5471_v43 }
0x11f7   :  { %v2431_v58 = vadd.f32 %v2416_v47, %v5461_v38  ;;  %v2432_v55 = vadd.f32 %v2417_v50, %v5459_v37  ;;  %v2433_v59 = vadd.f32 %v2418_v52, %v5463_v39  ;;  %v2434_v61 = vadd.f32 %v2419_v53, %v5465_v40 }
0x11f8   :  { %v2435_v63 = vadd.f32 %v2420_v36, %v5467_v41  ;;  %v2436_v1 = vadd.f32 %v2421_v54, %v5469_v42  ;;  %v2438_v56 = vadd.f32 %v2422_v57, %v5473_v44  ;;  %v2445_v47 = vmul.f32 0.5, %v2437_v11 }
0x11f9   :  { %v2439_v3 = vmul.f32 0.5, %v2431_v58  ;;  %v2440_v13 = vmul.f32 0.5, %v2432_v55  ;;  %v2441_v6 = vmul.f32 0.5, %v2433_v59  ;;  %v2442_v7 = vmul.f32 0.5, %v2434_v61 }
0x11fa   :  { %v2455_v9 = vrot.slane %v2431_v58, 6  ;;  %v2443_v12 = vmul.f32 0.5, %v2435_v63  ;;  %v2456_v14 = vrot.slane %v2432_v55, 5  ;;  %v2458_v15 = vrot.slane %v2433_v59, 4 }
0x11fb   :  { %v2444_v17 = vmul.f32 0.5, %v2436_v1  ;;  %v2446_v18 = vmul.f32 0.5, %v2438_v56  ;;  %v2478_v19 = vrot.slane %v2439_v3, 6  ;;  %v2479_v21 = vrot.slane %v2440_v13, 5 }
0x11fc   :  { %v5286_v16 = vpop.eup %5285  ;;  %v2457_v22 = vsel %vm385_vm1, %v2456_v14, %v2455_v9  ;;  %v2460_v23 = vrot.slane %v2434_v61, 3  ;;  %v2462_v25 = vrot.slane %v2435_v63, 2  ;;  %v2481_v26 = vrot.slane %v2441_v6, 4 }
0x11fd   :  { %v2459_v27 = vsel %vm388_vm2, %v2458_v15, %v2457_v22  ;;  %v2464_v28 = vrot.slane %v2436_v1, 1  ;;  %v2480_v29 = vsel %vm385_vm1, %v2479_v21, %v2478_v19  ;;  %v2483_v30 = vrot.slane %v2442_v7, 3 }
0x11fe   :  { %v2461_v31 = vsel %vm391_vm3, %v2460_v23, %v2459_v27  ;;  %v2482_v33 = vsel %vm388_vm2, %v2481_v26, %v2480_v29  ;;  %v2485_v32 = vrot.slane %v2443_v12, 2  ;;  %v2250_v45 = vmul.f32 0.5, %v5286_v16 }
0x11ff   :  { %v2463_v48 = vsel %vm394_vm4, %v2462_v25, %v2461_v31  ;;  %v2484_v49 = vsel %vm391_vm3, %v2483_v30, %v2482_v33  ;;  %v2487_v46 = vrot.slane %v2444_v17, 1  ;;  %v2467_v51 = vrot.slane %v2438_v56, 7 }
0x1200   :  { %v2251_v50 = vadd.f32 0.5, %v2250_v45  ;;  %v2465_v52 = vsel %vm397_vm5, %v2464_v28, %v2463_v48  ;;  %v2486_v53 = vsel %vm394_vm4, %v2485_v32, %v2484_v49  ;;  %v2490_v36 = vrot.slane %v2446_v18, 7 }
0x1201   :  { %v2466_v54 = vsel %vm400_vm6, %v2437_v11, %v2465_v52  ;;  %v2488_v57 = vsel %vm397_vm5, %v2487_v46, %v2486_v53 }
0x1202   :  { %v2252_v58 = vsel %vm5499_vm10, %v5286_v16, %v2251_v50  ;;  %v2489_v55 = vsel %vm400_vm6, %v2445_v47, %v2488_v57  ;;  %v2468_v59 = vsel %vm403_vm9, %v2467_v51, %v2466_v54 }
0x1203   :  { %2255 = vrot.lane.b32.xlu0 %v2252_v58, %s5345_s15  ;;  %v2491_v61 = vsel %vm403_vm9, %v2490_v36, %v2489_v55  ;;  %v2253_v12 = vmul.f32 %v2252_v58, %v5891_v20 }
0x1204   :  { %v2493_v63 = vsel %vm5499_vm10, %v2468_v59, %v2491_v61 }
0x1205   :  { %5287 = vtanh.f32 %v2493_v63 }
0x120f   :  { %v5288_v1 = vpop.eup %5287 }
0x1210   :  { %v2495_v56 = vmul.f32 0.5, %v5288_v1 }
0x1212   :  { %v2496_v3 = vadd.f32 0.5, %v2495_v56 }
0x1214   :  { %v2497_v13 = vsel %vm5499_vm10, %v5288_v1, %v2496_v3 }
0x1215   :  { %2500 = vrot.lane.b32.xlu1 %v2497_v13, %s5345_s15  ;;  %v2498_v17 = vmul.f32 %v2497_v13, %v5896_v24 }
0x1275   :  { %v2256_v6 = vpop.permute.xlu0 %2255 }
0x1276   :  { %v2258_v7 = vmul.f32 %v2256_v6, %v2252_v58 }
0x1278   :  { %2260 = vrot.lane.b32.xlu0 %v2258_v7, %s5346_s16 }
0x1287   :  { %v2501_v9 = vpop.permute.xlu1 %2500 }
0x1288   :  { %v2503_v11 = vmul.f32 %v2501_v9, %v2497_v13 }
0x128a   :  { %2505 = vrot.lane.b32.xlu1 %v2503_v11, %s5346_s16 }
0x12ea   :  { %v2261_v14 = vpop.permute.xlu0 %2260 }
0x12eb   :  { %v5964_v15 = vadd.f32 %v2261_v14, %v2253_v12 }
0x12ed   :  { %5289 = vtanh.f32 %v5964_v15 }
0x12f7   :  { %v5290_v16 = vpop.eup %5289 }
0x12f8   :  { %2266 = vrot.lane.b32.xlu0 %v5290_v16, %s5345_s15 }
0x12fc   :  { %v2506_v18 = vpop.permute.xlu1 %2505 }
0x12fd   :  { %v5969_v19 = vadd.f32 %v2506_v18, %v2498_v17 }
0x12ff   :  { %5291 = vtanh.f32 %v5969_v19 }
0x1309   :  { %v5292_v21 = vpop.eup %5291 }
0x130a   :  { %2511 = vrot.lane.b32.xlu1 %v5292_v21, %s5345_s15 }
0x136a   :  { %v2267_v22 = vpop.permute.xlu0 %2266 }
0x136b   :  { %v2269_v20 = vmul.f32 %v2267_v22, %v2252_v58 }
0x136d   :  { %2271 = vrot.lane.b32.xlu0 %v2269_v20, %s5346_s16 }
0x137c   :  { %v2512_v23 = vpop.permute.xlu1 %2511 }
0x137d   :  { %v2514_v25 = vmul.f32 %v2512_v23, %v2497_v13 }
0x137f   :  { %2516 = vrot.lane.b32.xlu1 %v2514_v25, %s5346_s16 }
0x13df   :  { %v2272_v26 = vpop.permute.xlu0 %2271 }
0x13e0   :  { %4791 = vmatmul.mubr.msk.f32.vlgmr.msra.gmra.mrb[12].mxu0 %vm200_vm11, %v2272_v26 }
0x13e1   :  { %5102 = vmatpush3.bf16.msra.mxu0 %v5543_v2  ;;  %4812 = vmatprep.mubr.msk.f32.mxu0 %vm5342_vm0, %v5343_v4 }
0x13e2   :  { %5103 = vmatprep.subr.bf16.mxu0 %v5341_v0 }
0x13e5   :  { %5105 = vmatpush3.bf16.msra.mxu0 %v5557_v8 }
0x13e6   :  { %5112 = vmatprep.subr.bf16.mxu0 %v5341_v0 }
0x13f1   :  { %v2517_v24 = vpop.permute.xlu1 %2516 }
0x13f2   :  { %4813 = vmatmul.mubr.msk.f32.vlgmr.msra.gmra.mrb[12].mxu0 %vm200_vm11, %v2517_v24 }
0x13f3   :  { %5114 = vmatpush3.bf16.msra.mxu0 %v5410_v5  ;;  %4834 = vmatprep.mubr.msk.f32.mxu0 %vm5342_vm0, %v5343_v4 }
0x13f4   :  { %5115 = vmatprep.subr.bf16.mxu0 %v5341_v0 }
0x13f7   :  { %5117 = vmatpush3.bf16.msra.mxu0 %v5422_v10 }
0x13f8   :  { %5124 = vmatprep.subr.bf16.mxu0 %v5341_v0 }
0x13fa   :  { %4835 = vmatmul.mubr.msk.f32.vlgmr.msra.gmra.mrb[14].mxu0 %vm200_vm11, %v2517_v24 }
0x13fb   :  { %5126 = vmatpush3.bf16.msra.mxu0 %v5525_v60  ;;  %4856 = vmatprep.mubr.msk.f32.mxu0 %vm5342_vm0, %v5343_v4 }
0x13fc   :  { %5127 = vmatprep.subr.bf16.mxu0 %v5341_v0 }
0x13ff   :  { %5129 = vmatpush3.bf16.msra.mxu0 %v5531_v62 }
0x1400   :  { %5136 = vmatprep.subr.bf16.mxu0 %v5341_v0 }
0x14c5   :  { %v2586_v27 = vpop.f32.mrb[12].mxu0 }
0x14c6   :  { %v5202_v28 = vadd.f32 %v5926_v35, %v2586_v27  ;;  %v4814_v29 = vpop.f32.mrb[13].mxu0 }
0x14c8   :  { %v2591_v30 = vmul.f32 0.5, %v5202_v28 }
0x14ca   :  { %v2592_v31 = vsel %vm5499_vm10, %v5202_v28, %v2591_v30 }
0x14cb   :  { %5293 = vtanh.f32 %v2592_v31 }
0x14cd   :  { %v2755_v33 = vpop.f32.mrb[14].mxu0 }
0x14ce   :  { %v2760_v32 = vrot.slane %v2755_v33, 1  ;;  %v2761_v45 = vrot.slane %v2755_v33, 2  ;;  %v2762_v48 = vrot.slane %v2755_v33, 3  ;;  %v2763_v49 = vrot.slane %v2755_v33, 4  ;;  %v4836_v46 = vpop.f32.mrb[15].mxu0 }
0x14cf   :  { %v2764_v47 = vrot.slane %v2755_v33, 5  ;;  %v2765_v50 = vrot.slane %v2755_v33, 6  ;;  %v2766_v52 = vrot.slane %v2755_v33, 7  ;;  %v2782_v3 = vadd.f32 %v2755_v33, %v5473_v44 }
0x14d0   :  { %v2775_v53 = vadd.f32 %v2760_v32, %v5461_v38  ;;  %v2776_v51 = vadd.f32 %v2761_v45, %v5459_v37  ;;  %v2777_v36 = vadd.f32 %v2762_v48, %v5463_v39  ;;  %v2778_v54 = vadd.f32 %v2763_v49, %v5465_v40 }
0x14d1   :  { %v2779_v57 = vadd.f32 %v2764_v47, %v5467_v41  ;;  %v2780_v58 = vadd.f32 %v2765_v50, %v5469_v42  ;;  %v2781_v55 = vadd.f32 %v2766_v52, %v5471_v43  ;;  %v2790_v30 = vmul.f32 0.5, %v2782_v3 }
0x14d2   :  { %v2783_v59 = vmul.f32 0.5, %v2775_v53  ;;  %v2784_v61 = vmul.f32 0.5, %v2776_v51  ;;  %v2785_v63 = vmul.f32 0.5, %v2777_v36  ;;  %v2786_v1 = vmul.f32 0.5, %v2778_v54 }
0x14d3   :  { %v2799_v56 = vrot.slane %v2775_v53, 7  ;;  %v2787_v38 = vmul.f32 0.5, %v2779_v57  ;;  %v2800_v13 = vrot.slane %v2776_v51, 6  ;;  %v2802_v37 = vrot.slane %v2777_v36, 5 }
0x14d4   :  { %v2788_v39 = vmul.f32 0.5, %v2780_v58  ;;  %v2789_v7 = vmul.f32 0.5, %v2781_v55  ;;  %v2822_v40 = vrot.slane %v2783_v59, 7  ;;  %v2823_v9 = vrot.slane %v2784_v61, 6 }
0x14d5   :  { %v5294_v6 = vpop.eup %5293  ;;  %v2801_v41 = vsel %vm385_vm1, %v2800_v13, %v2799_v56  ;;  %v2804_v42 = vrot.slane %v2778_v54, 4  ;;  %v2806_v11 = vrot.slane %v2779_v57, 3  ;;  %v2825_v43 = vrot.slane %v2785_v63, 5  ;;  %v37_v13 = vld [vmem:[%s6380_s0 + $0x18] sm:$0xf] }
0x14d6   :  { %v2803_v12 = vsel %vm388_vm2, %v2802_v37, %v2801_v41  ;;  %v2808_v14 = vrot.slane %v2780_v58, 2  ;;  %v2824_v16 = vsel %vm385_vm1, %v2823_v9, %v2822_v40  ;;  %v2827_v17 = vrot.slane %v2786_v1, 4  ;;  %v43_v37 = vld [vmem:[%s6380_s0 + $0x48] sm:$0xf]  ;;  %v41_v9 = vld [vmem:[%s6380_s0 + $0x38] sm:$0xf] }
0x14d7   :  { %v2805_v44 = vsel %vm391_vm3, %v2804_v42, %v2803_v12  ;;  %v2826_v18 = vsel %vm388_vm2, %v2825_v43, %v2824_v16  ;;  %v2829_v21 = vrot.slane %v2787_v38, 3  ;;  %v2594_v22 = vmul.f32 0.5, %v5294_v6  ;;  %v39_v40 = vld [vmem:[%s6380_s0 + $0x28] sm:$0xf]  ;;  %v45_v41 = vld [vmem:[%s6380_s0 + $0x58] sm:$0xf] }
0x14d8   :  { %v2807_v20 = vsel %vm394_vm4, %v2806_v11, %v2805_v44  ;;  %v2810_v23 = vrot.slane %v2781_v55, 1  ;;  %v2828_v25 = vsel %vm391_vm3, %v2827_v17, %v2826_v18  ;;  %v2831_v26 = vrot.slane %v2788_v39, 2  ;;  %v49_v42 = vld [vmem:[%s6380_s0 + $0x78] sm:$0xf] }
0x14d9   :  { %v2833_v24 = vrot.slane %v2789_v7, 1  ;;  %v2595_v27 = vadd.f32 0.5, %v2594_v22  ;;  %v2809_v28 = vsel %vm397_vm5, %v2808_v14, %v2807_v20  ;;  %v2830_v29 = vsel %vm394_vm4, %v2829_v21, %v2828_v25 }
0x14da   :  { %v2811_v31 = vsel %vm400_vm6, %v2810_v23, %v2809_v28  ;;  %v2832_v33 = vsel %vm397_vm5, %v2831_v26, %v2830_v29  ;;  %v5338_v26 = vld [vmem:[%s6381_s1] ss:$0 sm:$0xff] }
0x14db   :  { %v2596_v32 = vsel %vm5499_vm10, %v5294_v6, %v2595_v27  ;;  %v2834_v45 = vsel %vm400_vm6, %v2833_v24, %v2832_v33  ;;  %v2812_v48 = vsel %vm403_vm9, %v2782_v3, %v2811_v31  ;;  %v47_v6 = vld [vmem:[%s6380_s0 + $0x68] sm:$0xf] }
0x14dc   :  { %2599 = vrot.lane.b32.xlu0 %v2596_v32, %s5345_s15  ;;  %v2835_v49 = vsel %vm403_vm9, %v2790_v30, %v2834_v45  ;;  %v2597_v58 = vmul.f32 %v2596_v32, %v5964_v15 }
0x14dd   :  { %v2837_v46 = vsel %vm5499_vm10, %v2812_v48, %v2835_v49  ;;  %v5339_v49 = vld [vmem:[%s6382_s3] ss:$0 sm:$0xff] }
0x14de   :  { %5295 = vtanh.f32 %v2837_v46 }
0x14e8   :  { %v5296_v47 = vpop.eup %5295 }
0x14e9   :  { %v2839_v50 = vmul.f32 0.5, %v5296_v47 }
0x14eb   :  { %v2840_v52 = vadd.f32 0.5, %v2839_v50 }
0x14ed   :  { %v2841_v53 = vsel %vm5499_vm10, %v5296_v47, %v2840_v52 }
0x14ee   :  { %2844 = vrot.lane.b32.xlu1 %v2841_v53, %s5345_s15  ;;  %v2842_v63 = vmul.f32 %v2841_v53, %v5969_v19  ;;  %v35_v19 = vld [vmem:[%s6380_s0 + $0x8] sm:$0xf] }
0x154e   :  { %v2600_v51 = vpop.permute.xlu0 %2599 }
0x154f   :  { %v2602_v36 = vmul.f32 %v2600_v51, %v2596_v32 }
0x1551   :  { %2604 = vrot.lane.b32.xlu0 %v2602_v36, %s5346_s16 }
0x1560   :  { %v2845_v54 = vpop.permute.xlu1 %2844 }
0x1561   :  { %v2847_v57 = vmul.f32 %v2845_v54, %v2841_v53 }
0x1563   :  { %2849 = vrot.lane.b32.xlu1 %v2847_v57, %s5346_s16 }
0x15c3   :  { %v2605_v55 = vpop.permute.xlu0 %2604 }
0x15c4   :  { %v6032_v59 = vadd.f32 %v2605_v55, %v2597_v58 }
0x15c6   :  { %5297 = vtanh.f32 %v6032_v59 }
0x15d0   :  { %v5298_v61 = vpop.eup %5297 }
0x15d1   :  { %2610 = vrot.lane.b32.xlu0 %v5298_v61, %s5345_s15 }
0x15d5   :  { %v2850_v1 = vpop.permute.xlu1 %2849 }
0x15d6   :  { %v6037_v56 = vadd.f32 %v2850_v1, %v2842_v63 }
0x15d8   :  { %5299 = vtanh.f32 %v6037_v56 }
0x15e2   :  { %v5300_v3 = vpop.eup %5299 }
0x15e3   :  { %2855 = vrot.lane.b32.xlu1 %v5300_v3, %s5345_s15 }
0x1643   :  { %v2611_v38 = vpop.permute.xlu0 %2610 }
0x1644   :  { %v2613_v15 = vmul.f32 %v2611_v38, %v2596_v32 }
0x1646   :  { %2615 = vrot.lane.b32.xlu0 %v2613_v15, %s5346_s16 }
0x164a   :  { %68 = vperm.xlu0 %5239, %v37_v13  }
0x164e   :  { %58 = vperm.xlu0 %5239, %v35_v19  }
0x1652   :  { %98 = vperm.xlu0 %5239, %v43_v37  }
0x1655   :  { %v2856_v39 = vpop.permute.xlu1 %2855 }
0x1656   :  { %v2858_v7 = vmul.f32 %v2856_v39, %v2841_v53  ;;  %118 = vperm.xlu0 %5239, %v47_v6  }
0x1658   :  { %2860 = vrot.lane.b32.xlu1 %v2858_v7, %s5346_s16 }
0x165c   :  { %78 = vperm.xlu1 %5240, %v39_v40  }
0x1660   :  { %88 = vperm.xlu1 %5240, %v41_v9  }
0x1664   :  { %108 = vperm.xlu1 %5240, %v45_v41  }
0x1668   :  { %128 = vperm.xlu1 %5240, %v49_v42  }
0x16b8   :  { %v2616_v11 = vpop.permute.xlu0 %2615 }
0x16b9   :  { %4824 = vmatmul.mubr.msk.f32.vlgmr.msra.gmra.mrb[14].mxu1 %vm200_vm11, %v2616_v11 }
0x16ba   :  { %5120 = vmatpush3.bf16.msra.mxu1 %v5543_v2  ;;  %4845 = vmatprep.mubr.msk.f32.mxu1 %vm5342_vm0, %v5343_v4 }
0x16bb   :  { %5121 = vmatprep.subr.bf16.mxu1 %v5341_v0 }
0x16be   :  { %5123 = vmatpush3.bf16.msra.mxu1 %v5557_v8 }
0x16bf   :  { %5130 = vmatprep.subr.bf16.mxu1 %v5341_v0 }
0x16c9   :  { %v69_v12 = vpop.permute.xlu0 %68 }
0x16ca   :  { %v2861_v43 = vpop.permute.xlu1 %2860  ;;  %v140_v24 = vmul.f32 %v5338_v26, %v69_v12 }
0x16cb   :  { %4846 = vmatmul.mubr.msk.f32.vlgmr.msra.gmra.mrb[14].mxu1 %vm200_vm11, %v2861_v43 }
0x16cc   :  { %5132 = vmatpush3.bf16.msra.mxu1 %v5410_v5  ;;  %4867 = vmatprep.mubr.msk.f32.mxu1 %vm5342_vm0, %v5343_v4  ;;  %v6097_v46 = vadd.f32 %v5339_v49, %v140_v24 }
0x16cd   :  { %5133 = vmatprep.subr.bf16.mxu1 %v5341_v0  ;;  %v59_v16 = vpop.permute.xlu0 %58 }
0x16ce   :  { %v138_v27 = vmul.f32 %v5338_v26, %v59_v16 }
0x16d0   :  { %5135 = vmatpush3.bf16.msra.mxu1 %v5422_v10  ;;  %v6099_v47 = vadd.f32 %v5339_v49, %v138_v27 }
0x16d1   :  { %5142 = vmatprep.subr.bf16.mxu1 %v5341_v0  ;;  %v99_v44 = vpop.permute.xlu0 %98 }
0x16d2   :  { %v146_v28 = vmul.f32 %v5338_v26, %v99_v44 }
0x16d3   :  { %4868 = vmatmul.mubr.msk.f32.vlgmr.msra.gmra.mrb[16].mxu1 %vm200_vm11, %v2861_v43 }
0x16d4   :  { %5144 = vmatpush3.bf16.msra.mxu1 %v5525_v60  ;;  %4889 = vmatprep.mubr.msk.f32.mxu1 %vm5342_vm0, %v5343_v4  ;;  %v6101_v50 = vadd.f32 %v5339_v49, %v146_v28 }
0x16d5   :  { %5145 = vmatprep.subr.bf16.mxu1 %v5341_v0  ;;  %v119_v21 = vpop.permute.xlu0 %118 }
0x16d6   :  { %v150_v29 = vmul.f32 %v5338_v26, %v119_v21 }
0x16d8   :  { %5147 = vmatpush3.bf16.msra.mxu1 %v5531_v62  ;;  %v6103_v52 = vadd.f32 %v5339_v49, %v150_v29 }
0x16d9   :  { %5154 = vmatprep.subr.bf16.mxu1 %v5341_v0 }
0x16db   :  { %v79_v14 = vpop.permute.xlu1 %78 }
0x16dc   :  { %v142_v31 = vmul.f32 %v5338_v26, %v79_v14 }
0x16de   :  { %v6105_v53 = vadd.f32 %v5339_v49, %v142_v31 }
0x16df   :  { %v89_v17 = vpop.permute.xlu1 %88 }
0x16e0   :  { %v144_v33 = vmul.f32 %v5338_v26, %v89_v17 }
0x16e2   :  { %v6107_v51 = vadd.f32 %v5339_v49, %v144_v33 }
0x16e3   :  { %v109_v18 = vpop.permute.xlu1 %108 }
0x16e4   :  { %v148_v32 = vmul.f32 %v5338_v26, %v109_v18 }
0x16e6   :  { %v6109_v36 = vadd.f32 %v5339_v49, %v148_v32 }
0x16e7   :  { %v129_v20 = vpop.permute.xlu1 %128 }
0x16e8   :  { %v152_v45 = vmul.f32 %v5338_v26, %v129_v20 }
0x16ea   :  { %v6111_v54 = vadd.f32 %v5339_v49, %v152_v45 }
0x179e   :  { %v2930_v22 = vpop.f32.mrb[14].mxu1 }
0x179f   :  { %v5203_v23 = vadd.f32 %v5926_v35, %v2930_v22  ;;  %v4847_v25 = vpop.f32.mrb[15].mxu1 }
0x17a1   :  { %v2935_v30 = vmul.f32 0.5, %v5203_v23 }
0x17a3   :  { %v2936_v48 = vsel %vm5499_vm10, %v5203_v23, %v2935_v30 }
0x17a4   :  { %5301 = vtanh.f32 %v2936_v48 }
0x17a6   :  { %v3099_v57 = vpop.f32.mrb[16].mxu1 }
0x17a7   :  { %v3104_v58 = vrot.slane %v3099_v57, 1  ;;  %v3105_v55 = vrot.slane %v3099_v57, 2  ;;  %v3106_v61 = vrot.slane %v3099_v57, 3  ;;  %v3107_v63 = vrot.slane %v3099_v57, 4  ;;  %v4869_v1 = vpop.f32.mrb[17].mxu1 }
0x17a8   :  { %v3108_v3 = vrot.slane %v3099_v57, 5  ;;  %v3109_v38 = vrot.slane %v3099_v57, 6  ;;  %v3110_v15 = vrot.slane %v3099_v57, 7  ;;  %v3119_v13 = vadd.f32 %v3099_v57, %v6099_v47 }
0x17a9   :  { %v3120_v19 = vadd.f32 %v3104_v58, %v6097_v46  ;;  %v3121_v37 = vadd.f32 %v3105_v55, %v6105_v53  ;;  %v3122_v6 = vadd.f32 %v3106_v61, %v6107_v51  ;;  %v3123_v39 = vadd.f32 %v3107_v63, %v6101_v50 }
0x17aa   :  { %v3124_v7 = vadd.f32 %v3108_v3, %v6109_v36  ;;  %v3125_v40 = vadd.f32 %v3109_v38, %v6103_v52  ;;  %v3126_v9 = vadd.f32 %v3110_v15, %v6111_v54  ;;  %v3127_v11 = vmul.f32 0.5, %v3119_v13 }
0x17ab   :  { %v3128_v41 = vmul.f32 0.5, %v3120_v19  ;;  %v3129_v42 = vmul.f32 0.5, %v3121_v37  ;;  %v3130_v43 = vmul.f32 0.5, %v3122_v6  ;;  %v3143_v12 = vrot.slane %v3120_v19, 7 }
0x17ac   :  { %v3131_v14 = vmul.f32 0.5, %v3123_v39  ;;  %v3132_v16 = vmul.f32 0.5, %v3124_v7  ;;  %v3133_v17 = vmul.f32 0.5, %v3125_v40  ;;  %v3145_v44 = vrot.slane %v3121_v37, 6 }
0x17ad   :  { %v3134_v21 = vmul.f32 0.5, %v3126_v9  ;;  %v3144_v22 = vsel %vm385_vm1, %v3143_v12, %v3119_v13  ;;  %v3147_v20 = vrot.slane %v3122_v6, 5  ;;  %v3166_v23 = vrot.slane %v3128_v41, 7 }
0x17ae   :  { %v5302_v18 = vpop.eup %5301  ;;  %v3146_v25 = vsel %vm388_vm2, %v3145_v44, %v3144_v22  ;;  %v3149_v26 = vrot.slane %v3123_v39, 4  ;;  %v3151_v24 = vrot.slane %v3124_v7, 3  ;;  %v3168_v27 = vrot.slane %v3129_v42, 6 }
0x17af   :  { %v3148_v28 = vsel %vm391_vm3, %v3147_v20, %v3146_v25  ;;  %v3153_v29 = vrot.slane %v3125_v40, 2  ;;  %v3167_v30 = vsel %vm385_vm1, %v3166_v23, %v3127_v11  ;;  %v3170_v31 = vrot.slane %v3130_v43, 5 }
0x17b0   :  { %v3150_v33 = vsel %vm394_vm4, %v3149_v26, %v3148_v28  ;;  %v3169_v32 = vsel %vm388_vm2, %v3168_v27, %v3167_v30  ;;  %v3172_v45 = vrot.slane %v3131_v14, 4  ;;  %v2938_v48 = vmul.f32 0.5, %v5302_v18 }
0x17b1   :  { %v3171_v49 = vsel %vm391_vm3, %v3170_v31, %v3169_v32  ;;  %v3174_v57 = vrot.slane %v3132_v16, 3  ;;  %v3152_v58 = vsel %vm397_vm5, %v3151_v24, %v3150_v33  ;;  %v3176_v55 = vrot.slane %v3133_v17, 2 }
0x17b2   :  { %v2939_v61 = vadd.f32 0.5, %v2938_v48  ;;  %v3154_v63 = vsel %vm400_vm6, %v3153_v29, %v3152_v58  ;;  %v3173_v1 = vsel %vm394_vm4, %v3172_v45, %v3171_v49  ;;  %v3155_v3 = vrot.slane %v3126_v9, 1 }
0x17b3   :  { %v3178_v38 = vrot.slane %v3134_v21, 1  ;;  %v3175_v15 = vsel %vm397_vm5, %v3174_v57, %v3173_v1 }
0x17b4   :  { %v2940_v13 = vsel %vm5499_vm10, %v5302_v18, %v2939_v61  ;;  %v3177_v19 = vsel %vm400_vm6, %v3176_v55, %v3175_v15  ;;  %v3156_v37 = vsel %vm403_vm9, %v3155_v3, %v3154_v63 }
0x17b5   :  { %2943 = vrot.lane.b32.xlu0 %v2940_v13, %s5345_s15  ;;  %v3179_v6 = vsel %vm403_vm9, %v3178_v38, %v3177_v19  ;;  %v2941_v14 = vmul.f32 %v2940_v13, %v6032_v59 }
0x17b6   :  { %v3181_v39 = vsel %vm5499_vm10, %v3156_v37, %v3179_v6 }
0x17b7   :  { %5303 = vtanh.f32 %v3181_v39 }
0x17c1   :  { %v5304_v7 = vpop.eup %5303 }
0x17c2   :  { %v3183_v40 = vmul.f32 0.5, %v5304_v7 }
0x17c4   :  { %v3184_v9 = vadd.f32 0.5, %v3183_v40 }
0x17c6   :  { %v3185_v41 = vsel %vm5499_vm10, %v5304_v7, %v3184_v9 }
0x17c7   :  { %3188 = vrot.lane.b32.xlu1 %v3185_v41, %s5345_s15  ;;  %v3186_v18 = vmul.f32 %v3185_v41, %v6037_v56 }
0x1827   :  { %v2944_v42 = vpop.permute.xlu0 %2943 }
0x1828   :  { %v2946_v11 = vmul.f32 %v2944_v42, %v2940_v13 }
0x182a   :  { %2948 = vrot.lane.b32.xlu0 %v2946_v11, %s5346_s16 }
0x1839   :  { %v3189_v43 = vpop.permute.xlu1 %3188 }
0x183a   :  { %v3191_v12 = vmul.f32 %v3189_v43, %v3185_v41 }
0x183c   :  { %3193 = vrot.lane.b32.xlu1 %v3191_v12, %s5346_s16 }
0x189c   :  { %v2949_v16 = vpop.permute.xlu0 %2948 }
0x189d   :  { %v6146_v17 = vadd.f32 %v2949_v16, %v2941_v14 }
0x189f   :  { %5305 = vtanh.f32 %v6146_v17 }
0x18a9   :  { %v5306_v44 = vpop.eup %5305 }
0x18aa   :  { %2954 = vrot.lane.b32.xlu0 %v5306_v44, %s5345_s15 }
0x18ae   :  { %v3194_v21 = vpop.permute.xlu1 %3193 }
0x18af   :  { %v6151_v22 = vadd.f32 %v3194_v21, %v3186_v18 }
0x18b1   :  { %5307 = vtanh.f32 %v6151_v22 }
0x18bb   :  { %v5308_v20 = vpop.eup %5307 }
0x18bc   :  { %3199 = vrot.lane.b32.xlu1 %v5308_v20, %s5345_s15 }
0x191c   :  { %v2955_v23 = vpop.permute.xlu0 %2954 }
0x191d   :  { %v2957_v59 = vmul.f32 %v2955_v23, %v2940_v13 }
0x191f   :  { %2959 = vrot.lane.b32.xlu0 %v2957_v59, %s5346_s16 }
0x192e   :  { %v3200_v25 = vpop.permute.xlu1 %3199 }
0x192f   :  { %v3202_v26 = vmul.f32 %v3200_v25, %v3185_v41 }
0x1931   :  { %3204 = vrot.lane.b32.xlu1 %v3202_v26, %s5346_s16 }
0x1991   :  { %v2960_v24 = vpop.permute.xlu0 %2959 }
0x1992   :  { %4857 = vmatmul.mubr.msk.f32.vlgmr.msra.gmra.mrb[16].mxu0 %vm200_vm11, %v2960_v24 }
0x1993   :  { %5138 = vmatpush3.bf16.msra.mxu0 %v5543_v2  ;;  %4878 = vmatprep.mubr.msk.f32.mxu0 %vm5342_vm0, %v5343_v4 }
0x1994   :  { %5139 = vmatprep.subr.bf16.mxu0 %v5341_v0 }
0x1997   :  { %5141 = vmatpush3.bf16.msra.mxu0 %v5557_v8 }
0x1998   :  { %5148 = vmatprep.subr.bf16.mxu0 %v5341_v0 }
0x19a3   :  { %v3205_v56 = vpop.permute.xlu1 %3204 }
0x19a4   :  { %4879 = vmatmul.mubr.msk.f32.vlgmr.msra.gmra.mrb[16].mxu0 %vm200_vm11, %v3205_v56 }
0x19a5   :  { %5150 = vmatpush3.bf16.msra.mxu0 %v5410_v5  ;;  %4900 = vmatprep.mubr.msk.f32.mxu0 %vm5342_vm0, %v5343_v4 }
0x19a6   :  { %5151 = vmatprep.subr.bf16.mxu0 %v5341_v0 }
0x19a9   :  { %5153 = vmatpush3.bf16.msra.mxu0 %v5422_v10 }
0x19aa   :  { %5160 = vmatprep.subr.bf16.mxu0 %v5341_v0 }
0x19ac   :  { %4901 = vmatmul.mubr.msk.f32.vlgmr.msra.gmra.mrb[18].mxu0 %vm200_vm11, %v3205_v56 }
0x19ad   :  { %5162 = vmatpush3.bf16.msra.mxu0 %v5525_v60  ;;  %4922 = vmatprep.mubr.msk.f32.mxu0 %vm5342_vm0, %v5343_v4 }
0x19ae   :  { %5163 = vmatprep.subr.bf16.mxu0 %v5341_v0 }
0x19b1   :  { %5165 = vmatpush3.bf16.msra.mxu0 %v5531_v62 }
0x19b2   :  { %5172 = vmatprep.subr.bf16.mxu0 %v5341_v0 }
0x1a77   :  { %v3274_v27 = vpop.f32.mrb[16].mxu0 }
0x1a78   :  { %v5204_v28 = vadd.f32 %v5926_v35, %v3274_v27  ;;  %v4880_v29 = vpop.f32.mrb[17].mxu0 }
0x1a7a   :  { %v3279_v30 = vmul.f32 0.5, %v5204_v28 }
0x1a7c   :  { %v3280_v31 = vsel %vm5499_vm10, %v5204_v28, %v3279_v30 }
0x1a7d   :  { %5309 = vtanh.f32 %v3280_v31 }
0x1a7f   :  { %v3443_v33 = vpop.f32.mrb[18].mxu0 }
0x1a80   :  { %v3448_v32 = vrot.slane %v3443_v33, 7  ;;  %v3449_v45 = vrot.slane %v3443_v33, 1  ;;  %v3450_v48 = vrot.slane %v3443_v33, 2  ;;  %v3451_v49 = vrot.slane %v3443_v33, 3  ;;  %v4902_v57 = vpop.f32.mrb[19].mxu0 }
0x1a81   :  { %v3452_v58 = vrot.slane %v3443_v33, 4  ;;  %v3453_v55 = vrot.slane %v3443_v33, 5  ;;  %v3454_v61 = vrot.slane %v3443_v33, 6  ;;  %v3464_v63 = vadd.f32 %v3443_v33, %v6097_v46 }
0x1a82   :  { %v3463_v1 = vadd.f32 %v3448_v32, %v6099_v47  ;;  %v3465_v3 = vadd.f32 %v3449_v45, %v6105_v53  ;;  %v3466_v38 = vadd.f32 %v3450_v48, %v6107_v51  ;;  %v3467_v15 = vadd.f32 %v3451_v49, %v6101_v50 }
0x1a83   :  { %v3468_v13 = vadd.f32 %v3452_v58, %v6109_v36  ;;  %v3469_v19 = vadd.f32 %v3453_v55, %v6103_v52  ;;  %v3470_v37 = vadd.f32 %v3454_v61, %v6111_v54  ;;  %v3472_v7 = vmul.f32 0.5, %v3464_v63 }
0x1a84   :  { %v3471_v6 = vmul.f32 0.5, %v3463_v1  ;;  %v3473_v39 = vmul.f32 0.5, %v3465_v3  ;;  %v3474_v40 = vmul.f32 0.5, %v3466_v38  ;;  %v3487_v9 = vrot.slane %v3463_v1, 1 }
0x1a85   :  { %v3475_v41 = vmul.f32 0.5, %v3467_v15  ;;  %v3476_v42 = vmul.f32 0.5, %v3468_v13  ;;  %v3477_v11 = vmul.f32 0.5, %v3469_v19  ;;  %v3489_v43 = vrot.slane %v3465_v3, 7 }
0x1a86   :  { %v3478_v14 = vmul.f32 0.5, %v3470_v37  ;;  %v3488_v16 = vsel %vm385_vm1, %v3464_v63, %v3487_v9  ;;  %v3491_v44 = vrot.slane %v3466_v38, 6  ;;  %v3510_v18 = vrot.slane %v3471_v6, 1 }
0x1a87   :  { %v5310_v12 = vpop.eup %5309  ;;  %v3490_v21 = vsel %vm388_vm2, %v3489_v43, %v3488_v16  ;;  %v3493_v20 = vrot.slane %v3467_v15, 5  ;;  %v3495_v23 = vrot.slane %v3468_v13, 4  ;;  %v3512_v59 = vrot.slane %v3473_v39, 7 }
0x1a88   :  { %v3492_v25 = vsel %vm391_vm3, %v3491_v44, %v3490_v21  ;;  %v3497_v26 = vrot.slane %v3469_v19, 3  ;;  %v3511_v24 = vsel %vm385_vm1, %v3472_v7, %v3510_v18  ;;  %v3514_v56 = vrot.slane %v3474_v40, 6 }
0x1a89   :  { %v3494_v27 = vsel %vm394_vm4, %v3493_v20, %v3492_v25  ;;  %v3513_v28 = vsel %vm388_vm2, %v3512_v59, %v3511_v24  ;;  %v3516_v29 = vrot.slane %v3475_v41, 5  ;;  %v3282_v30 = vmul.f32 0.5, %v5310_v12 }
0x1a8a   :  { %v3515_v31 = vsel %vm391_vm3, %v3514_v56, %v3513_v28  ;;  %v3518_v33 = vrot.slane %v3476_v42, 4  ;;  %v3496_v32 = vsel %vm397_vm5, %v3495_v23, %v3494_v27  ;;  %v3520_v45 = vrot.slane %v3477_v11, 3 }
0x1a8b   :  { %v3283_v48 = vadd.f32 0.5, %v3282_v30  ;;  %v3498_v49 = vsel %vm400_vm6, %v3497_v26, %v3496_v32  ;;  %v3517_v57 = vsel %vm394_vm4, %v3516_v29, %v3515_v31  ;;  %v3499_v58 = vrot.slane %v3470_v37, 2 }
0x1a8c   :  { %v3522_v55 = vrot.slane %v3478_v14, 2  ;;  %v3519_v61 = vsel %vm397_vm5, %v3518_v33, %v3517_v57 }
0x1a8d   :  { %v3284_v63 = vsel %vm5499_vm10, %v5310_v12, %v3283_v48  ;;  %v3521_v1 = vsel %vm400_vm6, %v3520_v45, %v3519_v61  ;;  %v3500_v3 = vsel %vm403_vm9, %v3499_v58, %v3498_v49 }
0x1a8e   :  { %3287 = vrot.lane.b32.xlu0 %v3284_v63, %s5345_s15  ;;  %v3523_v38 = vsel %vm403_vm9, %v3522_v55, %v3521_v1  ;;  %v3285_v41 = vmul.f32 %v3284_v63, %v6146_v17 }
0x1a8f   :  { %v3525_v15 = vsel %vm5499_vm10, %v3500_v3, %v3523_v38 }
0x1a90   :  { %5311 = vtanh.f32 %v3525_v15 }
0x1a9a   :  { %v5312_v13 = vpop.eup %5311 }
0x1a9b   :  { %v3527_v19 = vmul.f32 0.5, %v5312_v13 }
0x1a9d   :  { %v3528_v37 = vadd.f32 0.5, %v3527_v19 }
0x1a9f   :  { %v3529_v6 = vsel %vm5499_vm10, %v5312_v13, %v3528_v37 }
0x1aa0   :  { %3532 = vrot.lane.b32.xlu1 %v3529_v6, %s5345_s15  ;;  %v3530_v12 = vmul.f32 %v3529_v6, %v6151_v22 }
0x1b00   :  { %v3288_v39 = vpop.permute.xlu0 %3287 }
0x1b01   :  { %v3290_v7 = vmul.f32 %v3288_v39, %v3284_v63 }
0x1b03   :  { %3292 = vrot.lane.b32.xlu0 %v3290_v7, %s5346_s16 }
0x1b12   :  { %v3533_v40 = vpop.permute.xlu1 %3532 }
0x1b13   :  { %v3535_v9 = vmul.f32 %v3533_v40, %v3529_v6 }
0x1b15   :  { %3537 = vrot.lane.b32.xlu1 %v3535_v9, %s5346_s16 }
0x1b75   :  { %v3293_v42 = vpop.permute.xlu0 %3292 }
0x1b76   :  { %v6214_v11 = vadd.f32 %v3293_v42, %v3285_v41 }
0x1b78   :  { %5313 = vtanh.f32 %v6214_v11 }
0x1b82   :  { %v5314_v43 = vpop.eup %5313 }
0x1b83   :  { %3298 = vrot.lane.b32.xlu0 %v5314_v43, %s5345_s15 }
0x1b87   :  { %v3538_v14 = vpop.permute.xlu1 %3537 }
0x1b88   :  { %v6219_v16 = vadd.f32 %v3538_v14, %v3530_v12 }
0x1b8a   :  { %5315 = vtanh.f32 %v6219_v16 }
0x1b94   :  { %v5316_v44 = vpop.eup %5315 }
0x1b95   :  { %3543 = vrot.lane.b32.xlu1 %v5316_v44, %s5345_s15 }
0x1bf5   :  { %v3299_v18 = vpop.permute.xlu0 %3298 }
0x1bf6   :  { %v3301_v17 = vmul.f32 %v3299_v18, %v3284_v63 }
0x1bf8   :  { %3303 = vrot.lane.b32.xlu0 %v3301_v17, %s5346_s16 }
0x1c07   :  { %v3544_v21 = vpop.permute.xlu1 %3543 }
0x1c08   :  { %v3546_v20 = vmul.f32 %v3544_v21, %v3529_v6 }
0x1c0a   :  { %3548 = vrot.lane.b32.xlu1 %v3546_v20, %s5346_s16 }
0x1c6a   :  { %v3304_v23 = vpop.permute.xlu0 %3303 }
0x1c6b   :  { %4890 = vmatmul.mubr.msk.f32.vlgmr.msra.gmra.mrb[18].mxu1 %vm200_vm11, %v3304_v23 }
0x1c6c   :  { %5156 = vmatpush3.bf16.msra.mxu1 %v5543_v2  ;;  %4911 = vmatprep.mubr.msk.f32.mxu1 %vm5342_vm0, %v5343_v4 }
0x1c6d   :  { %5157 = vmatprep.subr.bf16.mxu1 %v5341_v0 }
0x1c70   :  { %5159 = vmatpush3.bf16.msra.mxu1 %v5557_v8 }
0x1c71   :  { %5166 = vmatprep.subr.bf16.mxu1 %v5341_v0 }
0x1c7c   :  { %v3549_v22 = vpop.permute.xlu1 %3548 }
0x1c7d   :  { %4912 = vmatmul.mubr.msk.f32.vlgmr.msra.gmra.mrb[18].mxu1 %vm200_vm11, %v3549_v22 }
0x1c7e   :  { %5168 = vmatpush3.bf16.msra.mxu1 %v5410_v5  ;;  %4933 = vmatprep.mubr.msk.f32.mxu1 %vm5342_vm0, %v5343_v4 }
0x1c7f   :  { %5169 = vmatprep.subr.bf16.mxu1 %v5341_v0 }
0x1c82   :  { %5171 = vmatpush3.bf16.msra.mxu1 %v5422_v10 }
0x1c83   :  { %5178 = vmatprep.subr.bf16.mxu1 %v5341_v0 }
0x1c85   :  { %4934 = vmatmul.mubr.msk.f32.vlgmr.msra.gmra.mrb[20].mxu1 %vm200_vm11, %v3549_v22 }
0x1c86   :  { %5180 = vmatpush3.bf16.msra.mxu1 %v5525_v60  ;;  %4955 = vmatprep.mubr.msk.f32.mxu1 %vm5342_vm0, %v5343_v4 }
0x1c87   :  { %5181 = vmatprep.subr.bf16.mxu1 %v5341_v0 }
0x1c8a   :  { %5183 = vmatpush3.bf16.msra.mxu1 %v5531_v62 }
0x1c8b   :  { %5190 = vmatprep.subr.bf16.mxu1 %v5341_v0 }
0x1d50   :  { %v3618_v59 = vpop.f32.mrb[18].mxu1 }
0x1d51   :  { %v5205_v25 = vadd.f32 %v5926_v35, %v3618_v59  ;;  %v4913_v26 = vpop.f32.mrb[19].mxu1 }
0x1d53   :  { %v3623_v24 = vmul.f32 0.5, %v5205_v25 }
0x1d55   :  { %v3624_v56 = vsel %vm5499_vm10, %v5205_v25, %v3623_v24 }
0x1d56   :  { %5317 = vtanh.f32 %v3624_v56 }
0x1d58   :  { %v3787_v27 = vpop.f32.mrb[20].mxu1 }
0x1d59   :  { %v3792_v60 = vrot.slane %v3787_v27, 6  ;;  %v3793_v28 = vrot.slane %v3787_v27, 7  ;;  %v3794_v29 = vrot.slane %v3787_v27, 1  ;;  %v3795_v30 = vrot.slane %v3787_v27, 2  ;;  %v4935_v31 = vpop.f32.mrb[21].mxu1 }
0x1d5a   :  { %v3796_v33 = vrot.slane %v3787_v27, 3  ;;  %v3797_v32 = vrot.slane %v3787_v27, 4  ;;  %v3798_v62 = vrot.slane %v3787_v27, 5  ;;  %v3809_v45 = vadd.f32 %v3787_v27, %v6105_v53 }
0x1d5b   :  { %v3807_v48 = vadd.f32 %v3792_v60, %v6099_v47  ;;  %v3808_v35 = vadd.f32 %v3793_v28, %v6097_v46  ;;  %v3810_v49 = vadd.f32 %v3794_v29, %v6107_v51  ;;  %v3811_v57 = vadd.f32 %v3795_v30, %v6101_v50 }
0x1d5c   :  { %v3812_v58 = vadd.f32 %v3796_v33, %v6109_v36  ;;  %v3813_v55 = vadd.f32 %v3797_v32, %v6103_v52  ;;  %v3814_v61 = vadd.f32 %v3798_v62, %v6111_v54  ;;  %v3817_v15 = vmul.f32 0.5, %v3809_v45 }
0x1d5d   :  { %v3815_v63 = vmul.f32 0.5, %v3807_v48  ;;  %v3816_v1 = vmul.f32 0.5, %v3808_v35  ;;  %v3818_v3 = vmul.f32 0.5, %v3810_v49  ;;  %v3831_v38 = vrot.slane %v3807_v48, 2 }
0x1d5e   :  { %v3819_v13 = vmul.f32 0.5, %v3811_v57  ;;  %v3832_v19 = vrot.slane %v3808_v35, 1  ;;  %v3820_v6 = vmul.f32 0.5, %v3812_v58  ;;  %v3821_v39 = vmul.f32 0.5, %v3813_v55 }
0x1d5f   :  { %v3854_v7 = vrot.slane %v3815_v63, 2  ;;  %v3855_v40 = vrot.slane %v3816_v1, 1  ;;  %v3822_v9 = vmul.f32 0.5, %v3814_v61  ;;  %v3835_v42 = vrot.slane %v3810_v49, 7 }
0x1d60   :  { %v5318_v37 = vpop.eup %5317  ;;  %v3833_v41 = vsel %vm385_vm1, %v3832_v19, %v3831_v38  ;;  %v3837_v43 = vrot.slane %v3811_v57, 6  ;;  %v3839_v14 = vrot.slane %v3812_v58, 5  ;;  %v3858_v18 = vrot.slane %v3818_v3, 7 }
0x1d61   :  { %v3834_v12 = vsel %vm388_vm2, %v3809_v45, %v3833_v41  ;;  %v3856_v44 = vsel %vm385_vm1, %v3855_v40, %v3854_v7  ;;  %v3860_v20 = vrot.slane %v3819_v13, 6  ;;  %v3626_v23 = vmul.f32 0.5, %v5318_v37 }
0x1d62   :  { %v3836_v17 = vsel %vm391_vm3, %v3835_v42, %v3834_v12  ;;  %v3857_v21 = vsel %vm388_vm2, %v3817_v15, %v3856_v44  ;;  %v3841_v59 = vrot.slane %v3813_v55, 4  ;;  %v3862_v26 = vrot.slane %v3820_v6, 5 }
0x1d63   :  { %v3838_v22 = vsel %vm394_vm4, %v3837_v43, %v3836_v17  ;;  %v3859_v25 = vsel %vm391_vm3, %v3858_v18, %v3857_v21  ;;  %v3864_v24 = vrot.slane %v3821_v39, 4  ;;  %v3627_v56 = vadd.f32 0.5, %v3626_v23  ;;  %v6310_v43 = vld [vmem:[%s6385_s6] ss:$0 sm:$0xff] }
0x1d64   :  { %v3840_v27 = vsel %vm397_vm5, %v3839_v14, %v3838_v22  ;;  %v3861_v60 = vsel %vm394_vm4, %v3860_v20, %v3859_v25  ;;  %v3843_v28 = vrot.slane %v3814_v61, 3  ;;  %v3866_v29 = vrot.slane %v3822_v9, 3 }
0x1d65   :  { %v3842_v30 = vsel %vm400_vm6, %v3841_v59, %v3840_v27  ;;  %v3863_v31 = vsel %vm397_vm5, %v3862_v26, %v3861_v60  ;;  %v3628_v33 = vsel %vm5499_vm10, %v5318_v37, %v3627_v56 }
0x1d66   :  { %v3865_v32 = vsel %vm400_vm6, %v3864_v24, %v3863_v31  ;;  %3631 = vrot.lane.b32.xlu0 %v3628_v33, %s5345_s15  ;;  %v3844_v62 = vsel %vm403_vm9, %v3843_v28, %v3842_v30  ;;  %v3629_v3 = vmul.f32 %v3628_v33, %v6214_v11 }
0x1d67   :  { %v3867_v45 = vsel %vm403_vm9, %v3866_v29, %v3865_v32 }
0x1d68   :  { %v3869_v48 = vsel %vm5499_vm10, %v3844_v62, %v3867_v45 }
0x1d69   :  { %5319 = vtanh.f32 %v3869_v48 }
0x1d73   :  { %v5320_v35 = vpop.eup %5319 }
0x1d74   :  { %v3871_v49 = vmul.f32 0.5, %v5320_v35 }
0x1d76   :  { %v3872_v57 = vadd.f32 0.5, %v3871_v49 }
0x1d78   :  { %v3873_v58 = vsel %vm5499_vm10, %v5320_v35, %v3872_v57 }
0x1d79   :  { %3876 = vrot.lane.b32.xlu1 %v3873_v58, %s5345_s15  ;;  %v3874_v19 = vmul.f32 %v3873_v58, %v6219_v16 }
0x1dd8   :  { %v3632_v55 = vpop.permute.xlu0 %3631 }
0x1dd9   :  { %v3634_v61 = vmul.f32 %v3632_v55, %v3628_v33 }
0x1ddb   :  { %3636 = vrot.lane.b32.xlu0 %v3634_v61, %s5346_s16 }
0x1deb   :  { %v3877_v63 = vpop.permute.xlu1 %3876 }
0x1dec   :  { %v3879_v1 = vmul.f32 %v3877_v63, %v3873_v58 }
0x1dee   :  { %3881 = vrot.lane.b32.xlu1 %v3879_v1, %s5346_s16 }
0x1e4d   :  { %v3637_v38 = vpop.permute.xlu0 %3636 }
0x1e4e   :  { %v6282_v15 = vadd.f32 %v3637_v38, %v3629_v3 }
0x1e50   :  { %5321 = vtanh.f32 %v6282_v15 }
0x1e5a   :  { %v5322_v13 = vpop.eup %5321 }
0x1e5b   :  { %3642 = vrot.lane.b32.xlu0 %v5322_v13, %s5345_s15 }
0x1e60   :  { %v3882_v37 = vpop.permute.xlu1 %3881 }
0x1e61   :  { %v6287_v6 = vadd.f32 %v3882_v37, %v3874_v19 }
0x1e63   :  { %5323 = vtanh.f32 %v6287_v6 }
0x1e6d   :  { %v5324_v39 = vpop.eup %5323 }
0x1e6e   :  { %3887 = vrot.lane.b32.xlu1 %v5324_v39, %s5345_s15 }
0x1ecd   :  { %v3643_v7 = vpop.permute.xlu0 %3642 }
0x1ece   :  { %v3645_v11 = vmul.f32 %v3643_v7, %v3628_v33 }
0x1ed0   :  { %3647 = vrot.lane.b32.xlu0 %v3645_v11, %s5346_s16 }
0x1ee0   :  { %v3888_v40 = vpop.permute.xlu1 %3887 }
0x1ee1   :  { %v3890_v9 = vmul.f32 %v3888_v40, %v3873_v58 }
0x1ee3   :  { %3892 = vrot.lane.b32.xlu1 %v3890_v9, %s5346_s16 }
0x1f42   :  { %v3648_v41 = vpop.permute.xlu0 %3647 }
0x1f43   :  { %4923 = vmatmul.mubr.msk.f32.vlgmr.msra.gmra.mrb[20].mxu0 %vm200_vm11, %v3648_v41 }
0x1f44   :  { %5174 = vmatpush3.bf16.msra.mxu0 %v5543_v2  ;;  %4944 = vmatprep.mubr.msk.f32.mxu0 %vm5342_vm0, %v5343_v4 }
0x1f45   :  { %5175 = vmatprep.subr.bf16.mxu0 %v5341_v0 }
0x1f48   :  { %5177 = vmatpush3.bf16.msra.mxu0 %v5557_v8 }
0x1f49   :  { %5184 = vmatprep.subr.bf16.mxu0 %v5341_v0 }
0x1f55   :  { %v3893_v16 = vpop.permute.xlu1 %3892 }
0x1f56   :  { %4945 = vmatmul.mubr.msk.f32.vlgmr.msra.gmra.mrb[20].mxu0 %vm200_vm11, %v3893_v16 }
0x1f57   :  { %5186 = vmatpush3.bf16.msra.mxu0 %v5410_v5  ;;  %4966 = vmatprep.mubr.msk.f32.mxu0 %vm5342_vm0, %v5343_v4 }
0x1f58   :  { %5187 = vmatprep.subr.bf16.mxu0 %v5341_v0 }
0x1f5b   :  { %5189 = vmatpush3.bf16.msra.mxu0 %v5422_v10 }
0x1f5e   :  { %4967 = vmatmul.mubr.msk.f32.vlgmr.msra.gmra.mrb[22].mxu0 %vm200_vm11, %v3893_v16 }
0x2029   :  { %v3962_v42 = vpop.f32.mrb[20].mxu0 }
0x202a   :  { %v5206_v12 = vadd.f32 %v6310_v43, %v3962_v42  ;;  %v4946_v14 = vpop.f32.mrb[21].mxu0 }
0x202c   :  { %v3967_v44 = vmul.f32 0.5, %v5206_v12 }
0x202e   :  { %v3968_v5 = vsel %vm5499_vm10, %v5206_v12, %v3967_v44 }
0x202f   :  { %5325 = vtanh.f32 %v3968_v5 }
0x2031   :  { %v4131_v18 = vpop.f32.mrb[22].mxu0 }
0x2032   :  { %v4136_v17 = vrot.slane %v4131_v18, 5  ;;  %v4137_v21 = vrot.slane %v4131_v18, 6  ;;  %v4138_v10 = vrot.slane %v4131_v18, 7  ;;  %v4139_v20 = vrot.slane %v4131_v18, 1  ;;  %v4968_v23 = vpop.f32.mrb[23].mxu0 }
0x2033   :  { %v4140_v22 = vrot.slane %v4131_v18, 2  ;;  %v4141_v59 = vrot.slane %v4131_v18, 3  ;;  %v4142_v25 = vrot.slane %v4131_v18, 4  ;;  %v4154_v60 = vadd.f32 %v4131_v18, %v6107_v51 }
0x2034   :  { %v4151_v26 = vadd.f32 %v4136_v17, %v6099_v47  ;;  %v4152_v24 = vadd.f32 %v4137_v21, %v6097_v46  ;;  %v4153_v56 = vadd.f32 %v4138_v10, %v6105_v53  ;;  %v4155_v27 = vadd.f32 %v4139_v20, %v6101_v50 }
0x2035   :  { %v4156_v28 = vadd.f32 %v4140_v22, %v6109_v36  ;;  %v4157_v29 = vadd.f32 %v4141_v59, %v6103_v52  ;;  %v4158_v30 = vadd.f32 %v4142_v25, %v6111_v54  ;;  %v4162_v35 = vmul.f32 0.5, %v4154_v60 }
0x2036   :  { %v4159_v31 = vmul.f32 0.5, %v4151_v26  ;;  %v4160_v33 = vmul.f32 0.5, %v4152_v24  ;;  %v4161_v32 = vmul.f32 0.5, %v4153_v56  ;;  %v4175_v62 = vrot.slane %v4151_v26, 3 }
0x2037   :  { %v4163_v45 = vmul.f32 0.5, %v4155_v27  ;;  %v4176_v47 = vrot.slane %v4152_v24, 2  ;;  %v4178_v48 = vrot.slane %v4153_v56, 1  ;;  %v4164_v53 = vmul.f32 0.5, %v4156_v28 }
0x2038   :  { %v4198_v49 = vrot.slane %v4159_v31, 3  ;;  %v4199_v50 = vrot.slane %v4160_v33, 2  ;;  %v4165_v57 = vmul.f32 0.5, %v4157_v29  ;;  %v4166_v51 = vmul.f32 0.5, %v4158_v30 }
0x2039   :  { %v5326_v46 = vpop.eup %5325  ;;  %v4177_v36 = vsel %vm385_vm1, %v4176_v47, %v4175_v62  ;;  %v4201_v58 = vrot.slane %v4161_v32, 1  ;;  %v4181_v54 = vrot.slane %v4155_v27, 7  ;;  %v4183_v55 = vrot.slane %v4156_v28, 6 }
0x203a   :  { %v4179_v52 = vsel %vm388_vm2, %v4178_v48, %v4177_v36  ;;  %v4200_v61 = vsel %vm385_vm1, %v4199_v50, %v4198_v49  ;;  %v4204_v3 = vrot.slane %v4163_v45, 7  ;;  %v3970_v38 = vmul.f32 0.5, %v5326_v46 }
0x203b   :  { %v4180_v63 = vsel %vm391_vm3, %v4154_v60, %v4179_v52  ;;  %v4202_v1 = vsel %vm388_vm2, %v4201_v58, %v4200_v61  ;;  %v4185_v19 = vrot.slane %v4157_v29, 5  ;;  %v4206_v39 = vrot.slane %v4164_v53, 6 }
0x203c   :  { %v4182_v13 = vsel %vm394_vm4, %v4181_v54, %v4180_v63  ;;  %v4203_v37 = vsel %vm391_vm3, %v4162_v35, %v4202_v1  ;;  %v4208_v11 = vrot.slane %v4165_v57, 5  ;;  %v3971_v40 = vadd.f32 0.5, %v3970_v38 }
0x203d   :  { %v4205_v7 = vsel %vm394_vm4, %v4204_v3, %v4203_v37  ;;  %v4184_v9 = vsel %vm397_vm5, %v4183_v55, %v4182_v13  ;;  %v4187_v41 = vrot.slane %v4158_v30, 4  ;;  %v4210_v16 = vrot.slane %v4166_v51, 4  ;;  %v4403_v3 = vld [vmem:[#allocation2] ss:$0 sm:$0xff] }
0x203e   :  { %v4186_v42 = vsel %vm400_vm6, %v4185_v19, %v4184_v9  ;;  %v4207_v12 = vsel %vm397_vm5, %v4206_v39, %v4205_v7  ;;  %v3972_v14 = vsel %vm5499_vm10, %v5326_v46, %v3971_v40 }
0x203f   :  { %v4209_v44 = vsel %vm400_vm6, %v4208_v11, %v4207_v12  ;;  %3975 = vrot.lane.b32.xlu0 %v3972_v14, %s5345_s15  ;;  %v4188_v5 = vsel %vm403_vm9, %v4187_v41, %v4186_v42  ;;  %v3973_v24 = vmul.f32 %v3972_v14, %v6282_v15 }
0x2040   :  { %v4211_v18 = vsel %vm403_vm9, %v4210_v16, %v4209_v44 }
0x2041   :  { %v4213_v17 = vsel %vm5499_vm10, %v4188_v5, %v4211_v18 }
0x2042   :  { %5327 = vtanh.f32 %v4213_v17 }
0x204c   :  { %v5328_v21 = vpop.eup %5327 }
0x204d   :  { %v4215_v10 = vmul.f32 0.5, %v5328_v21 }
0x204f   :  { %v4216_v20 = vadd.f32 0.5, %v4215_v10 }
0x2051   :  { %v4217_v23 = vsel %vm5499_vm10, %v5328_v21, %v4216_v20 }
0x2052   :  { %4220 = vrot.lane.b32.xlu1 %v4217_v23, %s5345_s15  ;;  %v4218_v28 = vmul.f32 %v4217_v23, %v6287_v6 }
0x20b1   :  { %v3976_v22 = vpop.permute.xlu0 %3975 }
0x20b2   :  { %v3978_v59 = vmul.f32 %v3976_v22, %v3972_v14 }
0x20b4   :  { %3980 = vrot.lane.b32.xlu0 %v3978_v59, %s5346_s16 }
0x20c4   :  { %v4221_v25 = vpop.permute.xlu1 %4220 }
0x20c5   :  { %v4223_v26 = vmul.f32 %v4221_v25, %v4217_v23 }
0x20c7   :  { %4225 = vrot.lane.b32.xlu1 %v4223_v26, %s5346_s16 }
0x2126   :  { %v3981_v56 = vpop.permute.xlu0 %3980 }
0x2127   :  { %v3983_v27 = vadd.f32 %v3981_v56, %v3973_v24 }
0x2129   :  { %5329 = vtanh.f32 %v3983_v27 }
0x2133   :  { %v5330_v60 = vpop.eup %5329 }
0x2134   :  { %3986 = vrot.lane.b32.xlu0 %v5330_v60, %s5345_s15 }
0x2139   :  { %v4226_v29 = vpop.permute.xlu1 %4225 }
0x213a   :  { %v4228_v30 = vadd.f32 %v4226_v29, %v4218_v28 }
0x213c   :  { %5331 = vtanh.f32 %v4228_v30 }
0x2146   :  { %v5332_v31 = vpop.eup %5331 }
0x2147   :  { %4231 = vrot.lane.b32.xlu1 %v5332_v31, %s5345_s15 }
0x21a6   :  { %v3987_v33 = vpop.permute.xlu0 %3986 }
0x21a7   :  { %v3989_v32 = vmul.f32 %v3987_v33, %v3972_v14 }
0x21a9   :  { %3991 = vrot.lane.b32.xlu0 %v3989_v32, %s5346_s16 }
0x21b9   :  { %v4232_v62 = vpop.permute.xlu1 %4231 }
0x21ba   :  { %v4234_v15 = vmul.f32 %v4232_v62, %v4217_v23 }
0x21bc   :  { %4236 = vrot.lane.b32.xlu1 %v4234_v15, %s5346_s16 }
0x221b   :  { %v3992_v45 = vpop.permute.xlu0 %3991 }
0x221c   :  { %4956 = vmatmul.mubr.msk.f32.vlgmr.msra.gmra.mrb[22].mxu1 %vm200_vm11, %v3992_v45 }
0x221d   :  { %5192 = vmatpush3.bf16.msra.mxu1 %v5543_v2  ;;  %4977 = vmatprep.mubr.msk.f32.mxu1 %vm5342_vm0, %v5343_v4 }
0x221e   :  { %5193 = vmatprep.subr.bf16.mxu1 %v5341_v0 }
0x2221   :  { %5195 = vmatpush3.bf16.msra.mxu1 %v5557_v8 }
0x222e   :  { %v4237_v6 = vpop.permute.xlu1 %4236 }
0x222f   :  { %4978 = vmatmul.mubr.msk.f32.vlgmr.msra.gmra.mrb[22].mxu1 %vm200_vm11, %v4237_v6 }
0x2302   :  { %v4306_v47 = vpop.f32.mrb[22].mxu1 }
0x2303   :  { %v5207_v48 = vadd.f32 %v6310_v43, %v4306_v47  ;;  %v4979_v46 = vpop.f32.mrb[23].mxu1  ;;  %v4402_v43 = vld [vmem:[%s6386_s7] ss:$0 sm:$0xff] }
0x2305   :  { %v4311_v35 = vmul.f32 0.5, %v5207_v48 }
0x2307   :  { %v4312_v53 = vsel %vm5499_vm10, %v5207_v48, %v4311_v35 }
0x2308   :  { %5333 = vtanh.f32 %v4312_v53 }
0x2312   :  { %v5334_v2 = vpop.eup %5333 }
0x2313   :  { %v4314_v49 = vmul.f32 0.5, %v5334_v2 }
0x2315   :  { %v4315_v50 = vadd.f32 0.5, %v4314_v49 }
0x2317   :  { %v4316_v0 = vsel %vm5499_vm10, %v5334_v2, %v4315_v50 }
0x2318   :  { %4319 = vrot.lane.b32.xlu0 %v4316_v0, %s5345_s15  ;;  %v4317_v57 = vmul.f32 %v4316_v0, %v3983_v27 }
0x238a   :  { %v4320_v4 = vpop.permute.xlu0 %4319 }
0x238b   :  { %v4322_v8 = vmul.f32 %v4320_v4, %v4316_v0 }
0x238d   :  { %4324 = vrot.lane.b32.xlu1 %v4322_v8, %s5346_s16 }
0x2391   :  { %4340 = vrot.lane.b32.xlu1 %v4402_v43, %s5347_s11 }
0x23ff   :  { %v4325_v51 = vpop.permute.xlu1 %4324 }
0x2400   :  { %v4327_v36 = vadd.f32 %v4325_v51, %v4317_v57 }
0x2402   :  { %5335 = vtanh.f32 %v4327_v36 }
0x2403   :  { %v4341_v54 = vpop.permute.xlu1 %4340 }
0x240c   :  { %v5336_v58 = vpop.eup %5335 }
0x240d   :  { %4330 = vrot.lane.b32.xlu0 %v5336_v58, %s5345_s15 }
0x247f   :  { %v4331_v52 = vpop.permute.xlu0 %4330 }
0x2480   :  { %v4333_v55 = vmul.f32 %v4331_v52, %v4316_v0 }
0x2482   :  { %v4343_v61 = vmul.f32 %v4341_v54, %v4333_v55 }
0x2484   :  { %4345 = vrot.lane.b32.xlu0 %v4343_v61, %s5346_s16 }
0x24f6   :  { %v4346_v63 = vpop.permute.xlu0 %4345 }
0x24f7   :  { %v4348_v1 = vsel %vm200_vm11, %v4346_v63, 0.0 }
0x24f8   :  { %4349 = vadd.xlane.f32.xlu1 %v4348_v1 }
0x2585   :  { %v4350_v38 = vpop.xlane.xlu1 %4349 }
0x2586   :  { %v4358_v13 = vadd.f32 %v4403_v3, %v4350_v38 }
0x2588   :  { %4360 = vst.msk [vmem:[%s6388_s9] sm:$0xff] %vm4359_vm12, %v4358_v13 }

</bundles_post_ra>
